<compile_context>
chip_gen: v6e
topology: v6e:2x2x1
jax: 0.10.0
libtpu: 0.0.40
codegen_flags: <defaults>
</compile_context>

<pallas_src>
import jax
import jax.numpy as jnp
from jax.experimental import pallas as pl
from jax.experimental.pallas import tpu as pltpu

LOOKBACK = 40
C_IN = 4
C1 = 32
C2 = 64
FC1_OUT = 64
FC1_GROUP = 8            # positions folded per FC1 matmul (divides LOOKBACK)
BN_EPS = 1e-5


def _pick_batch_tile(B):
    """Rows-per-step selection: whole batch on 1-TC chips (v5e/v6e); split evenly
    across >=2 grid steps on multi-TC chips (v7x); cap bt to bound per-step VMEM."""
    try:
        kind = jax.devices()[0].device_kind.lower()
    except Exception:
        kind = ""
    multi_tc = "v7" in kind
    cap = 256
    if B <= 8 or (not multi_tc and B <= cap):
        return B
    for d in range(min(cap, B), 0, -1):
        if B % d == 0 and d % 8 == 0 and (not multi_tc or B // d >= 2):
            return d
    return B


def fused_cnn_kernel(mask_ref, x_ref, w1_ref, w2_ref, shifts_ref,
                     wf1_ref, headc_ref, out_ref, h2_scr):
    """Conv1(k=3,p=1)+BN+ReLU -> Conv2+BN+ReLU -> FC1+ReLU -> FC2, on one batch tile.

    Row layout inside the tile is l-major: row = l*bt + b (b = local batch index),
    so conv taps are rolls by +-bt sublanes and per-position FC1 chunks are
    contiguous bt-row slices of the h2 scratch.
    """
    M = x_ref.shape[0]          # bt * LOOKBACK (static)
    bt = out_ref.shape[0]       # batch elements in this tile (static)

    mask = mask_ref[...]        # (M, 2) f32 boundary masks
    nf = mask[:, 0:1]           # 0.0 on rows with l == 0
    nl = mask[:, 1:2]           # 0.0 on rows with l == LOOKBACK-1
    shifts = shifts_ref[...]    # (2, C2): [sh1 (padded) ; sh2]

    def conv_bn_relu(h, w_mat, shift_row):
        # Tap construction on the sublane axis (XLU), masked so the wrap-around of
        # the roll never leaks across sequence boundaries.
        prev = pltpu.roll(h, shift=bt, axis=0) * nf          # x[l-1]
        nxt = pltpu.roll(h, shift=M - bt, axis=0) * nl       # x[l+1]
        lhs = jnp.concatenate([prev, h, nxt], axis=1)        # (M, 3*Cin) im2col
        y = jnp.dot(lhs, w_mat, preferred_element_type=jnp.float32)
        # BN scale is folded into w_mat; only shift (+ conv bias) + ReLU remain.
        return jnp.maximum(y + shift_row, 0.0)

    h1 = conv_bn_relu(x_ref[...], w1_ref[...], shifts[0:1, :C1])     # (M, C1)
    h2_scr[...] = conv_bn_relu(h1, w2_ref[...], shifts[1:2, :])      # (M, C2)

    # FC1: accumulate over sequence positions in groups of FC1_GROUP so each
    # matmul has K = FC1_GROUP*C2 = 512 (instead of 40 tiny K=64 matmuls).
    acc = jnp.zeros((bt, FC1_OUT), jnp.float32)
    for g in range(LOOKBACK // FC1_GROUP):
        chunks = [h2_scr[pl.ds((g * FC1_GROUP + j) * bt, bt), :]
                  for j in range(FC1_GROUP)]
        lhs = jnp.concatenate(chunks, axis=1)                # (bt, FC1_GROUP*C2)
        acc = acc + jnp.dot(lhs, wf1_ref[g],
                            preferred_element_type=jnp.float32)

    headc = headc_ref[...]                                   # (3, FC1_OUT)
    fc1 = jnp.maximum(acc + headc[0:1, :], 0.0)              # (bt, FC1_OUT)
    # FC2 (N=1): VPU multiply + lane reduction instead of a wasteful MXU matmul.
    out_ref[...] = (jnp.sum(fc1 * headc[1:2, :], axis=-1, keepdims=True)
                    + headc[2:3, 0:1])
    # TODO(synk): dropout_rate=0 -> identity; a nonzero rate would need pltpu.prng_*.


def cnn_forward(x, kparams, *, batch_tile=None):
    """x: (B, LOOKBACK, C_IN) float32 -> (B, 1) float32."""
    w1s, w2s, shifts, wf1p, headc = kparams
    B, L, Cin = x.shape
    assert L == LOOKBACK and Cin == C_IN
    bt = batch_tile if batch_tile is not None else _pick_batch_tile(B)
    assert B % bt == 0
    nb = B // bt
    M = bt * L
    ng = LOOKBACK // FC1_GROUP

    # l-major row order per batch tile: row = l*bt + b_local (tiny host-side
    # relayout of the input; makes every in-kernel slice contiguous & aligned).
    x2 = jnp.transpose(x.reshape(nb, bt, L, Cin), (0, 2, 1, 3)).reshape(nb * M, Cin)

    # Boundary masks are identical for every tile -> single (M, 2) array with a
    # constant index_map, DMA'd once.
    l_of_row = jnp.arange(M, dtype=jnp.int32) // bt
    mask = jnp.stack([(l_of_row != 0).astype(jnp.float32),
                      (l_of_row != L - 1).astype(jnp.float32)], axis=1)

    out = pl.pallas_call(
        fused_cnn_kernel,
        out_shape=jax.ShapeDtypeStruct((B, 1), jnp.float32),
        grid_spec=pltpu.PrefetchScalarGridSpec(
            num_scalar_prefetch=0,
            grid=(nb,),
            in_specs=[
                pl.BlockSpec((M, 2), lambda i: (0, 0)),                      # mask
                pl.BlockSpec((M, Cin), lambda i: (i, 0)),                    # x tile
                pl.BlockSpec((3 * C_IN, C1), lambda i: (0, 0)),              # conv1 W
                pl.BlockSpec((3 * C1, C2), lambda i: (0, 0)),                # conv2 W
                pl.BlockSpec((2, C2), lambda i: (0, 0)),                     # shifts
                pl.BlockSpec((ng, FC1_GROUP * C2, FC1_OUT),
                             lambda i: (0, 0, 0)),                           # fc1 W
                pl.BlockSpec((3, FC1_OUT), lambda i: (0, 0)),                # head c
            ],
            out_specs=pl.BlockSpec((bt, 1), lambda i: (i, 0)),
            scratch_shapes=[pltpu.VMEM((M, C2), jnp.float32)],               # h2
        ),
        compiler_params=pltpu.CompilerParams(
            dimension_semantics=("parallel",)),
    )(mask, x2, w1s, w2s, shifts, wf1p, headc)
    return out


def make_params(key):
    ks = jax.random.split(key, 16)
    f32 = jnp.float32
    # PyTorch-layout raw parameters (deterministic synthetic init).
    W1 = jax.random.normal(ks[0], (C1, C_IN, 3), f32) * 0.2
    b1 = jax.random.normal(ks[1], (C1,), f32) * 0.1
    g1 = 1.0 + 0.1 * jax.random.normal(ks[2], (C1,), f32)
    be1 = 0.1 * jax.random.normal(ks[3], (C1,), f32)
    m1 = 0.1 * jax.random.normal(ks[4], (C1,), f32)
    v1 = jnp.abs(jax.random.normal(ks[5], (C1,), f32)) + 0.5

    W2 = jax.random.normal(ks[6], (C2, C1, 3), f32) * 0.1
    b2 = jax.random.normal(ks[7], (C2,), f32) * 0.1
    g2 = 1.0 + 0.1 * jax.random.normal(ks[8], (C2,), f32)
    be2 = 0.1 * jax.random.normal(ks[9], (C2,), f32)
    m2 = 0.1 * jax.random.normal(ks[10], (C2,), f32)
    v2 = jnp.abs(jax.random.normal(ks[11], (C2,), f32)) + 0.5

    Wf1 = jax.random.normal(ks[12], (FC1_OUT, C2 * LOOKBACK), f32) * 0.02
    bf1 = jax.random.normal(ks[13], (FC1_OUT,), f32) * 0.1
    Wf2 = jax.random.normal(ks[14], (1, FC1_OUT), f32) * 0.1
    bf2 = jax.random.normal(ks[15], (1,), f32) * 0.1

    raw = (W1, b1, g1, be1, m1, v1, W2, b2, g2, be2, m2, v2, Wf1, bf1, Wf2, bf2)

    # --- kernel layouts ---
    s1 = g1 / jnp.sqrt(v1 + BN_EPS)
    s2 = g2 / jnp.sqrt(v2 + BN_EPS)
    # im2col conv weights (3*Cin, Cout) with BN scale folded per output channel.
    w1s = jnp.transpose(W1, (2, 1, 0)).reshape(3 * C_IN, C1) * s1[None, :]
    w2s = jnp.transpose(W2, (2, 1, 0)).reshape(3 * C1, C2) * s2[None, :]
    # Additive shifts (conv bias + BN shift), packed into one (2, C2) array.
    sh1 = be1 - m1 * s1 + b1 * s1
    sh2 = be2 - m2 * s2 + b2 * s2
    shifts = jnp.zeros((2, C2), f32).at[0, :C1].set(sh1).at[1, :].set(sh2)
    # FC1 weight: PyTorch flatten index is c*L + l; repack l-major and group
    # FC1_GROUP positions per matmul -> (ng, FC1_GROUP*C2, FC1_OUT).
    ng = LOOKBACK // FC1_GROUP
    wf1_lmaj = jnp.transpose(Wf1.reshape(FC1_OUT, C2, LOOKBACK), (2, 1, 0))
    wf1p = wf1_lmaj.reshape(ng, FC1_GROUP * C2, FC1_OUT)
    # Head constants packed: [fc1 bias ; fc2 weight row ; fc2 bias broadcast].
    headc = jnp.stack([bf1, Wf2[0], jnp.full((FC1_OUT,), bf2[0], f32)], axis=0)

    kparams = (w1s, w2s, shifts, wf1p, headc)
    return raw, kparams


def ref_forward(x, raw):
    """Pure-JAX reference replicating PyTorch forward (eval-mode BN, dropout=0)."""
    (W1, b1, g1, be1, m1, v1, W2, b2, g2, be2, m2, v2, Wf1, bf1, Wf2, bf2) = raw
    xt = jnp.transpose(x, (0, 2, 1))                       # (B, C_IN, L) == x.transpose(1,2)

    def conv1d(inp, W, b):
        Bn, _, Lx = inp.shape
        xp = jnp.pad(inp, ((0, 0), (0, 0), (1, 1)))
        out = jnp.zeros((Bn, W.shape[0], Lx), jnp.float32)
        for k in range(3):
            out = out + jnp.einsum('bcl,oc->bol', xp[:, :, k:k + Lx], W[:, :, k])
        return out + b[None, :, None]

    def bn(h, g, be, m, v):
        return (h - m[None, :, None]) / jnp.sqrt(v + BN_EPS)[None, :, None] \
            * g[None, :, None] + be[None, :, None]

    h = jnp.maximum(bn(conv1d(xt, W1, b1), g1, be1, m1, v1), 0.0)
    h = jnp.maximum(bn(conv1d(h, W2, b2), g2, be2, m2, v2), 0.0)
    flat = h.reshape(h.shape[0], -1)                       # PyTorch flatten: c*L + l
    f1 = jnp.maximum(flat @ Wf1.T + bf1, 0.0)
    return f1 @ Wf2.T + bf2


if __name__ == "__main__":
    B = 8
    key = jax.random.PRNGKey(0)
    pkey, xkey = jax.random.split(key)
    raw, kparams = make_params(pkey)
    x = jax.random.normal(xkey, (B, LOOKBACK, C_IN), jnp.float32)

    fwd = jax.jit(cnn_forward)
    out = jax.block_until_ready(fwd(x, kparams))

    ref = jax.block_until_ready(ref_forward(x, raw))
    assert out.shape == (B, 1), out.shape
    assert jnp.allclose(out, ref, atol=1e-3, rtol=1e-3), (out, ref)
    print("KERNEL_OK")
</pallas_src>

<mosaic_0001>
module attributes {stable_mosaic.version = 11 : i64} {
  func.func @fused_cnn_kernel(%arg0: i32, %arg1: memref<320x2xf32, #tpu.memory_space<vmem>>, %arg2: memref<320x4xf32, #tpu.memory_space<vmem>>, %arg3: memref<12x32xf32, #tpu.memory_space<vmem>>, %arg4: memref<96x64xf32, #tpu.memory_space<vmem>>, %arg5: memref<2x64xf32, #tpu.memory_space<vmem>>, %arg6: memref<5x512x64xf32, #tpu.memory_space<vmem>>, %arg7: memref<3x64xf32, #tpu.memory_space<vmem>>, %arg8: memref<8x1xf32, #tpu.memory_space<vmem>>, %arg9: memref<320x64xf32, #tpu.memory_space<vmem>>) attributes {dimension_semantics = [#tpu.dimension_semantics<parallel>], iteration_bounds = array<i64: 1>, scalar_prefetch = 0 : i64, scratch_operands = 1 : i64, tpu.core_type = #tpu.core_type<tc>, window_params = [{pipeline_mode = #tpu.pipeline_mode<synchronous>, transform_indices = @transform_0, window_bounds = array<i64: 320, 2>}, {transform_indices = @transform_1, window_bounds = array<i64: 320, 4>}, {pipeline_mode = #tpu.pipeline_mode<synchronous>, transform_indices = @transform_2, window_bounds = array<i64: 12, 32>}, {pipeline_mode = #tpu.pipeline_mode<synchronous>, transform_indices = @transform_3, window_bounds = array<i64: 96, 64>}, {pipeline_mode = #tpu.pipeline_mode<synchronous>, transform_indices = @transform_4, window_bounds = array<i64: 2, 64>}, {pipeline_mode = #tpu.pipeline_mode<synchronous>, transform_indices = @transform_5, window_bounds = array<i64: 5, 512, 64>}, {pipeline_mode = #tpu.pipeline_mode<synchronous>, transform_indices = @transform_6, window_bounds = array<i64: 3, 64>}, {transform_indices = @transform_7, window_bounds = array<i64: 8, 1>}]} {
    %c0 = arith.constant 0 : index
    %c0_0 = arith.constant 0 : index
    %0 = vector.load %arg1[%c0, %c0_0] : memref<320x2xf32, #tpu.memory_space<vmem>>, vector<320x2xf32>
    %1 = vector.extract_strided_slice %0 {offsets = [0, 0], sizes = [320, 1], strides = [1, 1]} : vector<320x2xf32> to vector<320x1xf32>
    %2 = vector.extract_strided_slice %0 {offsets = [0, 1], sizes = [320, 1], strides = [1, 1]} : vector<320x2xf32> to vector<320x1xf32>
    %c0_1 = arith.constant 0 : index
    %c0_2 = arith.constant 0 : index
    %3 = vector.load %arg5[%c0_1, %c0_2] : memref<2x64xf32, #tpu.memory_space<vmem>>, vector<2x64xf32>
    %c0_3 = arith.constant 0 : index
    %c0_4 = arith.constant 0 : index
    %4 = vector.load %arg2[%c0_3, %c0_4] : memref<320x4xf32, #tpu.memory_space<vmem>>, vector<320x4xf32>
    %c0_5 = arith.constant 0 : index
    %c0_6 = arith.constant 0 : index
    %5 = vector.load %arg3[%c0_5, %c0_6] : memref<12x32xf32, #tpu.memory_space<vmem>>, vector<12x32xf32>
    %6 = vector.extract_strided_slice %3 {offsets = [0, 0], sizes = [1, 32], strides = [1, 1]} : vector<2x64xf32> to vector<1x32xf32>
    %c8_i32 = arith.constant 8 : i32
    %7 = tpu.dynamic_rotate %4 by %c8_i32 dim 0 : vector<320x4xf32>, i32 -> vector<320x4xf32>
    %8 = vector.broadcast %1 : vector<320x1xf32> to vector<320x4xf32>
    %9 = arith.mulf %7, %8 : vector<320x4xf32>
    %c312_i32 = arith.constant 312 : i32
    %10 = tpu.dynamic_rotate %4 by %c312_i32 dim 0 : vector<320x4xf32>, i32 -> vector<320x4xf32>
    %11 = vector.broadcast %2 : vector<320x1xf32> to vector<320x4xf32>
    %12 = arith.mulf %10, %11 : vector<320x4xf32>
    %13 = tpu.concatenate %9, %4, %12 in 1 : vector<320x4xf32>, vector<320x4xf32>, vector<320x4xf32> -> vector<320x12xf32>
    %cst = arith.constant dense<0.000000e+00> : vector<320x32xf32>
    %14 = tpu.matmul %13, %5, %cst {dimension_numbers = #tpu.dot_dimension_numbers<[1], [0], [0], [1], [0, 0, 1, 1], [], []>} : vector<320x12xf32>, vector<12x32xf32>, vector<320x32xf32> -> vector<320x32xf32>
    %15 = vector.broadcast %6 : vector<1x32xf32> to vector<320x32xf32>
    %16 = arith.addf %14, %15 : vector<320x32xf32>
    %cst_7 = arith.constant 0.000000e+00 : f32
    %17 = vector.broadcast %cst_7 : f32 to vector<320x32xf32>
    %18 = arith.maximumf %16, %17 : vector<320x32xf32>
    %c0_8 = arith.constant 0 : index
    %c0_9 = arith.constant 0 : index
    %19 = vector.load %arg4[%c0_8, %c0_9] : memref<96x64xf32, #tpu.memory_space<vmem>>, vector<96x64xf32>
    %20 = vector.extract_strided_slice %3 {offsets = [1, 0], sizes = [1, 64], strides = [1, 1]} : vector<2x64xf32> to vector<1x64xf32>
    %c8_i32_10 = arith.constant 8 : i32
    %21 = tpu.dynamic_rotate %18 by %c8_i32_10 dim 0 : vector<320x32xf32>, i32 -> vector<320x32xf32>
    %22 = vector.broadcast %1 : vector<320x1xf32> to vector<320x32xf32>
    %23 = arith.mulf %21, %22 : vector<320x32xf32>
    %c312_i32_11 = arith.constant 312 : i32
    %24 = tpu.dynamic_rotate %18 by %c312_i32_11 dim 0 : vector<320x32xf32>, i32 -> vector<320x32xf32>
    %25 = vector.broadcast %2 : vector<320x1xf32> to vector<320x32xf32>
    %26 = arith.mulf %24, %25 : vector<320x32xf32>
    %27 = tpu.concatenate %23, %18, %26 in 1 : vector<320x32xf32>, vector<320x32xf32>, vector<320x32xf32> -> vector<320x96xf32>
    %cst_12 = arith.constant dense<0.000000e+00> : vector<320x64xf32>
    %28 = tpu.matmul %27, %19, %cst_12 {dimension_numbers = #tpu.dot_dimension_numbers<[1], [0], [0], [1], [0, 0, 1, 1], [], []>} : vector<320x96xf32>, vector<96x64xf32>, vector<320x64xf32> -> vector<320x64xf32>
    %29 = vector.broadcast %20 : vector<1x64xf32> to vector<320x64xf32>
    %30 = arith.addf %28, %29 : vector<320x64xf32>
    %cst_13 = arith.constant 0.000000e+00 : f32
    %31 = vector.broadcast %cst_13 : f32 to vector<320x64xf32>
    %32 = arith.maximumf %30, %31 : vector<320x64xf32>
    %c0_14 = arith.constant 0 : index
    %c0_15 = arith.constant 0 : index
    %33 = vector.load %arg9[%c0_14, %c0_15] : memref<320x64xf32, #tpu.memory_space<vmem>>, vector<320x64xf32>
    tpu.vector_store %arg9[%c0_14, %c0_15], %32 {strides = array<i32>} : memref<320x64xf32, #tpu.memory_space<vmem>>, vector<320x64xf32>,
    %cst_16 = arith.constant 0.000000e+00 : f32
    %34 = vector.broadcast %cst_16 : f32 to vector<8x64xf32>
    %c0_17 = arith.constant 0 : index
    %c0_18 = arith.constant 0 : index
    %35 = vector.load %arg9[%c0_17, %c0_18] : memref<320x64xf32, #tpu.memory_space<vmem>>, vector<8x64xf32>
    %c8 = arith.constant 8 : index
    %c0_19 = arith.constant 0 : index
    %36 = vector.load %arg9[%c8, %c0_19] : memref<320x64xf32, #tpu.memory_space<vmem>>, vector<8x64xf32>
    %c16 = arith.constant 16 : index
    %c0_20 = arith.constant 0 : index
    %37 = vector.load %arg9[%c16, %c0_20] : memref<320x64xf32, #tpu.memory_space<vmem>>, vector<8x64xf32>
    %c24 = arith.constant 24 : index
    %c0_21 = arith.constant 0 : index
    %38 = vector.load %arg9[%c24, %c0_21] : memref<320x64xf32, #tpu.memory_space<vmem>>, vector<8x64xf32>
    %c32 = arith.constant 32 : index
    %c0_22 = arith.constant 0 : index
    %39 = vector.load %arg9[%c32, %c0_22] : memref<320x64xf32, #tpu.memory_space<vmem>>, vector<8x64xf32>
    %c40 = arith.constant 40 : index
    %c0_23 = arith.constant 0 : index
    %40 = vector.load %arg9[%c40, %c0_23] : memref<320x64xf32, #tpu.memory_space<vmem>>, vector<8x64xf32>
    %c48 = arith.constant 48 : index
    %c0_24 = arith.constant 0 : index
    %41 = vector.load %arg9[%c48, %c0_24] : memref<320x64xf32, #tpu.memory_space<vmem>>, vector<8x64xf32>
    %c56 = arith.constant 56 : index
    %c0_25 = arith.constant 0 : index
    %42 = vector.load %arg9[%c56, %c0_25] : memref<320x64xf32, #tpu.memory_space<vmem>>, vector<8x64xf32>
    %43 = tpu.concatenate %35, %36, %37, %38, %39, %40, %41, %42 in 1 : vector<8x64xf32>, vector<8x64xf32>, vector<8x64xf32>, vector<8x64xf32>, vector<8x64xf32>, vector<8x64xf32>, vector<8x64xf32>, vector<8x64xf32> -> vector<8x512xf32>
    %c0_26 = arith.constant 0 : index
    %c0_27 = arith.constant 0 : index
    %c0_28 = arith.constant 0 : index
    %44 = vector.load %arg6[%c0_26, %c0_27, %c0_28] : memref<5x512x64xf32, #tpu.memory_space<vmem>>, vector<1x512x64xf32>
    %45 = vector.shape_cast %44 : vector<1x512x64xf32> to vector<512x64xf32>
    %cst_29 = arith.constant dense<0.000000e+00> : vector<8x64xf32>
    %46 = tpu.matmul %43, %45, %cst_29 {dimension_numbers = #tpu.dot_dimension_numbers<[1], [0], [0], [1], [0, 0, 1, 1], [], []>} : vector<8x512xf32>, vector<512x64xf32>, vector<8x64xf32> -> vector<8x64xf32>
    %47 = arith.addf %34, %46 : vector<8x64xf32>
    %c64 = arith.constant 64 : index
    %c0_30 = arith.constant 0 : index
    %48 = vector.load %arg9[%c64, %c0_30] : memref<320x64xf32, #tpu.memory_space<vmem>>, vector<8x64xf32>
    %c72 = arith.constant 72 : index
    %c0_31 = arith.constant 0 : index
    %49 = vector.load %arg9[%c72, %c0_31] : memref<320x64xf32, #tpu.memory_space<vmem>>, vector<8x64xf32>
    %c80 = arith.constant 80 : index
    %c0_32 = arith.constant 0 : index
    %50 = vector.load %arg9[%c80, %c0_32] : memref<320x64xf32, #tpu.memory_space<vmem>>, vector<8x64xf32>
    %c88 = arith.constant 88 : index
    %c0_33 = arith.constant 0 : index
    %51 = vector.load %arg9[%c88, %c0_33] : memref<320x64xf32, #tpu.memory_space<vmem>>, vector<8x64xf32>
    %c96 = arith.constant 96 : index
    %c0_34 = arith.constant 0 : index
    %52 = vector.load %arg9[%c96, %c0_34] : memref<320x64xf32, #tpu.memory_space<vmem>>, vector<8x64xf32>
    %c104 = arith.constant 104 : index
    %c0_35 = arith.constant 0 : index
    %53 = vector.load %arg9[%c104, %c0_35] : memref<320x64xf32, #tpu.memory_space<vmem>>, vector<8x64xf32>
    %c112 = arith.constant 112 : index
    %c0_36 = arith.constant 0 : index
    %54 = vector.load %arg9[%c112, %c0_36] : memref<320x64xf32, #tpu.memory_space<vmem>>, vector<8x64xf32>
    %c120 = arith.constant 120 : index
    %c0_37 = arith.constant 0 : index
    %55 = vector.load %arg9[%c120, %c0_37] : memref<320x64xf32, #tpu.memory_space<vmem>>, vector<8x64xf32>
    %56 = tpu.concatenate %48, %49, %50, %51, %52, %53, %54, %55 in 1 : vector<8x64xf32>, vector<8x64xf32>, vector<8x64xf32>, vector<8x64xf32>, vector<8x64xf32>, vector<8x64xf32>, vector<8x64xf32>, vector<8x64xf32> -> vector<8x512xf32>
    %c1 = arith.constant 1 : index
    %c0_38 = arith.constant 0 : index
    %c0_39 = arith.constant 0 : index
    %57 = vector.load %arg6[%c1, %c0_38, %c0_39] : memref<5x512x64xf32, #tpu.memory_space<vmem>>, vector<1x512x64xf32>
    %58 = vector.shape_cast %57 : vector<1x512x64xf32> to vector<512x64xf32>
    %cst_40 = arith.constant dense<0.000000e+00> : vector<8x64xf32>
    %59 = tpu.matmul %56, %58, %cst_40 {dimension_numbers = #tpu.dot_dimension_numbers<[1], [0], [0], [1], [0, 0, 1, 1], [], []>} : vector<8x512xf32>, vector<512x64xf32>, vector<8x64xf32> -> vector<8x64xf32>
    %60 = arith.addf %47, %59 : vector<8x64xf32>
    %c128 = arith.constant 128 : index
    %c0_41 = arith.constant 0 : index
    %61 = vector.load %arg9[%c128, %c0_41] : memref<320x64xf32, #tpu.memory_space<vmem>>, vector<8x64xf32>
    %c136 = arith.constant 136 : index
    %c0_42 = arith.constant 0 : index
    %62 = vector.load %arg9[%c136, %c0_42] : memref<320x64xf32, #tpu.memory_space<vmem>>, vector<8x64xf32>
    %c144 = arith.constant 144 : index
    %c0_43 = arith.constant 0 : index
    %63 = vector.load %arg9[%c144, %c0_43] : memref<320x64xf32, #tpu.memory_space<vmem>>, vector<8x64xf32>
    %c152 = arith.constant 152 : index
    %c0_44 = arith.constant 0 : index
    %64 = vector.load %arg9[%c152, %c0_44] : memref<320x64xf32, #tpu.memory_space<vmem>>, vector<8x64xf32>
    %c160 = arith.constant 160 : index
    %c0_45 = arith.constant 0 : index
    %65 = vector.load %arg9[%c160, %c0_45] : memref<320x64xf32, #tpu.memory_space<vmem>>, vector<8x64xf32>
    %c168 = arith.constant 168 : index
    %c0_46 = arith.constant 0 : index
    %66 = vector.load %arg9[%c168, %c0_46] : memref<320x64xf32, #tpu.memory_space<vmem>>, vector<8x64xf32>
    %c176 = arith.constant 176 : index
    %c0_47 = arith.constant 0 : index
    %67 = vector.load %arg9[%c176, %c0_47] : memref<320x64xf32, #tpu.memory_space<vmem>>, vector<8x64xf32>
    %c184 = arith.constant 184 : index
    %c0_48 = arith.constant 0 : index
    %68 = vector.load %arg9[%c184, %c0_48] : memref<320x64xf32, #tpu.memory_space<vmem>>, vector<8x64xf32>
    %69 = tpu.concatenate %61, %62, %63, %64, %65, %66, %67, %68 in 1 : vector<8x64xf32>, vector<8x64xf32>, vector<8x64xf32>, vector<8x64xf32>, vector<8x64xf32>, vector<8x64xf32>, vector<8x64xf32>, vector<8x64xf32> -> vector<8x512xf32>
    %c2 = arith.constant 2 : index
    %c0_49 = arith.constant 0 : index
    %c0_50 = arith.constant 0 : index
    %70 = vector.load %arg6[%c2, %c0_49, %c0_50] : memref<5x512x64xf32, #tpu.memory_space<vmem>>, vector<1x512x64xf32>
    %71 = vector.shape_cast %70 : vector<1x512x64xf32> to vector<512x64xf32>
    %cst_51 = arith.constant dense<0.000000e+00> : vector<8x64xf32>
    %72 = tpu.matmul %69, %71, %cst_51 {dimension_numbers = #tpu.dot_dimension_numbers<[1], [0], [0], [1], [0, 0, 1, 1], [], []>} : vector<8x512xf32>, vector<512x64xf32>, vector<8x64xf32> -> vector<8x64xf32>
    %73 = arith.addf %60, %72 : vector<8x64xf32>
    %c192 = arith.constant 192 : index
    %c0_52 = arith.constant 0 : index
    %74 = vector.load %arg9[%c192, %c0_52] : memref<320x64xf32, #tpu.memory_space<vmem>>, vector<8x64xf32>
    %c200 = arith.constant 200 : index
    %c0_53 = arith.constant 0 : index
    %75 = vector.load %arg9[%c200, %c0_53] : memref<320x64xf32, #tpu.memory_space<vmem>>, vector<8x64xf32>
    %c208 = arith.constant 208 : index
    %c0_54 = arith.constant 0 : index
    %76 = vector.load %arg9[%c208, %c0_54] : memref<320x64xf32, #tpu.memory_space<vmem>>, vector<8x64xf32>
    %c216 = arith.constant 216 : index
    %c0_55 = arith.constant 0 : index
    %77 = vector.load %arg9[%c216, %c0_55] : memref<320x64xf32, #tpu.memory_space<vmem>>, vector<8x64xf32>
    %c224 = arith.constant 224 : index
    %c0_56 = arith.constant 0 : index
    %78 = vector.load %arg9[%c224, %c0_56] : memref<320x64xf32, #tpu.memory_space<vmem>>, vector<8x64xf32>
    %c232 = arith.constant 232 : index
    %c0_57 = arith.constant 0 : index
    %79 = vector.load %arg9[%c232, %c0_57] : memref<320x64xf32, #tpu.memory_space<vmem>>, vector<8x64xf32>
    %c240 = arith.constant 240 : index
    %c0_58 = arith.constant 0 : index
    %80 = vector.load %arg9[%c240, %c0_58] : memref<320x64xf32, #tpu.memory_space<vmem>>, vector<8x64xf32>
    %c248 = arith.constant 248 : index
    %c0_59 = arith.constant 0 : index
    %81 = vector.load %arg9[%c248, %c0_59] : memref<320x64xf32, #tpu.memory_space<vmem>>, vector<8x64xf32>
    %82 = tpu.concatenate %74, %75, %76, %77, %78, %79, %80, %81 in 1 : vector<8x64xf32>, vector<8x64xf32>, vector<8x64xf32>, vector<8x64xf32>, vector<8x64xf32>, vector<8x64xf32>, vector<8x64xf32>, vector<8x64xf32> -> vector<8x512xf32>
    %c3 = arith.constant 3 : index
    %c0_60 = arith.constant 0 : index
    %c0_61 = arith.constant 0 : index
    %83 = vector.load %arg6[%c3, %c0_60, %c0_61] : memref<5x512x64xf32, #tpu.memory_space<vmem>>, vector<1x512x64xf32>
    %84 = vector.shape_cast %83 : vector<1x512x64xf32> to vector<512x64xf32>
    %cst_62 = arith.constant dense<0.000000e+00> : vector<8x64xf32>
    %85 = tpu.matmul %82, %84, %cst_62 {dimension_numbers = #tpu.dot_dimension_numbers<[1], [0], [0], [1], [0, 0, 1, 1], [], []>} : vector<8x512xf32>, vector<512x64xf32>, vector<8x64xf32> -> vector<8x64xf32>
    %86 = arith.addf %73, %85 : vector<8x64xf32>
    %c256 = arith.constant 256 : index
    %c0_63 = arith.constant 0 : index
    %87 = vector.load %arg9[%c256, %c0_63] : memref<320x64xf32, #tpu.memory_space<vmem>>, vector<8x64xf32>
    %c264 = arith.constant 264 : index
    %c0_64 = arith.constant 0 : index
    %88 = vector.load %arg9[%c264, %c0_64] : memref<320x64xf32, #tpu.memory_space<vmem>>, vector<8x64xf32>
    %c272 = arith.constant 272 : index
    %c0_65 = arith.constant 0 : index
    %89 = vector.load %arg9[%c272, %c0_65] : memref<320x64xf32, #tpu.memory_space<vmem>>, vector<8x64xf32>
    %c280 = arith.constant 280 : index
    %c0_66 = arith.constant 0 : index
    %90 = vector.load %arg9[%c280, %c0_66] : memref<320x64xf32, #tpu.memory_space<vmem>>, vector<8x64xf32>
    %c288 = arith.constant 288 : index
    %c0_67 = arith.constant 0 : index
    %91 = vector.load %arg9[%c288, %c0_67] : memref<320x64xf32, #tpu.memory_space<vmem>>, vector<8x64xf32>
    %c296 = arith.constant 296 : index
    %c0_68 = arith.constant 0 : index
    %92 = vector.load %arg9[%c296, %c0_68] : memref<320x64xf32, #tpu.memory_space<vmem>>, vector<8x64xf32>
    %c304 = arith.constant 304 : index
    %c0_69 = arith.constant 0 : index
    %93 = vector.load %arg9[%c304, %c0_69] : memref<320x64xf32, #tpu.memory_space<vmem>>, vector<8x64xf32>
    %c312 = arith.constant 312 : index
    %c0_70 = arith.constant 0 : index
    %94 = vector.load %arg9[%c312, %c0_70] : memref<320x64xf32, #tpu.memory_space<vmem>>, vector<8x64xf32>
    %95 = tpu.concatenate %87, %88, %89, %90, %91, %92, %93, %94 in 1 : vector<8x64xf32>, vector<8x64xf32>, vector<8x64xf32>, vector<8x64xf32>, vector<8x64xf32>, vector<8x64xf32>, vector<8x64xf32>, vector<8x64xf32> -> vector<8x512xf32>
    %c4 = arith.constant 4 : index
    %c0_71 = arith.constant 0 : index
    %c0_72 = arith.constant 0 : index
    %96 = vector.load %arg6[%c4, %c0_71, %c0_72] : memref<5x512x64xf32, #tpu.memory_space<vmem>>, vector<1x512x64xf32>
    %97 = vector.shape_cast %96 : vector<1x512x64xf32> to vector<512x64xf32>
    %cst_73 = arith.constant dense<0.000000e+00> : vector<8x64xf32>
    %98 = tpu.matmul %95, %97, %cst_73 {dimension_numbers = #tpu.dot_dimension_numbers<[1], [0], [0], [1], [0, 0, 1, 1], [], []>} : vector<8x512xf32>, vector<512x64xf32>, vector<8x64xf32> -> vector<8x64xf32>
    %99 = arith.addf %86, %98 : vector<8x64xf32>
    %c0_74 = arith.constant 0 : index
    %c0_75 = arith.constant 0 : index
    %100 = vector.load %arg7[%c0_74, %c0_75] : memref<3x64xf32, #tpu.memory_space<vmem>>, vector<3x64xf32>
    %101 = vector.extract_strided_slice %100 {offsets = [0, 0], sizes = [1, 64], strides = [1, 1]} : vector<3x64xf32> to vector<1x64xf32>
    %102 = vector.broadcast %101 : vector<1x64xf32> to vector<8x64xf32>
    %103 = arith.addf %99, %102 : vector<8x64xf32>
    %cst_76 = arith.constant 0.000000e+00 : f32
    %104 = vector.broadcast %cst_76 : f32 to vector<8x64xf32>
    %105 = arith.maximumf %103, %104 : vector<8x64xf32>
    %106 = vector.extract_strided_slice %100 {offsets = [1, 0], sizes = [1, 64], strides = [1, 1]} : vector<3x64xf32> to vector<1x64xf32>
    %107 = vector.broadcast %106 : vector<1x64xf32> to vector<8x64xf32>
    %108 = arith.mulf %105, %107 : vector<8x64xf32>
    %cst_77 = arith.constant dense<0.000000e+00> : vector<8xf32>
    %109 = vector.multi_reduction <add>, %108, %cst_77 [1] : vector<8x64xf32> to vector<8xf32>
    %110 = vector.shape_cast %109 : vector<8xf32> to vector<8x1xf32>
    %111 = vector.extract_strided_slice %100 {offsets = [2, 0], sizes = [1, 1], strides = [1, 1]} : vector<3x64xf32> to vector<1x1xf32>
    %112 = vector.broadcast %111 : vector<1x1xf32> to vector<8x1xf32>
    %113 = arith.addf %110, %112 : vector<8x1xf32>
    %c0_78 = arith.constant 0 : index
    %c0_79 = arith.constant 0 : index
    %114 = vector.load %arg8[%c0_78, %c0_79] : memref<8x1xf32, #tpu.memory_space<vmem>>, vector<8x1xf32>
    tpu.vector_store %arg8[%c0_78, %c0_79], %113 {strides = array<i32>} : memref<8x1xf32, #tpu.memory_space<vmem>>, vector<8x1xf32>,
    return
  }
  func.func @transform_0(%arg0: i32) -> (i32, i32) {
    %c0_i32 = arith.constant 0 : i32
    %c0_i32_0 = arith.constant 0 : i32
    %c0_i32_1 = arith.constant 0 : i32
    return %c0_i32, %c0_i32_0 : i32, i32
  }
  func.func @transform_1(%arg0: i32) -> (i32, i32) {
    %c0_i32 = arith.constant 0 : i32
    %c0_i32_0 = arith.constant 0 : i32
    return %arg0, %c0_i32 : i32, i32
  }
  func.func @transform_2(%arg0: i32) -> (i32, i32) {
    %c0_i32 = arith.constant 0 : i32
    %c0_i32_0 = arith.constant 0 : i32
    %c0_i32_1 = arith.constant 0 : i32
    return %c0_i32, %c0_i32_0 : i32, i32
  }
  func.func @transform_3(%arg0: i32) -> (i32, i32) {
    %c0_i32 = arith.constant 0 : i32
    %c0_i32_0 = arith.constant 0 : i32
    %c0_i32_1 = arith.constant 0 : i32
    return %c0_i32, %c0_i32_0 : i32, i32
  }
  func.func @transform_4(%arg0: i32) -> (i32, i32) {
    %c0_i32 = arith.constant 0 : i32
    %c0_i32_0 = arith.constant 0 : i32
    %c0_i32_1 = arith.constant 0 : i32
    return %c0_i32, %c0_i32_0 : i32, i32
  }
  func.func @transform_5(%arg0: i32) -> (i32, i32, i32) {
    %c0_i32 = arith.constant 0 : i32
    %c0_i32_0 = arith.constant 0 : i32
    %c0_i32_1 = arith.constant 0 : i32
    %c0_i32_2 = arith.constant 0 : i32
    return %c0_i32, %c0_i32_0, %c0_i32_1 : i32, i32, i32
  }
  func.func @transform_6(%arg0: i32) -> (i32, i32) {
    %c0_i32 = arith.constant 0 : i32
    %c0_i32_0 = arith.constant 0 : i32
    %c0_i32_1 = arith.constant 0 : i32
    return %c0_i32, %c0_i32_0 : i32, i32
  }
  func.func @transform_7(%arg0: i32) -> (i32, i32) {
    %c0_i32 = arith.constant 0 : i32
    %c0_i32_0 = arith.constant 0 : i32
    return %arg0, %c0_i32 : i32, i32
  }
}

</mosaic_0001>

<bundles_post_ra>
// kernel: cnn_forward.1
= control target key start
LH: loop header
LB: loop body
LE: loop exit
PB: predicated region body
PF: predicated region fallthrough
CT: control target
= control target key end

     0   :  { %v7414_v0 = vmov 1   ;;  %v4542_v30 = vmov 0   ;;  %s4543_s23 = smov 4   ;;  %vm1076_vm0 = vcmask 1043456   ;;  %s4544_s30 = smov 8   ;;  %vm869_vm1 = vcmask 31744   ;;  %s7406_s0 = inlined_call_operand.vmem [shape: f32[320,2], index: 0, kind: input, shape index: {}]   ;;  %s7407_s1 = inlined_call_operand.vmem [shape: f32[320,4], index: 1, kind: input, shape index: {}]   ;;  %s7408_s2 = inlined_call_operand.vmem [shape: f32[12,32], index: 2, kind: input, shape index: {}]   ;;  %s7409_s4 = inlined_call_operand.vmem [shape: f32[2,64], index: 4, kind: input, shape index: {}]   ;;  %s7410_s3 = inlined_call_operand.vmem [shape: f32[96,64], index: 3, kind: input, shape index: {}]   ;;  %s7411_s5 = inlined_call_operand.vmem [shape: f32[5,512,64], index: 5, kind: input, shape index: {}]   ;;  %s7412_s6 = inlined_call_operand.vmem [shape: f32[3,64], index: 6, kind: input, shape index: {}]   ;;  %s7413_s7 = inlined_call_operand.vmem [shape: f32[8,1], index: 7, kind: output, shape index: {}]  }
   0x1   :  { %4478 = vset.pattern.permute.xlu1 %v7414_v0  ;;  %4477 = vset.pattern.permute.xlu0 %v7414_v0  ;;  %v4592_v1 = vld [vmem:[%s7406_s0 + $0x10] sm:$0xff]  ;;  %v26_v2 = vld [vmem:[%s7406_s0] sm:$0xff]  ;;  %v4601_v3 = vld [vmem:[%s7406_s0 + $0x18] sm:$0xff]  ;;  %vm910_vm2 = vcmask 64512   ;;  %vm955_vm3 = vcmask 97280   ;;  %s4546_s29 = smov 64  }
   0x2   :  { %358 = vperm.xlu1 %4478, %v4592_v1   ;;  %350 = vperm.xlu0 %4477, %v26_v2   ;;  %v27_v4 = vld [vmem:[%s7406_s0 + $0x8] sm:$0xff]  ;;  %v4615_v6 = vld [vmem:[%s7406_s0 + $0x20] sm:$0xff]  ;;  %v4622_v7 = vld [vmem:[%s7406_s0 + $0x38] sm:$0xff]  ;;  %vm1797_vm4 = vcmask 261120   ;;  %vm1838_vm5 = vcmask 523264   ;;  %vm1883_vm6 = vcmask 785408  }
   0x3   :  { %v4610_v5 = vld [vmem:[%s7406_s0 + $0x28] sm:$0xff]  ;;  %v4627_v8 = vld [vmem:[%s7406_s0 + $0x30] sm:$0xff]  ;;  %v4639_v10 = vld [vmem:[%s7406_s0 + $0x40] sm:$0xff]  ;;  %vm3536_vm7 = vcmask 7168  }
   0x4   :  { %v4634_v9 = vld [vmem:[%s7406_s0 + $0x48] sm:$0xff]  ;;  %v4646_v11 = vld [vmem:[%s7406_s0 + $0x58] sm:$0xff]  ;;  %v4651_v12 = vld [vmem:[%s7406_s0 + $0x50] sm:$0xff] }
   0x5   :  { %v4658_v13 = vld [vmem:[%s7406_s0 + $0x68] sm:$0xff]  ;;  %v4663_v14 = vld [vmem:[%s7406_s0 + $0x60] sm:$0xff]  ;;  %v4670_v15 = vld [vmem:[%s7406_s0 + $0x78] sm:$0xff] }
   0x6   :  { %362 = vperm.xlu1 %4478, %v4601_v3   ;;  %354 = vperm.xlu0 %4477, %v27_v4   ;;  %v4675_v16 = vld [vmem:[%s7406_s0 + $0x70] sm:$0xff]  ;;  %v4682_v17 = vld [vmem:[%s7406_s0 + $0x88] sm:$0xff]  ;;  %v4687_v18 = vld [vmem:[%s7406_s0 + $0x80] sm:$0xff] }
   0x7   :  { %v4694_v19 = vld [vmem:[%s7406_s0 + $0x98] sm:$0xff]  ;;  %v4699_v20 = vld [vmem:[%s7406_s0 + $0x90] sm:$0xff]  ;;  %v4706_v21 = vld [vmem:[%s7406_s0 + $0xa8] sm:$0xff] }
   0x8   :  { %v4711_v22 = vld [vmem:[%s7406_s0 + $0xa0] sm:$0xff]  ;;  %v4718_v23 = vld [vmem:[%s7406_s0 + $0xb8] sm:$0xff]  ;;  %v4723_v24 = vld [vmem:[%s7406_s0 + $0xb0] sm:$0xff] }
   0x9   :  { %v4730_v25 = vld [vmem:[%s7406_s0 + $0xc8] sm:$0xff]  ;;  %v4735_v26 = vld [vmem:[%s7406_s0 + $0xc0] sm:$0xff]  ;;  %v4742_v27 = vld [vmem:[%s7406_s0 + $0xd8] sm:$0xff] }
   0xa   :  { %370 = vperm.xlu1 %4478, %v4610_v5   ;;  %366 = vperm.xlu0 %4477, %v4615_v6   ;;  %v4747_v28 = vld [vmem:[%s7406_s0 + $0xd0] sm:$0xff]  ;;  %v4754_v29 = vld [vmem:[%s7406_s0 + $0xe0] sm:$0xff]  ;;  %v4761_v31 = vld [vmem:[%s7406_s0 + $0xe8] sm:$0xff] }
   0xb   :  { %v4767_v32 = vld [vmem:[%s7406_s0 + $0xf0] sm:$0xff]  ;;  %v4774_v33 = vld [vmem:[%s7406_s0 + $0xf8] sm:$0xff]  ;;  %v4781_v34 = vld [vmem:[%s7406_s0 + $0x100] sm:$0xff] }
   0xc   :  { %v4786_v35 = vld [vmem:[%s7407_s1] sm:$0xff]  ;;  %v4794_v36 = vld [vmem:[%s7407_s1 + $0x10] sm:$0xff]  ;;  %v4800_v37 = vld [vmem:[%s7406_s0 + $0x108] sm:$0xff] }
   0xd   :  { %v4808_v38 = vld [vmem:[%s7406_s0 + $0x118] sm:$0xff]  ;;  %v4813_v39 = vld [vmem:[%s7407_s1 + $0x8] sm:$0xff]  ;;  %v4821_v40 = vld [vmem:[%s7407_s1 + $0x20] sm:$0xff] }
   0xe   :  { %378 = vperm.xlu1 %4478, %v4622_v7   ;;  %374 = vperm.xlu0 %4477, %v4627_v8   ;;  %v4830_v41 = vld [vmem:[%s7406_s0 + $0x128] sm:$0xff]  ;;  %v4835_v42 = vld [vmem:[%s7406_s0 + $0x110] sm:$0xff]  ;;  %v4852_v44 = vld [vmem:[%s7407_s1 + $0x18] sm:$0xff] }
   0xf   :  { %v4842_v43 = vld [vmem:[%s7407_s1 + $0x30] sm:$0xff]  ;;  %v4860_v45 = vld [vmem:[%s7406_s0 + $0x120] sm:$0xff]  ;;  %v4868_v46 = vld [vmem:[%s7407_s1 + $0x28] sm:$0xff] }
  0x10   :  { %v4876_v47 = vld [vmem:[%s7406_s0 + $0x130] sm:$0xff]  ;;  %v108_v48 = vld [vmem:[%s7408_s2 + $0x8] sm:$0xf]  ;;  %v107_v49 = vld [vmem:[%s7408_s2] sm:$0xff] }
  0x11   :  { %4323 = vmatprep.subr.msk.mxu0 %vm1076_vm0, %v108_v48  ;;  %v4913_v60 = vld [vmem:[%s7406_s0 + $0x138] sm:$0xff] }
  0x12   :  { %386 = vperm.xlu1 %4478, %v4634_v9   ;;  %382 = vperm.xlu0 %4477, %v4639_v10   ;;  %7514 = vst [vmem:[#allocation9_spill] sm:$0xff] %v4913_v60 }
  0x13   :  { %4324 = vmatpush3.msk.msra.mxu0 %vm1076_vm0, %v108_v48 }
  0x14   :  { %4325 = vmatprep.subr.mxu0 %v107_v49 }
  0x15   :  { %4326 = vmatpush3.msra.mxu0 %v107_v49  ;;  %v4968_v49 = vld [vmem:[%s7407_s1 + $0x48] sm:$0xff] }
  0x16   :  { %394 = vperm.xlu1 %4478, %v4646_v11   ;;  %390 = vperm.xlu0 %4477, %v4651_v12  }
  0x1a   :  { %402 = vperm.xlu1 %4478, %v4658_v13   ;;  %398 = vperm.xlu0 %4477, %v4663_v14  }
  0x1e   :  { %410 = vperm.xlu1 %4478, %v4670_v15   ;;  %406 = vperm.xlu0 %4477, %v4675_v16  }
  0x22   :  { %418 = vperm.xlu1 %4478, %v4682_v17   ;;  %414 = vperm.xlu0 %4477, %v4687_v18  }
  0x26   :  { %426 = vperm.xlu1 %4478, %v4694_v19   ;;  %422 = vperm.xlu0 %4477, %v4699_v20  }
  0x2a   :  { %434 = vperm.xlu1 %4478, %v4706_v21   ;;  %430 = vperm.xlu0 %4477, %v4711_v22  }
  0x2e   :  { %442 = vperm.xlu1 %4478, %v4718_v23   ;;  %438 = vperm.xlu0 %4477, %v4723_v24  }
  0x32   :  { %450 = vperm.xlu1 %4478, %v4730_v25   ;;  %446 = vperm.xlu0 %4477, %v4735_v26  }
  0x36   :  { %458 = vperm.xlu1 %4478, %v4742_v27   ;;  %454 = vperm.xlu0 %4477, %v4747_v28  }
  0x3a   :  { %4479 = vset.pattern.permute.xlu1 %v4542_v30  ;;  %462 = vperm.xlu0 %4477, %v4754_v29  }
  0x3b   :  { %111 = vperm.xlu1 %4479, %v26_v2  }
  0x3e   :  { %466 = vperm.xlu0 %4477, %v4761_v31  }
  0x3f   :  { %116 = vperm.xlu1 %4479, %v27_v4  }
  0x42   :  { %470 = vperm.xlu0 %4477, %v4767_v32  }
  0x43   :  { %121 = vperm.xlu1 %4479, %v4592_v1  }
  0x46   :  { %474 = vperm.xlu0 %4477, %v4774_v33  }
  0x47   :  { %126 = vperm.xlu1 %4479, %v4601_v3  }
  0x4a   :  { %478 = vperm.xlu0 %4477, %v4781_v34  }
  0x4b   :  { %589 = vrot.lane.b32.xlu1 %v4786_v35, %s4543_s23 }
  0x4c   :  { %4480 = vset.pattern.permute.xlu1 %v7414_v0 }
  0x4e   :  { %593 = vrot.lane.b32.xlu0 %v4794_v36, %s4543_s23 }
  0x4f   :  { %482 = vperm.xlu1 %4480, %v4800_v37  }
  0x52   :  { %490 = vperm.xlu0 %4477, %v4808_v38  }
  0x53   :  { %591 = vrot.lane.b32.xlu1 %v4813_v39, %s4543_s23 }
  0x54   :  { %4481 = vset.pattern.permute.xlu1 %v4542_v30 }
  0x56   :  { %597 = vrot.lane.b32.xlu0 %v4821_v40, %s4543_s23 }
  0x57   :  { %136 = vperm.xlu1 %4481, %v4610_v5  }
  0x5a   :  { %498 = vperm.xlu0 %4477, %v4830_v41  }
  0x5b   :  { %4482 = vset.pattern.permute.xlu1 %v7414_v0 }
  0x5c   :  { %486 = vperm.xlu1 %4482, %v4835_v42  }
  0x5e   :  { %601 = vrot.lane.b32.xlu0 %v4842_v43, %s4543_s23 }
  0x60   :  { %4483 = vset.pattern.permute.xlu1 %v4542_v30 }
  0x61   :  { %141 = vperm.xlu1 %4483, %v4627_v8   ;;  %v4941_v8 = vld [vmem:[%s7407_s1 + $0x38] sm:$0xff] }
  0x65   :  { %595 = vrot.lane.b32.xlu1 %v4852_v44, %s4543_s23 }
  0x66   :  { %4484 = vset.pattern.permute.xlu1 %v7414_v0 }
  0x69   :  { %494 = vperm.xlu1 %4484, %v4860_v45  }
  0x6d   :  { %4485 = vset.pattern.permute.xlu1 %v4542_v30 }
  0x6e   :  { %151 = vperm.xlu1 %4485, %v4639_v10  }
  0x72   :  { %599 = vrot.lane.b32.xlu1 %v4868_v46, %s4543_s23 }
  0x73   :  { %4486 = vset.pattern.permute.xlu1 %v7414_v0 }
  0x76   :  { %502 = vperm.xlu1 %4486, %v4876_v47  }
  0x7a   :  { %4487 = vset.pattern.permute.xlu1 %v4542_v30 }
  0x7d   :  { %v4886_v50 = vpop.permute.xlu1 %358  ;;  %v4888_v51 = vpop.permute.xlu0 %350 }
  0x7e   :  { %7508 = vst [vmem:[#allocation3_spill] sm:$0xff] %v4886_v50  ;;  %7509 = vst [vmem:[#allocation4_spill] sm:$0xff] %v4888_v51  ;;  %v511_v52 = vmul.f32 %v4886_v50, %v4852_v44  ;;  %v509_v53 = vmul.f32 %v4888_v51, %v4813_v39 }
  0x80   :  { %753 = vrot.lane.b32.xlu1 %v511_v52, %s4544_s30  ;;  %749 = vrot.lane.b32.xlu0 %v509_v53, %s4544_s30 }
  0x81   :  { %v4896_v54 = vpop.permute.xlu1 %362  ;;  %v4898_v55 = vpop.permute.xlu0 %354 }
  0x82   :  { %7510 = vst [vmem:[#allocation5_spill] sm:$0xff] %v4896_v54  ;;  %7511 = vst [vmem:[#allocation6_spill] sm:$0xff] %v4898_v55  ;;  %v512_v56 = vmul.f32 %v4896_v54, %v4821_v40  ;;  %v510_v57 = vmul.f32 %v4898_v55, %v4794_v36  ;;  %v5096_v55 = vld [vmem:[%s7407_s1 + $0x88] sm:$0xff] }
  0x83   :  { %7537 = vst [vmem:[#allocation32_spill] sm:$0xff] %v5096_v55 }
  0x84   :  { %755 = vrot.lane.b32.xlu1 %v512_v56, %s4544_s30  ;;  %751 = vrot.lane.b32.xlu0 %v510_v57, %s4544_s30  ;;  %v4981_v56 = vld [vmem:[%s7407_s1 + $0x50] sm:$0xff] }
  0x85   :  { %v4906_v58 = vpop.permute.xlu1 %370  ;;  %v4908_v59 = vpop.permute.xlu0 %366 }
  0x86   :  { %7512 = vst [vmem:[#allocation7_spill] sm:$0xff] %v4906_v58  ;;  %7513 = vst [vmem:[#allocation8_spill] sm:$0xff] %v4908_v59  ;;  %v513_v61 = vmul.f32 %v4908_v59, %v4868_v46  ;;  %v514_v1 = vmul.f32 %v4906_v58, %v4842_v43  ;;  %v5066_v59 = vld [vmem:[%s7407_s1 + $0x78] sm:$0xff] }
  0x87   :  { %7535 = vst [vmem:[#allocation30_spill] sm:$0xff] %v5066_v59 }
  0x88   :  { %506 = vperm.xlu0 %4477, %v4913_v60   ;;  %757 = vrot.lane.b32.xlu1 %v513_v61, %s4544_s30 }
  0x89   :  { %v4919_v62 = vpop.permute.xlu1 %378  ;;  %v4921_v63 = vpop.permute.xlu0 %374 }
  0x8a   :  { %7515 = vst [vmem:[#allocation10_spill] sm:$0xff] %v4919_v62  ;;  %7516 = vst [vmem:[#allocation11_spill] sm:$0xff] %v4921_v63 }
  0x8c   :  { %4488 = vset.pattern.permute.xlu0 %v4542_v30  ;;  %759 = vrot.lane.b32.xlu1 %v514_v1, %s4544_s30 }
  0x8d   :  { %v4927_v2 = vpop.permute.xlu1 %386  ;;  %131 = vperm.xlu0 %4488, %v4615_v6   ;;  %v4930_v3 = vpop.permute.xlu0 %382 }
  0x8e   :  { %7517 = vst [vmem:[#allocation12_spill] sm:$0xff] %v4927_v2  ;;  %7518 = vst [vmem:[#allocation13_spill] sm:$0xff] %v4930_v3 }
  0x90   :  { %161 = vperm.xlu1 %4487, %v4651_v12   ;;  %v515_v12 = vmul.f32 %v4921_v63, %v4941_v8 }
  0x91   :  { %v4933_v4 = vpop.permute.xlu1 %394  ;;  %146 = vperm.xlu0 %4488, %v4622_v7   ;;  %v4936_v5 = vpop.permute.xlu0 %390  ;;  %v4955_v7 = vld [vmem:[%s7407_s1 + $0x40] sm:$0xff] }
  0x92   :  { %7519 = vst [vmem:[#allocation14_spill] sm:$0xff] %v4933_v4  ;;  %7520 = vst [vmem:[#allocation15_spill] sm:$0xff] %v4936_v5 }
  0x94   :  { %603 = vrot.lane.b32.xlu1 %v4941_v8, %s4543_s23 }
  0x95   :  { %v4945_v10 = vpop.permute.xlu1 %402  ;;  %156 = vperm.xlu0 %4488, %v4634_v9   ;;  %v4948_v6 = vpop.permute.xlu0 %398  ;;  %v516_v9 = vmul.f32 %v4919_v62, %v4955_v7  ;;  %v5034_v62 = vld [vmem:[%s7407_s1 + $0x68] sm:$0xff] }
  0x96   :  { %7521 = vst [vmem:[#allocation16_spill] sm:$0xff] %v4945_v10  ;;  %7522 = vst [vmem:[#allocation17_spill] sm:$0xff] %v4948_v6 }
  0x98   :  { %761 = vrot.lane.b32.xlu1 %v515_v12, %s4544_s30 }
  0x99   :  { %v4958_v30 = vpop.permute.xlu1 %410  ;;  %166 = vperm.xlu0 %4488, %v4646_v11   ;;  %v4961_v48 = vpop.permute.xlu0 %406  ;;  %v517_v11 = vmul.f32 %v4930_v3, %v4968_v49 }
  0x9a   :  { %7523 = vst [vmem:[#allocation18_spill] sm:$0xff] %v4958_v30  ;;  %7524 = vst [vmem:[#allocation19_spill] sm:$0xff] %v4961_v48 }
  0x9c   :  { %763 = vrot.lane.b32.xlu1 %v516_v9, %s4544_s30  ;;  %v5002_v9 = vld [vmem:[%s7407_s1 + $0x58] sm:$0xff] }
  0x9d   :  { %v4971_v52 = vpop.permute.xlu1 %418  ;;  %171 = vperm.xlu0 %4488, %v4663_v14   ;;  %v4974_v53 = vpop.permute.xlu0 %414  ;;  %v518_v14 = vmul.f32 %v4927_v2, %v4981_v56  ;;  %v519_v2 = vmul.f32 %v4936_v5, %v5002_v9 }
  0x9e   :  { %7525 = vst [vmem:[#allocation20_spill] sm:$0xff] %v4971_v52  ;;  %7526 = vst [vmem:[#allocation21_spill] sm:$0xff] %v4974_v53 }
  0xa0   :  { %605 = vrot.lane.b32.xlu1 %v4955_v7, %s4543_s23 }
  0xa1   :  { %v4985_v57 = vpop.permute.xlu1 %426  ;;  %765 = vrot.lane.b32.xlu0 %v517_v11, %s4544_s30  ;;  %v4988_v61 = vpop.permute.xlu0 %422 }
  0xa2   :  { %7527 = vst [vmem:[#allocation22_spill] sm:$0xff] %v4985_v57  ;;  %7528 = vst [vmem:[#allocation23_spill] sm:$0xff] %v4988_v61 }
  0xa4   :  { %607 = vrot.lane.b32.xlu1 %v4968_v49, %s4543_s23 }
  0xa5   :  { %v4994_v1 = vpop.permute.xlu1 %434  ;;  %767 = vrot.lane.b32.xlu0 %v518_v14, %s4544_s30  ;;  %v4997_v12 = vpop.permute.xlu0 %430  ;;  %v5015_v14 = vld [vmem:[%s7407_s1 + $0x60] sm:$0xff] }
  0xa6   :  { %7529 = vst [vmem:[#allocation24_spill] sm:$0xff] %v4994_v1  ;;  %7530 = vst [vmem:[#allocation25_spill] sm:$0xff] %v4997_v12 }
  0xa8   :  { %176 = vperm.xlu1 %4487, %v4658_v13  }
  0xa9   :  { %v5005_v11 = vpop.permute.xlu1 %442  ;;  %181 = vperm.xlu0 %4488, %v4675_v16   ;;  %v5008_v0 = vpop.permute.xlu0 %438  ;;  %v520_v16 = vmul.f32 %v4933_v4, %v5015_v14  ;;  %v521_v4 = vmul.f32 %v4948_v6, %v5034_v62 }
  0xaa   :  { %7531 = vst [vmem:[#allocation26_spill] sm:$0xff] %v5008_v0 }
  0xac   :  { %609 = vrot.lane.b32.xlu1 %v4981_v56, %s4543_s23 }
  0xad   :  { %v5019_v3 = vpop.permute.xlu1 %450  ;;  %769 = vrot.lane.b32.xlu0 %v519_v2, %s4544_s30  ;;  %v5022_v13 = vpop.permute.xlu0 %446 }
  0xb0   :  { %611 = vrot.lane.b32.xlu1 %v5002_v9, %s4543_s23 }
  0xb1   :  { %v5028_v5 = vpop.permute.xlu1 %458  ;;  %771 = vrot.lane.b32.xlu0 %v520_v16, %s4544_s30  ;;  %v5036_v63 = vpop.permute.xlu0 %454  ;;  %v5047_v16 = vld [vmem:[%s7407_s1 + $0x70] sm:$0xff] }
  0xb2   :  { %7533 = vst [vmem:[#allocation28_spill] sm:$0xff] %v5047_v16 }
  0xb4   :  { %186 = vperm.xlu1 %4487, %v4670_v15  }
  0xb5   :  { %191 = vperm.xlu0 %4488, %v4687_v18   ;;  %v5052_v58 = vpop.permute.xlu0 %462  ;;  %v522_v18 = vmul.f32 %v4945_v10, %v5047_v16  ;;  %v523_v10 = vmul.f32 %v4961_v48, %v5066_v59 }
  0xb6   :  { %v5040_v2 = vpop.permute.xlu1 %111 }
  0xb7   :  { %7532 = vst [vmem:[#allocation27_spill] sm:$0xff] %v5040_v2 }
  0xb8   :  { %613 = vrot.lane.b32.xlu1 %v5015_v14, %s4543_s23 }
  0xb9   :  { %773 = vrot.lane.b32.xlu0 %v521_v4, %s4544_s30  ;;  %v5068_v4 = vpop.permute.xlu0 %466 }
  0xba   :  { %v5054_v15 = vpop.permute.xlu1 %116 }
  0xbb   :  { %7534 = vst [vmem:[#allocation29_spill] sm:$0xff] %v5054_v15 }
  0xbc   :  { %615 = vrot.lane.b32.xlu1 %v5034_v62, %s4543_s23 }
  0xbd   :  { %775 = vrot.lane.b32.xlu0 %v522_v18, %s4544_s30  ;;  %v5079_v18 = vld [vmem:[%s7407_s1 + $0x80] sm:$0xff]  ;;  %v5084_v50 = vpop.permute.xlu0 %470 }
  0xbe   :  { %v5061_v6 = vpop.permute.xlu1 %121  ;;  %7536 = vst [vmem:[#allocation31_spill] sm:$0xff] %v5079_v18 }
  0xc0   :  { %196 = vperm.xlu1 %4487, %v4682_v17  }
  0xc1   :  { %201 = vperm.xlu0 %4488, %v4699_v20   ;;  %v524_v20 = vmul.f32 %v4958_v30, %v5079_v18  ;;  %v5098_v51 = vpop.permute.xlu0 %474  ;;  %v525_v30 = vmul.f32 %v4974_v53, %v5096_v55  ;;  %v5126_v53 = vld [vmem:[%s7407_s1 + $0x98] sm:$0xff] }
  0xc2   :  { %v5072_v54 = vpop.permute.xlu1 %126  ;;  %7539 = vst [vmem:[#allocation34_spill] sm:$0xff] %v5126_v53 }
  0xc4   :  { %617 = vrot.lane.b32.xlu1 %v5047_v16, %s4543_s23 }
  0xc5   :  { %777 = vrot.lane.b32.xlu0 %v523_v10, %s4544_s30 }
  0xc6   :  { %v590_v17 = vpop.permute.xlu1 %589 }
  0xc8   :  { %619 = vrot.lane.b32.xlu1 %v5066_v59, %s4543_s23  ;;  %v5112_v59 = vpop.permute.xlu0 %478 }
  0xc9   :  { %779 = vrot.lane.b32.xlu0 %v524_v20, %s4544_s30  ;;  %v5107_v20 = vld [vmem:[%s7407_s1 + $0x90] sm:$0xff] }
  0xca   :  { %v5091_v48 = vpop.permute.xlu1 %482  ;;  %7538 = vst [vmem:[#allocation33_spill] sm:$0xff] %v5107_v20 }
  0xcc   :  { %206 = vperm.xlu1 %4487, %v4694_v19   ;;  %v526_v19 = vmul.f32 %v4971_v52, %v5107_v20  ;;  %v527_v52 = vmul.f32 %v4988_v61, %v5126_v53  ;;  %v5152_v61 = vld [vmem:[%s7407_s1 + $0xa8] sm:$0xff] }
  0xcd   :  { %211 = vperm.xlu0 %4488, %v4711_v22   ;;  %7542 = vst [vmem:[#allocation37_spill] sm:$0xff] %v5152_v61 }
  0xce   :  { %v592_v10 = vpop.permute.xlu1 %591 }
  0xd0   :  { %621 = vrot.lane.b32.xlu1 %v5079_v18, %s4543_s23 }
  0xd1   :  { %781 = vrot.lane.b32.xlu0 %v525_v30, %s4544_s30  ;;  %v594_v30 = vpop.permute.xlu0 %593 }
  0xd2   :  { %v5114_v60 = vpop.permute.xlu1 %136 }
  0xd4   :  { %623 = vrot.lane.b32.xlu1 %v5096_v55, %s4543_s23  ;;  %v5135_v55 = vld [vmem:[%s7407_s1 + $0xa0] sm:$0xff] }
  0xd5   :  { %783 = vrot.lane.b32.xlu0 %v526_v19, %s4544_s30  ;;  %7540 = vst [vmem:[#allocation35_spill] sm:$0xff] %v5135_v55  ;;  %v5142_v18 = vpop.permute.xlu0 %490 }
  0xd6   :  { %7541 = vst [vmem:[#allocation36_spill] sm:$0xff] %v5142_v18 }
  0xd7   :  { %v5121_v22 = vpop.permute.xlu1 %486 }
  0xd8   :  { %216 = vperm.xlu1 %4487, %v4706_v21   ;;  %v528_v21 = vmul.f32 %v4985_v57, %v5135_v55  ;;  %v529_v57 = vmul.f32 %v4997_v12, %v5152_v61  ;;  %v5181_v12 = vld [vmem:[%s7407_s1 + $0x138] sm:$0xff] }
  0xd9   :  { %221 = vperm.xlu0 %4488, %v4723_v24   ;;  %v5154_v16 = vpop.permute.xlu0 %597 }
  0xdc   :  { %v5137_v19 = vpop.permute.xlu1 %141  ;;  %625 = vrot.lane.b32.xlu1 %v5107_v20, %s4543_s23 }
  0xdd   :  { %785 = vrot.lane.b32.xlu0 %v527_v52, %s4544_s30 }
  0xe0   :  { %v596_v24 = vpop.permute.xlu1 %595  ;;  %627 = vrot.lane.b32.xlu1 %v5126_v53, %s4543_s23 }
  0xe1   :  { %787 = vrot.lane.b32.xlu0 %v528_v21, %s4544_s30  ;;  %v5165_v21 = vld [vmem:[%s7407_s1 + $0xb0] sm:$0xff] }
  0xe2   :  { %7544 = vst [vmem:[#allocation39_spill] sm:$0xff] %v5165_v21 }
  0xe4   :  { %226 = vperm.xlu1 %4487, %v4718_v23   ;;  %v5157_v52 = vpop.permute.xlu1 %494  ;;  %v5172_v23 = vpop.permute.xlu0 %498 }
  0xe5   :  { %7543 = vst [vmem:[#allocation38_spill] sm:$0xff] %v5157_v52  ;;  %231 = vperm.xlu0 %4488, %v4735_v26   ;;  %7545 = vst [vmem:[#allocation40_spill] sm:$0xff] %v5172_v23  ;;  %v530_v26 = vmul.f32 %v4994_v1, %v5165_v21  ;;  %v309_v1 = vmul.f32 %v5040_v2, %v5181_v12  ;;  %v5204_v2 = vld [vmem:[%s7407_s1 + $0xc0] sm:$0xff] }
  0xe8   :  { %629 = vrot.lane.b32.xlu1 %v5135_v55, %s4543_s23  ;;  %v5184_v55 = vpop.permute.xlu0 %601 }
  0xe9   :  { %v5169_v53 = vpop.permute.xlu1 %151  ;;  %789 = vrot.lane.b32.xlu0 %v529_v57, %s4544_s30  ;;  %v5189_v57 = vld [vmem:[%s7407_s1 + $0xb8] sm:$0xff] }
  0xea   :  { %v531_v23 = vmul.f32 %v5008_v0, %v5189_v57 }
  0xec   :  { %631 = vrot.lane.b32.xlu1 %v5152_v61, %s4543_s23 }
  0xed   :  { %v600_v20 = vpop.permute.xlu1 %599  ;;  %791 = vrot.lane.b32.xlu0 %v530_v26, %s4544_s30  ;;  %v870_v26 = vsel %vm869_vm1, %v309_v1, %v590_v17 }
  0xf0   :  { %236 = vperm.xlu1 %4487, %v4730_v25   ;;  %v310_v25 = vmul.f32 %v5054_v15, %v4786_v35  ;;  %v312_v15 = vmul.f32 %v5072_v54, %v4794_v36 }
  0xf1   :  { %v5194_v61 = vpop.permute.xlu1 %502  ;;  %241 = vperm.xlu0 %4488, %v4747_v28   ;;  %v311_v28 = vmul.f32 %v5061_v6, %v4813_v39 }
  0xf2   :  { %v750_v52 = vpop.permute.xlu0 %749  ;;  %v871_v17 = vsel %vm869_vm1, %v310_v25, %v592_v10  ;;  %v873_v39 = vsel %vm869_vm1, %v312_v15, %v596_v24  ;;  %v5242_v15 = vld [vmem:[%s7407_s1 + $0xd0] sm:$0xff] }
  0xf3   :  { %v911_v18 = vsel %vm910_vm2, %v870_v26, %v750_v52  ;;  %v532_v26 = vmul.f32 %v5005_v11, %v5204_v2  ;;  %v872_v0 = vsel %vm869_vm1, %v311_v28, %v594_v30  ;;  %v5232_v30 = vld [vmem:[%s7407_s1 + $0xc8] sm:$0xff] }
  0xf4   :  { %633 = vrot.lane.b32.xlu1 %v5165_v21, %s4543_s23  ;;  %4327 = vmatprep.mubr.msk.f32.mxu0 %vm955_vm3, %v911_v18 }
  0xf5   :  { %v754_v1 = vpop.permute.xlu1 %753  ;;  %793 = vrot.lane.b32.xlu0 %v531_v23, %s4544_s30  ;;  %v5257_v23 = vld [vmem:[%s7407_s1 + $0xd8] sm:$0xff] }
  0xf6   :  { %v752_v52 = vpop.permute.xlu0 %751  ;;  %v913_v18 = vsel %vm910_vm2, %v872_v0, %v754_v1  ;;  %v533_v0 = vmul.f32 %v5022_v13, %v5232_v30  ;;  %v314_v1 = vmul.f32 %v5114_v60, %v4821_v40 }
  0xf7   :  { %v912_v21 = vsel %vm910_vm2, %v871_v17, %v752_v52  ;;  %v535_v17 = vmul.f32 %v5036_v63, %v5257_v23 }
  0xf8   :  { %635 = vrot.lane.b32.xlu1 %v5189_v57, %s4543_s23  ;;  %4328 = vmatmul.mubr.msk.f32.vlgmr.msra.gmra.mxu0 %vm955_vm3, %v912_v21 }
  0xf9   :  { %v756_v10 = vpop.permute.xlu1 %755  ;;  %795 = vrot.lane.b32.xlu0 %v532_v26, %s4544_s30  ;;  %4330 = vmatprep.mubr.msk.f32.mxu0 %vm955_vm3, %v913_v18 }
  0xfa   :  { %v914_v36 = vsel %vm910_vm2, %v873_v39, %v756_v10 }
  0xfc   :  { %246 = vperm.xlu1 %4487, %v4742_v27   ;;  %4331 = vmatmul.mubr.msk.f32.gmra.mxu0 %vm955_vm3, %v914_v36  ;;  %v534_v27 = vmul.f32 %v5019_v3, %v5242_v15 }
  0xfd   :  { %251 = vperm.xlu0 %4488, %v4754_v29   ;;  %v758_v24 = vpop.permute.xlu1 %757 }
 0x100   :  { %637 = vrot.lane.b32.xlu1 %v5204_v2, %s4543_s23 }
 0x101   :  { %797 = vrot.lane.b32.xlu0 %v533_v0, %s4544_s30  ;;  %v760_v29 = vpop.permute.xlu1 %759 }
 0x103   :  { %v5249_v21 = vpop.permute.xlu0 %506 }
 0x104   :  { %639 = vrot.lane.b32.xlu1 %v5232_v30, %s4543_s23 }
 0x105   :  { %799 = vrot.lane.b32.xlu0 %v534_v27, %s4544_s30  ;;  %v5304_v27 = vld [vmem:[%s7407_s1 + $0xe8] sm:$0xff] }
 0x108   :  { %256 = vperm.xlu1 %4487, %v4761_v31   ;;  %v5260_v25 = vpop.permute.xlu0 %131  ;;  %v5276_v31 = vld [vmem:[%s7407_s1 + $0xe0] sm:$0xff] }
 0x109   :  { %v313_v28 = vmul.f32 %v5260_v25, %v4852_v44  ;;  %261 = vperm.xlu0 %4488, %v4767_v32   ;;  %v875_v44 = vsel %vm869_vm1, %v314_v1, %v600_v20  ;;  %v315_v20 = vmul.f32 %v5137_v19, %v4868_v46  ;;  %v5318_v1 = vld [vmem:[%s7407_s1 + $0xf0] sm:$0xff] }
 0x10a   :  { %v916_v18 = vsel %vm910_vm2, %v875_v44, %v760_v29 }
 0x10b   :  { %v5269_v52 = vpop.permute.xlu1 %161  ;;  %v874_v26 = vsel %vm869_vm1, %v313_v28, %v5154_v16  ;;  %v536_v16 = vmul.f32 %v5028_v5, %v5276_v31  ;;  %v876_v36 = vsel %vm869_vm1, %v315_v20, %v5184_v55  ;;  %v537_v55 = vmul.f32 %v5052_v58, %v5304_v27 }
 0x10c   :  { %641 = vrot.lane.b32.xlu1 %v5242_v15, %s4543_s23  ;;  %v5281_v32 = vpop.permute.xlu0 %146  ;;  %v915_v40 = vsel %vm910_vm2, %v874_v26, %v758_v24  ;;  %v538_v26 = vmul.f32 %v5068_v4, %v5318_v1 }
 0x10d   :  { %801 = vrot.lane.b32.xlu0 %v535_v17, %s4544_s30  ;;  %4333 = vmatprep.mubr.msk.f32.mxu0 %vm955_vm3, %v915_v40  ;;  %v316_v0 = vmul.f32 %v5281_v32, %v4842_v43 }
 0x10e   :  { %4334 = vmatmul.mubr.msk.f32.gmra.mxu0 %vm955_vm3, %v916_v18 }
 0x10f   :  { %v604_v39 = vpop.permute.xlu1 %603 }
 0x110   :  { %643 = vrot.lane.b32.xlu1 %v5257_v23, %s4543_s23  ;;  %v5294_v10 = vpop.permute.xlu0 %156  ;;  %v877_v43 = vsel %vm869_vm1, %v316_v0, %v604_v39  ;;  %v5342_v39 = vld [vmem:[%s7407_s1 + $0xf8] sm:$0xff] }
 0x111   :  { %803 = vrot.lane.b32.xlu0 %v536_v16, %s4544_s30  ;;  %v318_v20 = vmul.f32 %v5294_v10, %v4955_v7  ;;  %v539_v7 = vmul.f32 %v5084_v50, %v5342_v39 }
 0x113   :  { %v762_v24 = vpop.permute.xlu1 %761 }
 0x114   :  { %v917_v46 = vsel %vm910_vm2, %v876_v36, %v762_v24  ;;  %266 = vperm.xlu1 %4487, %v4774_v33   ;;  %v5308_v29 = vpop.permute.xlu0 %166 }
 0x115   :  { %271 = vperm.xlu0 %4488, %v4781_v34   ;;  %4336 = vmatprep.mubr.msk.f32.mxu0 %vm955_vm3, %v917_v46  ;;  %v317_v34 = vmul.f32 %v5169_v53, %v4941_v8 }
 0x117   :  { %v764_v28 = vpop.permute.xlu1 %763 }
 0x118   :  { %v918_v17 = vsel %vm910_vm2, %v877_v43, %v764_v28  ;;  %645 = vrot.lane.b32.xlu1 %v5276_v31, %s4543_s23  ;;  %v5323_v33 = vpop.permute.xlu0 %171 }
 0x119   :  { %805 = vrot.lane.b32.xlu0 %v537_v55, %s4544_s30  ;;  %4337 = vmatmul.mubr.msk.f32.gmra.mxu0 %vm955_vm3, %v918_v17  ;;  %v5356_v55 = vld [vmem:[%s7407_s1 + $0x100] sm:$0xff] }
 0x11a   :  { %v540_v43 = vmul.f32 %v5098_v51, %v5356_v55 }
 0x11b   :  { %v606_v44 = vpop.permute.xlu1 %605 }
 0x11c   :  { %v878_v40 = vsel %vm869_vm1, %v317_v34, %v606_v44  ;;  %647 = vrot.lane.b32.xlu1 %v5304_v27, %s4543_s23  ;;  %v766_v18 = vpop.permute.xlu0 %765  ;;  %v320_v44 = vmul.f32 %v5308_v29, %v4981_v56 }
 0x11d   :  { %v919_v16 = vsel %vm910_vm2, %v878_v40, %v766_v18  ;;  %807 = vrot.lane.b32.xlu0 %v538_v26, %s4544_s30  ;;  %v5378_v40 = vld [vmem:[%s7407_s1 + $0x108] sm:$0xff] }
 0x11e   :  { %4339 = vmatprep.mubr.msk.f32.mxu0 %vm955_vm3, %v919_v16  ;;  %v541_v56 = vmul.f32 %v5112_v59, %v5378_v40 }
 0x11f   :  { %v608_v8 = vpop.permute.xlu1 %607 }
 0x120   :  { %v879_v36 = vsel %vm869_vm1, %v318_v20, %v608_v8  ;;  %276 = vperm.xlu1 %4487, %v4800_v37   ;;  %v768_v0 = vpop.permute.xlu0 %767 }
 0x121   :  { %v920_v24 = vsel %vm910_vm2, %v879_v36, %v768_v0  ;;  %281 = vperm.xlu0 %4488, %v4835_v42   ;;  %v319_v42 = vmul.f32 %v5269_v52, %v4968_v49  ;;  %v5392_v36 = vld [vmem:[%s7407_s1 + $0x110] sm:$0xff] }
 0x122   :  { %4340 = vmatmul.mubr.msk.f32.gmra.mxu0 %vm955_vm3, %v920_v24  ;;  %v542_v0 = vmul.f32 %v5091_v48, %v5392_v36 }
 0x123   :  { %v5351_v46 = vpop.permute.xlu1 %176 }
 0x124   :  { %7546 = vst [vmem:[#allocation41_spill] sm:$0xff] %v5351_v46  ;;  %649 = vrot.lane.b32.xlu1 %v5318_v1, %s4543_s23  ;;  %v5360_v37 = vpop.permute.xlu0 %181 }
 0x125   :  { %7547 = vst [vmem:[#allocation42_spill] sm:$0xff] %v5360_v37  ;;  %809 = vrot.lane.b32.xlu0 %v539_v7, %s4544_s30 }
 0x127   :  { %v610_v28 = vpop.permute.xlu1 %609 }
 0x128   :  { %v880_v17 = vsel %vm869_vm1, %v319_v42, %v610_v28  ;;  %651 = vrot.lane.b32.xlu1 %v5342_v39, %s4543_s23  ;;  %v770_v34 = vpop.permute.xlu0 %769  ;;  %v322_v28 = vmul.f32 %v5351_v46, %v5015_v14 }
 0x129   :  { %v921_v26 = vsel %vm910_vm2, %v880_v17, %v770_v34  ;;  %811 = vrot.lane.b32.xlu0 %v540_v43, %s4544_s30  ;;  %v5414_v17 = vld [vmem:[%s7407_s1 + $0x118] sm:$0xff] }
 0x12a   :  { %4342 = vmatprep.mubr.msk.f32.mxu0 %vm955_vm3, %v921_v26  ;;  %v543_v14 = vmul.f32 %v5121_v22, %v5414_v17 }
 0x12b   :  { %v612_v49 = vpop.permute.xlu1 %611 }
 0x12c   :  { %v881_v18 = vsel %vm869_vm1, %v320_v44, %v612_v49  ;;  %286 = vperm.xlu1 %4487, %v4808_v38   ;;  %v772_v16 = vpop.permute.xlu0 %771 }
 0x12d   :  { %v922_v20 = vsel %vm910_vm2, %v881_v18, %v772_v16  ;;  %291 = vperm.xlu0 %4488, %v4860_v45   ;;  %v321_v45 = vmul.f32 %v5323_v33, %v5002_v9  ;;  %v5428_v18 = vld [vmem:[%s7407_s1 + $0x120] sm:$0xff]  ;;  %v7552_v16 = vmov 1  }
 0x12e   :  { %4343 = vmatmul.mubr.msk.f32.gmra.mxu0 %vm955_vm3, %v922_v20  ;;  %v7553_v20 = vld [vmem:[#allocation36_spill] sm:$0xff] }
 0x12f   :  { %v5387_v8 = vpop.permute.xlu1 %186 }
 0x130   :  { %7548 = vst [vmem:[#allocation43_spill] sm:$0xff] %v5387_v8  ;;  %653 = vrot.lane.b32.xlu1 %v5356_v55, %s4543_s23  ;;  %v5396_v38 = vpop.permute.xlu0 %191 }
 0x131   :  { %7549 = vst [vmem:[#allocation44_spill] sm:$0xff] %v5396_v38  ;;  %813 = vrot.lane.b32.xlu0 %v541_v56, %s4544_s30  ;;  %v544_v56 = vmul.f32 %v7553_v20, %v5428_v18 }
 0x133   :  { %v614_v24 = vpop.permute.xlu1 %613 }
 0x134   :  { %v882_v7 = vsel %vm869_vm1, %v321_v45, %v614_v24  ;;  %655 = vrot.lane.b32.xlu1 %v5378_v40, %s4543_s23  ;;  %v774_v42 = vpop.permute.xlu0 %773 }
 0x135   :  { %v923_v43 = vsel %vm910_vm2, %v882_v7, %v774_v42  ;;  %815 = vrot.lane.b32.xlu0 %v542_v0, %s4544_s30  ;;  %v7554_v42 = vld [vmem:[#allocation28_spill] sm:$0xff] }
 0x136   :  { %4345 = vmatprep.mubr.msk.f32.mxu0 %vm955_vm3, %v923_v43  ;;  %v324_v43 = vmul.f32 %v5387_v8, %v7554_v42 }
 0x137   :  { %v616_v9 = vpop.permute.xlu1 %615 }
 0x138   :  { %v883_v34 = vsel %vm869_vm1, %v322_v28, %v616_v9  ;;  %296 = vperm.xlu1 %4487, %v4830_v41   ;;  %v776_v26 = vpop.permute.xlu0 %775  ;;  %v5451_v28 = vld [vmem:[%s7407_s1 + $0x130] sm:$0xff]  ;;  %v5456_v9 = vld [vmem:[%s7407_s1 + $0x128] sm:$0xff] }
 0x139   :  { %v924_v44 = vsel %vm910_vm2, %v883_v34, %v776_v26  ;;  %301 = vperm.xlu0 %4488, %v4876_v47   ;;  %v323_v47 = vmul.f32 %v5360_v37, %v5034_v62  ;;  %v7555_v26 = vld [vmem:[#allocation9_spill] sm:$0xff] }
 0x13a   :  { %4346 = vmatmul.mubr.msk.f32.gmra.mxu0 %vm955_vm3, %v924_v44 }
 0x13b   :  { %v5423_v49 = vpop.permute.xlu1 %196 }
 0x13c   :  { %7550 = vst [vmem:[#allocation45_spill] sm:$0xff] %v5423_v49  ;;  %657 = vrot.lane.b32.xlu1 %v5392_v36, %s4543_s23  ;;  %v5432_v41 = vpop.permute.xlu0 %201 }
 0x13d   :  { %7551 = vst [vmem:[#allocation46_spill] sm:$0xff] %v5432_v41  ;;  %817 = vrot.lane.b32.xlu0 %v543_v14, %s4544_s30 }
 0x13e   :  { %4539 = vset.pattern.permute.xlu0 %v7552_v16 }
 0x13f   :  { %v618_v45 = vpop.permute.xlu1 %617 }
 0x140   :  { %v884_v0 = vsel %vm869_vm1, %v323_v47, %v618_v45  ;;  %659 = vrot.lane.b32.xlu1 %v5414_v17, %s4543_s23  ;;  %v778_v24 = vpop.permute.xlu0 %777  ;;  %v7556_v47 = vld [vmem:[#allocation40_spill] sm:$0xff] }
 0x141   :  { %v925_v7 = vsel %vm910_vm2, %v884_v0, %v778_v24  ;;  %819 = vrot.lane.b32.xlu0 %v544_v56, %s4544_s30  ;;  %v546_v16 = vmul.f32 %v7556_v47, %v5451_v28  ;;  %v7559_v0 = vld [vmem:[#allocation38_spill] sm:$0xff] }
 0x142   :  { %4348 = vmatprep.mubr.msk.f32.mxu0 %vm955_vm3, %v925_v7  ;;  %v545_v24 = vmul.f32 %v7559_v0, %v5456_v9  ;;  %v7560_v7 = vld [vmem:[#allocation30_spill] sm:$0xff] }
 0x143   :  { %v620_v62 = vpop.permute.xlu1 %619  ;;  %v325_v42 = vmul.f32 %v5396_v38, %v7560_v7 }
 0x144   :  { %v885_v34 = vsel %vm869_vm1, %v324_v43, %v620_v62  ;;  %306 = vperm.xlu1 %4487, %v7555_v26   ;;  %v780_v44 = vpop.permute.xlu0 %779 }
 0x145   :  { %v926_v14 = vsel %vm910_vm2, %v885_v34, %v780_v44  ;;  %663 = vrot.lane.b32.xlu0 %v5456_v9, %s4543_s23  ;;  %v7561_v44 = vld [vmem:[#allocation31_spill] sm:$0xff] }
 0x146   :  { %4349 = vmatmul.mubr.msk.f32.gmra.mxu0 %vm955_vm3, %v926_v14  ;;  %v326_v14 = vmul.f32 %v5423_v49, %v7561_v44 }
 0x147   :  { %v5466_v56 = vpop.permute.xlu1 %206 }
 0x148   :  { %7557 = vst [vmem:[#allocation36_spill] sm:$0xff] %v5466_v56  ;;  %661 = vrot.lane.b32.xlu1 %v5428_v18, %s4543_s23  ;;  %v5470_v45 = vpop.permute.xlu0 %211 }
 0x149   :  { %7558 = vst [vmem:[#allocation28_spill] sm:$0xff] %v5470_v45  ;;  %823 = vrot.lane.b32.xlu0 %v546_v16, %s4544_s30  ;;  %v548_v16 = vmul.f32 %v5249_v21, %v4786_v35 }
 0x14b   :  { %v622_v43 = vpop.permute.xlu1 %621 }
 0x14c   :  { %v886_v62 = vsel %vm869_vm1, %v325_v42, %v622_v43  ;;  %821 = vrot.lane.b32.xlu1 %v545_v24, %s4544_s30  ;;  %v782_v34 = vpop.permute.xlu0 %781  ;;  %v547_v43 = vmul.f32 %v5194_v61, %v5181_v12 }
 0x14d   :  { %v927_v26 = vsel %vm910_vm2, %v886_v62, %v782_v34  ;;  %667 = vrot.lane.b32.xlu0 %v5181_v12, %s4543_s23  ;;  %v7564_v34 = vld [vmem:[#allocation32_spill] sm:$0xff] }
 0x14e   :  { %4351 = vmatprep.mubr.msk.f32.mxu0 %vm955_vm3, %v927_v26  ;;  %v327_v26 = vmul.f32 %v5432_v41, %v7564_v34 }
 0x14f   :  { %v624_v7 = vpop.permute.xlu1 %623 }
 0x150   :  { %v887_v38 = vsel %vm869_vm1, %v326_v14, %v624_v7  ;;  %665 = vrot.lane.b32.xlu1 %v5451_v28, %s4543_s23  ;;  %v784_v24 = vpop.permute.xlu0 %783  ;;  %v7565_v7 = vld [vmem:[#allocation33_spill] sm:$0xff] }
 0x151   :  { %v928_v42 = vsel %vm910_vm2, %v887_v38, %v784_v24  ;;  %827 = vrot.lane.b32.xlu0 %v548_v16, %s4544_s30  ;;  %v328_v12 = vmul.f32 %v5466_v56, %v7565_v7  ;;  %v7569_v56 = vld [vmem:[#allocation35_spill] sm:$0xff] }
 0x152   :  { %4352 = vmatmul.mubr.msk.f32.gmra.mxu0 %vm955_vm3, %v928_v42 }
 0x153   :  { %v5495_v62 = vpop.permute.xlu1 %216 }
 0x154   :  { %7562 = vst [vmem:[#allocation9_spill] sm:$0xff] %v5495_v62  ;;  %825 = vrot.lane.b32.xlu1 %v547_v43, %s4544_s30  ;;  %v5498_v35 = vpop.permute.xlu0 %221  ;;  %s4545_s30 = smov 32  }
 0x155   :  { %7563 = vst [vmem:[#allocation40_spill] sm:$0xff] %v5498_v35 }
 0x157   :  { %v626_v44 = vpop.permute.xlu1 %625 }
 0x158   :  { %v888_v14 = vsel %vm869_vm1, %v327_v26, %v626_v44  ;;  %v786_v38 = vpop.permute.xlu0 %785  ;;  %v7568_v26 = vld [vmem:[#allocation34_spill] sm:$0xff] }
 0x159   :  { %v929_v16 = vsel %vm910_vm2, %v888_v14, %v786_v38  ;;  %v329_v44 = vmul.f32 %v5470_v45, %v7568_v26 }
 0x15a   :  { %4354 = vmatprep.mubr.msk.f32.mxu0 %vm955_vm3, %v929_v16 }
 0x15b   :  { %v628_v24 = vpop.permute.xlu1 %627 }
 0x15c   :  { %v889_v42 = vsel %vm869_vm1, %v328_v12, %v628_v24  ;;  %v788_v43 = vpop.permute.xlu0 %787  ;;  %v330_v12 = vmul.f32 %v5495_v62, %v7569_v56  ;;  %v7573_v62 = vld [vmem:[#allocation39_spill] sm:$0xff] }
 0x15d   :  { %v930_v49 = vsel %vm910_vm2, %v889_v42, %v788_v43 }
 0x15e   :  { %4355 = vmatmul.mubr.msk.f32.gmra.mxu0 %vm955_vm3, %v930_v49 }
 0x15f   :  { %v5510_v34 = vpop.permute.xlu1 %226 }
 0x160   :  { %7566 = vst [vmem:[#allocation38_spill] sm:$0xff] %v5510_v34  ;;  %v5512_v41 = vpop.permute.xlu0 %231 }
 0x161   :  { %7567 = vst [vmem:[#allocation30_spill] sm:$0xff] %v5512_v41 }
 0x163   :  { %v630_v14 = vpop.permute.xlu1 %629 }
 0x164   :  { %v890_v38 = vsel %vm869_vm1, %v329_v44, %v630_v14  ;;  %v790_v7 = vpop.permute.xlu0 %789  ;;  %v7572_v44 = vld [vmem:[#allocation37_spill] sm:$0xff] }
 0x165   :  { %v931_v16 = vsel %vm910_vm2, %v890_v38, %v790_v7  ;;  %v331_v14 = vmul.f32 %v5498_v35, %v7572_v44 }
 0x166   :  { %4357 = vmatprep.mubr.msk.f32.mxu0 %vm955_vm3, %v931_v16 }
 0x167   :  { %v632_v24 = vpop.permute.xlu1 %631 }
 0x168   :  { %v891_v49 = vsel %vm869_vm1, %v330_v12, %v632_v24  ;;  %v792_v42 = vpop.permute.xlu0 %791  ;;  %v332_v12 = vmul.f32 %v5510_v34, %v7573_v62 }
 0x169   :  { %v932_v43 = vsel %vm910_vm2, %v891_v49, %v792_v42 }
 0x16a   :  { %4358 = vmatmul.mubr.msk.f32.gmra.mxu0 %vm955_vm3, %v932_v43 }
 0x16b   :  { %v5524_v26 = vpop.permute.xlu1 %236 }
 0x16c   :  { %7570 = vst [vmem:[#allocation31_spill] sm:$0xff] %v5524_v26  ;;  %v5526_v45 = vpop.permute.xlu0 %241 }
 0x16d   :  { %7571 = vst [vmem:[#allocation32_spill] sm:$0xff] %v5526_v45 }
 0x16f   :  { %v634_v38 = vpop.permute.xlu1 %633 }
 0x170   :  { %v892_v56 = vsel %vm869_vm1, %v331_v14, %v634_v38  ;;  %v794_v7 = vpop.permute.xlu0 %793  ;;  %v333_v14 = vmul.f32 %v5512_v41, %v5189_v57 }
 0x171   :  { %v933_v16 = vsel %vm910_vm2, %v892_v56, %v794_v7 }
 0x172   :  { %4360 = vmatprep.mubr.msk.f32.mxu0 %vm955_vm3, %v933_v16  ;;  %v334_v16 = vmul.f32 %v5524_v26, %v5204_v2 }
 0x173   :  { %v636_v24 = vpop.permute.xlu1 %635 }
 0x174   :  { %v893_v49 = vsel %vm869_vm1, %v332_v12, %v636_v24  ;;  %v796_v42 = vpop.permute.xlu0 %795 }
 0x175   :  { %v934_v43 = vsel %vm910_vm2, %v893_v49, %v796_v42 }
 0x176   :  { %4361 = vmatmul.mubr.msk.f32.gmra.mxu0 %vm955_vm3, %v934_v43 }
 0x177   :  { %v5538_v44 = vpop.permute.xlu1 %246 }
 0x178   :  { %7574 = vst [vmem:[#allocation33_spill] sm:$0xff] %v5538_v44  ;;  %v5540_v35 = vpop.permute.xlu0 %251 }
 0x179   :  { %7575 = vst [vmem:[#allocation34_spill] sm:$0xff] %v5540_v35 }
 0x17b   :  { %v638_v38 = vpop.permute.xlu1 %637 }
 0x17c   :  { %v894_v62 = vsel %vm869_vm1, %v333_v14, %v638_v38  ;;  %v798_v56 = vpop.permute.xlu0 %797  ;;  %v335_v14 = vmul.f32 %v5526_v45, %v5232_v30 }
 0x17d   :  { %v935_v7 = vsel %vm910_vm2, %v894_v62, %v798_v56 }
 0x17e   :  { %4363 = vmatprep.mubr.msk.f32.mxu0 %vm955_vm3, %v935_v7  ;;  %v336_v7 = vmul.f32 %v5538_v44, %v5242_v15 }
 0x17f   :  { %v640_v12 = vpop.permute.xlu1 %639 }
 0x180   :  { %v895_v24 = vsel %vm869_vm1, %v334_v16, %v640_v12  ;;  %v800_v49 = vpop.permute.xlu0 %799 }
 0x181   :  { %v936_v42 = vsel %vm910_vm2, %v895_v24, %v800_v49 }
 0x182   :  { %4364 = vmatmul.mubr.msk.f32.gmra.mxu0 %vm955_vm3, %v936_v42 }
 0x183   :  { %v5552_v57 = vpop.permute.xlu1 %256 }
 0x184   :  { %7576 = vst [vmem:[#allocation35_spill] sm:$0xff] %v5552_v57  ;;  %v5554_v43 = vpop.permute.xlu0 %261 }
 0x185   :  { %7577 = vst [vmem:[#allocation37_spill] sm:$0xff] %v5554_v43 }
 0x187   :  { %v642_v38 = vpop.permute.xlu1 %641 }
 0x188   :  { %v896_v2 = vsel %vm869_vm1, %v335_v14, %v642_v38  ;;  %v802_v62 = vpop.permute.xlu0 %801  ;;  %v337_v14 = vmul.f32 %v5540_v35, %v5257_v23 }
 0x189   :  { %v937_v56 = vsel %vm910_vm2, %v896_v2, %v802_v62 }
 0x18a   :  { %4366 = vmatprep.mubr.msk.f32.mxu0 %vm955_vm3, %v937_v56  ;;  %v338_v56 = vmul.f32 %v5552_v57, %v5276_v31 }
 0x18b   :  { %v644_v16 = vpop.permute.xlu1 %643 }
 0x18c   :  { %v897_v12 = vsel %vm869_vm1, %v336_v7, %v644_v16  ;;  %v804_v24 = vpop.permute.xlu0 %803 }
 0x18d   :  { %v938_v49 = vsel %vm910_vm2, %v897_v12, %v804_v24 }
 0x18e   :  { %4367 = vmatmul.mubr.msk.f32.gmra.mxu0 %vm955_vm3, %v938_v49 }
 0x18f   :  { %v5566_v30 = vpop.permute.xlu1 %266 }
 0x190   :  { %7578 = vst [vmem:[#allocation39_spill] sm:$0xff] %v5566_v30  ;;  %v5568_v42 = vpop.permute.xlu0 %271 }
 0x191   :  { %7579 = vst [vmem:[#allocation47_spill] sm:$0xff] %v5568_v42 }
 0x193   :  { %v646_v38 = vpop.permute.xlu1 %645 }
 0x194   :  { %v898_v15 = vsel %vm869_vm1, %v337_v14, %v646_v38  ;;  %v806_v2 = vpop.permute.xlu0 %805  ;;  %v339_v14 = vmul.f32 %v5554_v43, %v5304_v27 }
 0x195   :  { %v939_v62 = vsel %vm910_vm2, %v898_v15, %v806_v2 }
 0x196   :  { %4369 = vmatprep.mubr.msk.f32.mxu0 %vm955_vm3, %v939_v62  ;;  %v340_v62 = vmul.f32 %v5566_v30, %v5318_v1 }
 0x197   :  { %v648_v7 = vpop.permute.xlu1 %647 }
 0x198   :  { %v899_v16 = vsel %vm869_vm1, %v338_v56, %v648_v7  ;;  %v808_v12 = vpop.permute.xlu0 %807 }
 0x199   :  { %v940_v24 = vsel %vm910_vm2, %v899_v16, %v808_v12 }
 0x19a   :  { %4370 = vmatmul.mubr.msk.f32.gmra.mxu0 %vm955_vm3, %v940_v24 }
 0x19b   :  { %v5580_v23 = vpop.permute.xlu1 %276 }
 0x19c   :  { %7580 = vst [vmem:[#allocation48_spill] sm:$0xff] %v5580_v23  ;;  %v5582_v49 = vpop.permute.xlu0 %281 }
 0x19d   :  { %7581 = vst [vmem:[#allocation49_spill] sm:$0xff] %v5582_v49 }
 0x19f   :  { %v650_v38 = vpop.permute.xlu1 %649 }
 0x1a0   :  { %v900_v31 = vsel %vm869_vm1, %v339_v14, %v650_v38  ;;  %v810_v15 = vpop.permute.xlu0 %809  ;;  %v951_v14 = vlaneseq  ;;  %v341_v38 = vmul.f32 %v5568_v42, %v5342_v39  ;;  %v7590_v42 = vld [vmem:[#allocation3_spill] sm:$0xff] }
 0x1a1   :  { %v941_v2 = vsel %vm910_vm2, %v900_v31, %v810_v15 }
 0x1a2   :  { %4372 = vmatprep.mubr.msk.f32.mxu0 %vm955_vm3, %v941_v2 }
 0x1a3   :  { %v652_v56 = vpop.permute.xlu1 %651 }
 0x1a4   :  { %v901_v7 = vsel %vm869_vm1, %v340_v62, %v652_v56  ;;  %v812_v16 = vpop.permute.xlu0 %811  ;;  %v5602_v62 = vshrl.u32 %v951_v14, 7  ;;  %v342_v56 = vmul.f32 %v5580_v23, %v5356_v55  ;;  %v66_v14 = vld [vmem:[%s7409_s4] sm:$0x3] }
 0x1a5   :  { %v942_v12 = vsel %vm910_vm2, %v901_v7, %v812_v16 }
 0x1a6   :  { %4373 = vmatmul.mubr.msk.f32.gmra.mxu0 %vm955_vm3, %v942_v12  ;;  %7584 = vst [vmem:[#allocation52_spill] sm:$0xff] %v5602_v62  ;;  %v7462_v39 = vsub.s32 0, %v5602_v62 }
 0x1a7   :  { %v5594_v27 = vpop.permute.xlu1 %286 }
 0x1a8   :  { %7582 = vst [vmem:[#allocation50_spill] sm:$0xff] %v5594_v27  ;;  %v5596_v24 = vpop.permute.xlu0 %291  ;;  %v5620_v55 = vrot.slane %v66_v14, %v7462_v39 }
 0x1a9   :  { %7583 = vst [vmem:[#allocation51_spill] sm:$0xff] %v5596_v24 }
 0x1ab   :  { %v654_v31 = vpop.permute.xlu1 %653 }
 0x1ac   :  { %v902_v1 = vsel %vm869_vm1, %v341_v38, %v654_v31  ;;  %v814_v15 = vpop.permute.xlu0 %813 }
 0x1ad   :  { %v943_v2 = vsel %vm910_vm2, %v902_v1, %v814_v15  ;;  %v343_v1 = vmul.f32 %v5582_v49, %v5378_v40 }
 0x1ae   :  { %4375 = vmatprep.mubr.msk.f32.mxu0 %vm955_vm3, %v943_v2 }
 0x1af   :  { %v656_v7 = vpop.permute.xlu1 %655 }
 0x1b0   :  { %v903_v16 = vsel %vm869_vm1, %v342_v56, %v656_v7  ;;  %v816_v12 = vpop.permute.xlu0 %815 }
 0x1b1   :  { %v944_v30 = vsel %vm910_vm2, %v903_v16, %v816_v12  ;;  %v344_v12 = vmul.f32 %v5594_v27, %v5392_v36 }
 0x1b2   :  { %4376 = vmatmul.mubr.msk.f32.gmra.mxu0 %vm955_vm3, %v944_v30 }
 0x1b3   :  { %v5614_v38 = vpop.permute.xlu1 %296 }
 0x1b4   :  { %7585 = vst [vmem:[#allocation53_spill] sm:$0xff] %v5614_v38  ;;  %v5616_v31 = vpop.permute.xlu0 %301 }
 0x1b5   :  { %7586 = vst [vmem:[#allocation54_spill] sm:$0xff] %v5616_v31 }
 0x1b7   :  { %v658_v15 = vpop.permute.xlu1 %657 }
 0x1b8   :  { %v904_v2 = vsel %vm869_vm1, %v343_v1, %v658_v15  ;;  %v4329_v56 = vpop.f32.mrf.mxu0  ;;  %v818_v30 = vpop.permute.xlu0 %817 }
 0x1b9   :  { %v1152_v7 = vadd.f32 %v4329_v56, %v5620_v55  ;;  %v945_v16 = vsel %vm910_vm2, %v904_v2, %v818_v30 }
 0x1ba   :  { %v1146_v23 = vpop.f32.mrf.mxu0  ;;  %4378 = vmatprep.mubr.msk.f32.mxu0 %vm955_vm3, %v945_v16  ;;  %v7588_v16 = vld [vmem:[#allocation4_spill] sm:$0xff] }
 0x1bb   :  { %v5630_v14 = vmax.f32 %v1152_v7, 0.0  ;;  %v1147_v39 = vadd.f32 %v1146_v23, %v5620_v55  ;;  %v660_v40 = vpop.permute.xlu1 %659 }
 0x1bc   :  { %v905_v62 = vsel %vm869_vm1, %v344_v12, %v660_v40  ;;  %v4332_v1 = vpop.f32.mrf.mxu0  ;;  %v820_v15 = vpop.permute.xlu0 %819 }
 0x1bd   :  { %v5634_v49 = vmax.f32 %v1147_v39, 0.0  ;;  %v1162_v56 = vadd.f32 %v4332_v1, %v5620_v55  ;;  %1519 = vrot.lane.b32.xlu0 %v5630_v14, %s4545_s30  ;;  %v946_v36 = vsel %vm910_vm2, %v905_v62, %v820_v15  ;;  %v1437_v12 = vmul.f32 %v5630_v14, %v7588_v16  ;;  %v7589_v62 = vld [vmem:[#allocation6_spill] sm:$0xff] }
 0x1be   :  { %v1156_v2 = vpop.f32.mrf.mxu0  ;;  %4379 = vmatmul.mubr.msk.f32.gmra.mxu0 %vm955_vm3, %v946_v36  ;;  %v345_v36 = vmul.f32 %v5596_v24, %v5414_v17 }
 0x1bf   :  { %v5640_v30 = vmax.f32 %v1162_v56, 0.0  ;;  %v1157_v23 = vadd.f32 %v1156_v2, %v5620_v55  ;;  %v5644_v7 = vpop.permute.xlu1 %306  ;;  %1517 = vrot.lane.b32.xlu1 %v5634_v49, %s4545_s30  ;;  %v346_v2 = vmul.f32 %v5614_v38, %v5428_v18 }
 0x1c0   :  { %7587 = vst [vmem:[#allocation55_spill] sm:$0xff] %v5644_v7  ;;  %v664_v39 = vpop.permute.xlu0 %663 }
 0x1c1   :  { %v5650_v40 = vmax.f32 %v1157_v23, 0.0  ;;  %1523 = vrot.lane.b32.xlu0 %v5640_v30, %s4545_s30  ;;  %v1439_v43 = vmul.f32 %v5640_v30, %v7590_v42 }
 0x1c3   :  { %v1438_v1 = vmul.f32 %v5650_v40, %v7589_v62  ;;  %v662_v15 = vpop.permute.xlu1 %661  ;;  %1677 = vrot.lane.b32.xlu1 %v1437_v12, %s4546_s29  ;;  %v907_v62 = vsel %vm869_vm1, %v346_v2, %v664_v39  ;;  %v348_v39 = vmul.f32 %v5644_v7, %v5451_v28 }
 0x1c4   :  { %v824_v56 = vpop.permute.xlu0 %823  ;;  %v906_v23 = vsel %vm869_vm1, %v345_v36, %v662_v15 }
 0x1c5   :  { %1679 = vrot.lane.b32.xlu0 %v1438_v1, %s4546_s29  ;;  %v948_v17 = vsel %vm910_vm2, %v907_v62, %v824_v56  ;;  %v347_v1 = vmul.f32 %v5616_v31, %v5456_v9 }
 0x1c7   :  { %v822_v16 = vpop.permute.xlu1 %821  ;;  %1521 = vrot.lane.b32.xlu1 %v5650_v40, %s4545_s30 }
 0x1c8   :  { %v947_v27 = vsel %vm910_vm2, %v906_v23, %v822_v16  ;;  %v668_v12 = vpop.permute.xlu0 %667 }
 0x1c9   :  { %4381 = vmatprep.mubr.msk.f32.mxu0 %vm955_vm3, %v947_v27  ;;  %v909_v27 = vsel %vm869_vm1, %v348_v39, %v668_v12 }
 0x1ca   :  { %4382 = vmatmul.mubr.msk.f32.gmra.mxu0 %vm955_vm3, %v948_v17  ;;  %v7591_v17 = vld [vmem:[#allocation5_spill] sm:$0xff] }
 0x1cb   :  { %v666_v18 = vpop.permute.xlu1 %665  ;;  %1681 = vrot.lane.b32.xlu1 %v1439_v43, %s4546_s29 }
 0x1cc   :  { %v828_v15 = vpop.permute.xlu0 %827  ;;  %v908_v2 = vsel %vm869_vm1, %v347_v1, %v666_v18  ;;  %v7592_v18 = vld [vmem:[#allocation8_spill] sm:$0xff] }
 0x1cd   :  { %v950_v43 = vsel %vm910_vm2, %v909_v27, %v828_v15  ;;  %v7593_v27 = vld [vmem:[#allocation7_spill] sm:$0xff] }
 0x1ce   :  { %v4335_v36 = vpop.f32.mrf.mxu0 }
 0x1cf   :  { %v1172_v42 = vadd.f32 %v4335_v36, %v5620_v55  ;;  %v826_v56 = vpop.permute.xlu1 %825 }
 0x1d0   :  { %v949_v23 = vsel %vm910_vm2, %v908_v2, %v826_v56  ;;  %v1166_v16 = vpop.f32.mrf.mxu0 }
 0x1d1   :  { %v5682_v62 = vmax.f32 %v1172_v42, 0.0  ;;  %v1167_v9 = vadd.f32 %v1166_v16, %v5620_v55  ;;  %4384 = vmatprep.mubr.msk.f32.mxu0 %vm955_vm3, %v949_v23  ;;  %v7594_v16 = vld [vmem:[#allocation11_spill] sm:$0xff] }
 0x1d2   :  { %4385 = vmatmul.mubr.msk.f32.gmra.mxu0 %vm955_vm3, %v950_v43 }
 0x1d3   :  { %v5687_v28 = vmax.f32 %v1167_v9, 0.0  ;;  %1527 = vrot.lane.b32.xlu0 %v5682_v62, %s4545_s30  ;;  %v1441_v1 = vmul.f32 %v5682_v62, %v7592_v18 }
 0x1d5   :  { %v1440_v12 = vmul.f32 %v5687_v28, %v7591_v17  ;;  %1525 = vrot.lane.b32.xlu1 %v5687_v28, %s4545_s30 }
 0x1d7   :  { %1683 = vrot.lane.b32.xlu0 %v1440_v12, %s4546_s29 }
 0x1d9   :  { %1685 = vrot.lane.b32.xlu1 %v1441_v1, %s4546_s29  ;;  %v4338_v39 = vpop.f32.mrf.mxu0 }
 0x1da   :  { %v1182_v15 = vadd.f32 %v4338_v39, %v5620_v55 }
 0x1db   :  { %v1176_v36 = vpop.f32.mrf.mxu0 }
 0x1dc   :  { %v5700_v2 = vmax.f32 %v1182_v15, 0.0  ;;  %v1177_v42 = vadd.f32 %v1176_v36, %v5620_v55  ;;  %v7595_v15 = vld [vmem:[#allocation10_spill] sm:$0xff] }
 0x1de   :  { %v5703_v56 = vmax.f32 %v1177_v42, 0.0  ;;  %1531 = vrot.lane.b32.xlu0 %v5700_v2, %s4545_s30  ;;  %v1443_v43 = vmul.f32 %v5700_v2, %v7594_v16  ;;  %v7596_v42 = vld [vmem:[#allocation13_spill] sm:$0xff] }
 0x1e0   :  { %v1442_v23 = vmul.f32 %v5703_v56, %v7593_v27  ;;  %1529 = vrot.lane.b32.xlu1 %v5703_v56, %s4545_s30 }
 0x1e2   :  { %v4341_v9 = vpop.f32.mrf.mxu0  ;;  %1687 = vrot.lane.b32.xlu0 %v1442_v23, %s4546_s29 }
 0x1e3   :  { %v1192_v17 = vadd.f32 %v4341_v9, %v5620_v55 }
 0x1e4   :  { %1689 = vrot.lane.b32.xlu1 %v1443_v43, %s4546_s29  ;;  %v1186_v12 = vpop.f32.mrf.mxu0 }
 0x1e5   :  { %v5716_v18 = vmax.f32 %v1192_v17, 0.0  ;;  %v1187_v1 = vadd.f32 %v1186_v12, %v5620_v55 }
 0x1e7   :  { %v5719_v39 = vmax.f32 %v1187_v1, 0.0  ;;  %1535 = vrot.lane.b32.xlu0 %v5716_v18, %s4545_s30  ;;  %v1445_v27 = vmul.f32 %v5716_v18, %v7596_v42  ;;  %v7597_v1 = vld [vmem:[#allocation12_spill] sm:$0xff] }
 0x1e9   :  { %v1444_v36 = vmul.f32 %v5719_v39, %v7595_v15  ;;  %1533 = vrot.lane.b32.xlu1 %v5719_v39, %s4545_s30 }
 0x1eb   :  { %1691 = vrot.lane.b32.xlu0 %v1444_v36, %s4546_s29  ;;  %v7598_v36 = vld [vmem:[#allocation15_spill] sm:$0xff] }
 0x1ed   :  { %1693 = vrot.lane.b32.xlu1 %v1445_v27, %s4546_s29 }
 0x1ee   :  { %v4344_v23 = vpop.f32.mrf.mxu0 }
 0x1ef   :  { %v1202_v16 = vadd.f32 %v4344_v23, %v5620_v55 }
 0x1f0   :  { %v1196_v43 = vpop.f32.mrf.mxu0 }
 0x1f1   :  { %v5732_v9 = vmax.f32 %v1202_v16, 0.0  ;;  %v1197_v17 = vadd.f32 %v1196_v43, %v5620_v55 }
 0x1f3   :  { %v5735_v12 = vmax.f32 %v1197_v17, 0.0  ;;  %1539 = vrot.lane.b32.xlu0 %v5732_v9, %s4545_s30  ;;  %v1447_v42 = vmul.f32 %v5732_v9, %v7598_v36 }
 0x1f5   :  { %v1446_v15 = vmul.f32 %v5735_v12, %v7597_v1  ;;  %1537 = vrot.lane.b32.xlu1 %v5735_v12, %s4545_s30  ;;  %v7601_v1 = vld [vmem:[#allocation14_spill] sm:$0xff] }
 0x1f7   :  { %1695 = vrot.lane.b32.xlu0 %v1446_v15, %s4546_s29  ;;  %v7602_v15 = vld [vmem:[#allocation17_spill] sm:$0xff] }
 0x1f9   :  { %1697 = vrot.lane.b32.xlu1 %v1447_v42, %s4546_s29 }
 0x1fa   :  { %v4347_v27 = vpop.f32.mrf.mxu0 }
 0x1fb   :  { %v1212_v23 = vadd.f32 %v4347_v27, %v5620_v55  ;;  %v1396_v27 = vld [vmem:[%s7410_s3 + $0x58] sm:$0xff] }
 0x1fc   :  { %v1206_v16 = vpop.f32.mrf.mxu0  ;;  %4387 = vmatprep.subr.mxu1 %v1396_v27 }
 0x1fd   :  { %v5748_v43 = vmax.f32 %v1212_v23, 0.0  ;;  %v1207_v17 = vadd.f32 %v1206_v16, %v5620_v55  ;;  %4388 = vmatpush3.msra.mxu1 %v1396_v27  ;;  %v1395_v16 = vld [vmem:[%s7410_s3 + $0x50] sm:$0xff]  ;;  %v1393_v27 = vld [vmem:[%s7410_s3 + $0x40] sm:$0xff] }
 0x1fe   :  { %4389 = vmatprep.subr.mxu1 %v1395_v16 }
 0x1ff   :  { %7599 = vst [vmem:[#allocation4_spill] sm:$0xff] %v5748_v43  ;;  %v5751_v7 = vmax.f32 %v1207_v17, 0.0  ;;  %1543 = vrot.lane.b32.xlu0 %v5748_v43, %s4545_s30  ;;  %v1449_v42 = vmul.f32 %v5748_v43, %v7602_v15  ;;  %4390 = vmatpush3.msra.mxu1 %v1395_v16  ;;  %v7605_v16 = vld [vmem:[#allocation16_spill] sm:$0xff] }
 0x201   :  { %7600 = vst [vmem:[#allocation6_spill] sm:$0xff] %v5751_v7  ;;  %v1448_v36 = vmul.f32 %v5751_v7, %v7601_v1  ;;  %1541 = vrot.lane.b32.xlu1 %v5751_v7, %s4545_s30 }
 0x203   :  { %1699 = vrot.lane.b32.xlu0 %v1448_v36, %s4546_s29  ;;  %v1394_v36 = vld [vmem:[%s7410_s3 + $0x48] sm:$0xff] }
 0x204   :  { %4391 = vmatprep.subr.mxu1 %v1394_v36 }
 0x205   :  { %1701 = vrot.lane.b32.xlu1 %v1449_v42, %s4546_s29  ;;  %4392 = vmatpush3.msra.mxu1 %v1394_v36  ;;  %v7606_v36 = vld [vmem:[#allocation19_spill] sm:$0xff] }
 0x206   :  { %v4350_v23 = vpop.f32.mrf.mxu0  ;;  %4393 = vmatprep.subr.mxu1 %v1393_v27 }
 0x207   :  { %v1222_v17 = vadd.f32 %v4350_v23, %v5620_v55  ;;  %4394 = vmatpush3.msra.mxu1 %v1393_v27  ;;  %v1392_v23 = vld [vmem:[%s7410_s3 + $0x38] sm:$0xff]  ;;  %v1390_v27 = vld [vmem:[%s7410_s3 + $0x28] sm:$0xff] }
 0x208   :  { %v1216_v1 = vpop.f32.mrf.mxu0  ;;  %4395 = vmatprep.subr.mxu1 %v1392_v23 }
 0x209   :  { %v5773_v15 = vmax.f32 %v1222_v17, 0.0  ;;  %v1217_v42 = vadd.f32 %v1216_v1, %v5620_v55  ;;  %4396 = vmatpush3.msra.mxu1 %v1392_v23  ;;  %v1391_v1 = vld [vmem:[%s7410_s3 + $0x30] sm:$0xff]  ;;  %v1389_v23 = vld [vmem:[%s7410_s3 + $0x20] sm:$0xff] }
 0x20a   :  { %4397 = vmatprep.subr.mxu1 %v1391_v1 }
 0x20b   :  { %7603 = vst [vmem:[#allocation3_spill] sm:$0xff] %v5773_v15  ;;  %v5779_v31 = vmax.f32 %v1217_v42, 0.0  ;;  %1547 = vrot.lane.b32.xlu0 %v5773_v15, %s4545_s30  ;;  %v1451_v42 = vmul.f32 %v5773_v15, %v7606_v36  ;;  %4398 = vmatpush3.msra.mxu1 %v1391_v1 }
 0x20c   :  { %4399 = vmatprep.subr.mxu1 %v1390_v27 }
 0x20d   :  { %7604 = vst [vmem:[#allocation5_spill] sm:$0xff] %v5779_v31  ;;  %v1450_v17 = vmul.f32 %v5779_v31, %v7605_v16  ;;  %1545 = vrot.lane.b32.xlu1 %v5779_v31, %s4545_s30  ;;  %4400 = vmatpush3.msra.mxu1 %v1390_v27 }
 0x20e   :  { %4401 = vmatprep.subr.mxu1 %v1389_v23 }
 0x20f   :  { %1703 = vrot.lane.b32.xlu0 %v1450_v17, %s4546_s29  ;;  %4402 = vmatpush3.msra.mxu1 %v1389_v23  ;;  %v1388_v17 = vld [vmem:[%s7410_s3 + $0x18] sm:$0xff] }
 0x210   :  { %4403 = vmatprep.subr.mxu1 %v1388_v17  ;;  %v7609_v23 = vld [vmem:[#allocation18_spill] sm:$0xff] }
 0x211   :  { %1705 = vrot.lane.b32.xlu1 %v1451_v42, %s4546_s29  ;;  %4404 = vmatpush3.msra.mxu1 %v1388_v17  ;;  %v1387_v42 = vld [vmem:[%s7410_s3 + $0x10] sm:$0xff] }
 0x212   :  { %v4353_v16 = vpop.f32.mrf.mxu0  ;;  %4405 = vmatprep.subr.mxu1 %v1387_v42 }
 0x213   :  { %v1232_v38 = vadd.f32 %v4353_v16, %v5620_v55  ;;  %4406 = vmatpush3.msra.mxu1 %v1387_v42  ;;  %v1386_v16 = vld [vmem:[%s7410_s3 + $0x8] sm:$0xff] }
 0x214   :  { %v1226_v36 = vpop.f32.mrf.mxu0  ;;  %4407 = vmatprep.subr.mxu1 %v1386_v16 }
 0x215   :  { %v1227_v1 = vadd.f32 %v1226_v36, %v5620_v55  ;;  %v5811_v27 = vmax.f32 %v1232_v38, 0.0  ;;  %4408 = vmatpush3.msra.mxu1 %v1386_v16  ;;  %v1385_v38 = vld [vmem:[%s7410_s3] sm:$0xff]  ;;  %v7610_v36 = vld [vmem:[#allocation21_spill] sm:$0xff] }
 0x216   :  { %4409 = vmatprep.subr.mxu1 %v1385_v38 }
 0x217   :  { %7607 = vst [vmem:[#allocation8_spill] sm:$0xff] %v5811_v27  ;;  %v5813_v24 = vmax.f32 %v1227_v1, 0.0  ;;  %v1453_v17 = vmul.f32 %v5811_v27, %v7610_v36  ;;  %4410 = vmatpush3.msra.mxu1 %v1385_v38  ;;  %v7614_v36 = vld [vmem:[#allocation23_spill] sm:$0xff] }
 0x219   :  { %7608 = vst [vmem:[#allocation7_spill] sm:$0xff] %v5813_v24  ;;  %v1452_v57 = vmul.f32 %v5813_v24, %v7609_v23  ;;  %1549 = vrot.lane.b32.xlu1 %v5813_v24, %s4545_s30 }
 0x21b   :  { %1707 = vrot.lane.b32.xlu0 %v1452_v57, %s4546_s29  ;;  %v7613_v57 = vld [vmem:[#allocation20_spill] sm:$0xff] }
 0x21d   :  { %1709 = vrot.lane.b32.xlu1 %v1453_v17, %s4546_s29 }
 0x21e   :  { %v4356_v1 = vpop.f32.mrf.mxu0 }
 0x21f   :  { %v1242_v42 = vadd.f32 %v4356_v1, %v5620_v55  ;;  %1551 = vrot.lane.b32.xlu0 %v5811_v27, %s4545_s30 }
 0x220   :  { %v1236_v16 = vpop.f32.mrf.mxu0 }
 0x221   :  { %v5832_v23 = vmax.f32 %v1242_v42, 0.0  ;;  %v1237_v35 = vadd.f32 %v1236_v16, %v5620_v55 }
 0x223   :  { %7611 = vst [vmem:[#allocation11_spill] sm:$0xff] %v5832_v23  ;;  %v5835_v44 = vmax.f32 %v1237_v35, 0.0  ;;  %1555 = vrot.lane.b32.xlu0 %v5832_v23, %s4545_s30  ;;  %v1455_v17 = vmul.f32 %v5832_v23, %v7614_v36 }
 0x225   :  { %7612 = vst [vmem:[#allocation10_spill] sm:$0xff] %v5835_v44  ;;  %v1454_v38 = vmul.f32 %v5835_v44, %v7613_v57  ;;  %1553 = vrot.lane.b32.xlu1 %v5835_v44, %s4545_s30  ;;  %v7617_v57 = vld [vmem:[#allocation22_spill] sm:$0xff] }
 0x227   :  { %1711 = vrot.lane.b32.xlu0 %v1454_v38, %s4546_s29  ;;  %v7618_v38 = vld [vmem:[#allocation25_spill] sm:$0xff] }
 0x229   :  { %1713 = vrot.lane.b32.xlu1 %v1455_v17, %s4546_s29 }
 0x22a   :  { %v4359_v1 = vpop.f32.mrf.mxu0 }
 0x22b   :  { %v1252_v35 = vadd.f32 %v4359_v1, %v5620_v55 }
 0x22c   :  { %v1246_v42 = vpop.f32.mrf.mxu0 }
 0x22d   :  { %v5848_v16 = vmax.f32 %v1252_v35, 0.0  ;;  %v1247_v45 = vadd.f32 %v1246_v42, %v5620_v55 }
 0x22f   :  { %7615 = vst [vmem:[#allocation13_spill] sm:$0xff] %v5848_v16  ;;  %v5851_v26 = vmax.f32 %v1247_v45, 0.0  ;;  %1559 = vrot.lane.b32.xlu0 %v5848_v16, %s4545_s30  ;;  %v1457_v17 = vmul.f32 %v5848_v16, %v7618_v38  ;;  %v5882_v16 = vpop.permute.xlu0 %1519 }
 0x231   :  { %7616 = vst [vmem:[#allocation12_spill] sm:$0xff] %v5851_v26  ;;  %v1456_v36 = vmul.f32 %v5851_v26, %v7617_v57  ;;  %1557 = vrot.lane.b32.xlu1 %v5851_v26, %s4545_s30  ;;  %v7621_v57 = vld [vmem:[#allocation24_spill] sm:$0xff] }
 0x233   :  { %1715 = vrot.lane.b32.xlu0 %v1456_v36, %s4546_s29  ;;  %v7622_v36 = vld [vmem:[#allocation26_spill] sm:$0xff] }
 0x235   :  { %1717 = vrot.lane.b32.xlu1 %v1457_v17, %s4546_s29 }
 0x236   :  { %v4362_v1 = vpop.f32.mrf.mxu0 }
 0x237   :  { %v1262_v45 = vadd.f32 %v4362_v1, %v5620_v55  ;;  %v5878_v1 = vpop.permute.xlu1 %1517 }
 0x238   :  { %v1256_v35 = vpop.f32.mrf.mxu0 }
 0x239   :  { %v5864_v42 = vmax.f32 %v1262_v45, 0.0  ;;  %v1257_v41 = vadd.f32 %v1256_v35, %v5620_v55 }
 0x23b   :  { %7619 = vst [vmem:[#allocation15_spill] sm:$0xff] %v5864_v42  ;;  %v5867_v34 = vmax.f32 %v1257_v41, 0.0  ;;  %1563 = vrot.lane.b32.xlu0 %v5864_v42, %s4545_s30  ;;  %v1459_v17 = vmul.f32 %v5864_v42, %v7622_v36  ;;  %v5885_v26 = vpop.permute.xlu1 %1677  ;;  %v5895_v36 = vpop.permute.xlu0 %1523 }
 0x23d   :  { %7620 = vst [vmem:[#allocation14_spill] sm:$0xff] %v5867_v34  ;;  %v1458_v38 = vmul.f32 %v5867_v34, %v7621_v57  ;;  %1561 = vrot.lane.b32.xlu1 %v5867_v34, %s4545_s30 }
 0x23f   :  { %1719 = vrot.lane.b32.xlu0 %v1458_v38, %s4546_s29 }
 0x241   :  { %1721 = vrot.lane.b32.xlu1 %v1459_v17, %s4546_s29 }
 0x242   :  { %v4365_v41 = vpop.f32.mrf.mxu0 }
 0x243   :  { %v1272_v45 = vadd.f32 %v4365_v41, %v5620_v55  ;;  %v5900_v41 = vpop.permute.xlu1 %1521 }
 0x244   :  { %v1266_v35 = vpop.f32.mrf.mxu0 }
 0x245   :  { %v1267_v57 = vadd.f32 %v1266_v35, %v5620_v55  ;;  %v5887_v34 = vmax.f32 %v1272_v45, 0.0 }
 0x247   :  { %7623 = vst [vmem:[#allocation17_spill] sm:$0xff] %v5887_v34  ;;  %v5889_v23 = vmax.f32 %v1267_v57, 0.0  ;;  %v1461_v17 = vmul.f32 %v5887_v34, %v5022_v13  ;;  %v5906_v57 = vpop.permute.xlu0 %1679  ;;  %v5911_v13 = vpop.permute.xlu1 %1681 }
 0x249   :  { %7624 = vst [vmem:[#allocation16_spill] sm:$0xff] %v5889_v23  ;;  %v1460_v38 = vmul.f32 %v5889_v23, %v5005_v11  ;;  %1565 = vrot.lane.b32.xlu1 %v5889_v23, %s4545_s30 }
 0x24b   :  { %1723 = vrot.lane.b32.xlu0 %v1460_v38, %s4546_s29 }
 0x24d   :  { %1725 = vrot.lane.b32.xlu1 %v1461_v17, %s4546_s29  ;;  %v5917_v17 = vpop.permute.xlu0 %1527 }
 0x24e   :  { %v4368_v45 = vpop.f32.mrf.mxu0 }
 0x24f   :  { %v1282_v35 = vadd.f32 %v4368_v45, %v5620_v55  ;;  %1567 = vrot.lane.b32.xlu0 %v5887_v34, %s4545_s30  ;;  %v5923_v34 = vpop.permute.xlu1 %1525 }
 0x250   :  { %v1276_v11 = vpop.f32.mrf.mxu0 }
 0x251   :  { %v5908_v23 = vmax.f32 %v1282_v35, 0.0  ;;  %v1277_v42 = vadd.f32 %v1276_v11, %v5620_v55  ;;  %v5929_v11 = vpop.permute.xlu0 %1683 }
 0x253   :  { %7625 = vst [vmem:[#allocation19_spill] sm:$0xff] %v5908_v23  ;;  %v5913_v38 = vmax.f32 %v1277_v42, 0.0  ;;  %1571 = vrot.lane.b32.xlu0 %v5908_v23, %s4545_s30  ;;  %v1463_v35 = vmul.f32 %v5908_v23, %v5036_v63  ;;  %v5932_v24 = vpop.permute.xlu1 %1685 }
 0x255   :  { %7626 = vst [vmem:[#allocation18_spill] sm:$0xff] %v5913_v38  ;;  %v1462_v45 = vmul.f32 %v5913_v38, %v5019_v3  ;;  %1569 = vrot.lane.b32.xlu1 %v5913_v38, %s4545_s30  ;;  %v5937_v15 = vpop.permute.xlu0 %1531 }
 0x257   :  { %1727 = vrot.lane.b32.xlu0 %v1462_v45, %s4546_s29  ;;  %v5943_v63 = vpop.permute.xlu1 %1529 }
 0x259   :  { %1729 = vrot.lane.b32.xlu1 %v1463_v35, %s4546_s29 }
 0x25a   :  { %v4371_v42 = vpop.f32.mrf.mxu0 }
 0x25b   :  { %v1292_v44 = vadd.f32 %v4371_v42, %v5620_v55  ;;  %v5955_v35 = vpop.permute.xlu1 %1689 }
 0x25c   :  { %v1286_v27 = vpop.f32.mrf.mxu0 }
 0x25d   :  { %v5934_v3 = vmax.f32 %v1292_v44, 0.0  ;;  %v1287_v38 = vadd.f32 %v1286_v27, %v5620_v55  ;;  %v5952_v27 = vpop.permute.xlu0 %1687 }
 0x25f   :  { %7627 = vst [vmem:[#allocation21_spill] sm:$0xff] %v5934_v3  ;;  %v5939_v31 = vmax.f32 %v1287_v38, 0.0  ;;  %1575 = vrot.lane.b32.xlu0 %v5934_v3, %s4545_s30  ;;  %v1465_v44 = vmul.f32 %v5934_v3, %v5052_v58  ;;  %v5967_v58 = vpop.permute.xlu1 %1533 }
 0x261   :  { %7628 = vst [vmem:[#allocation20_spill] sm:$0xff] %v5939_v31  ;;  %v1464_v45 = vmul.f32 %v5939_v31, %v5028_v5  ;;  %1573 = vrot.lane.b32.xlu1 %v5939_v31, %s4545_s30  ;;  %v5961_v31 = vpop.permute.xlu0 %1535 }
 0x263   :  { %1731 = vrot.lane.b32.xlu0 %v1464_v45, %s4546_s29 }
 0x265   :  { %1733 = vrot.lane.b32.xlu1 %v1465_v44, %s4546_s29 }
 0x266   :  { %v4374_v38 = vpop.f32.mrf.mxu0 }
 0x267   :  { %v1302_v42 = vadd.f32 %v4374_v38, %v5620_v55 }
 0x268   :  { %v1296_v23 = vpop.f32.mrf.mxu0 }
 0x269   :  { %v5958_v8 = vmax.f32 %v1302_v42, 0.0  ;;  %v1297_v5 = vadd.f32 %v1296_v23, %v5620_v55  ;;  %v5976_v23 = vpop.permute.xlu0 %1691  ;;  %v5979_v42 = vpop.permute.xlu1 %1693 }
 0x26b   :  { %7629 = vst [vmem:[#allocation23_spill] sm:$0xff] %v5958_v8  ;;  %v5963_v43 = vmax.f32 %v1297_v5, 0.0  ;;  %1579 = vrot.lane.b32.xlu0 %v5958_v8, %s4545_s30  ;;  %v1467_v44 = vmul.f32 %v5958_v8, %v5084_v50 }
 0x26d   :  { %7630 = vst [vmem:[#allocation22_spill] sm:$0xff] %v5963_v43  ;;  %v1466_v45 = vmul.f32 %v5963_v43, %v5068_v4  ;;  %1577 = vrot.lane.b32.xlu1 %v5963_v43, %s4545_s30  ;;  %v5982_v37 = vpop.permute.xlu0 %1539  ;;  %v5985_v43 = vpop.permute.xlu1 %1537 }
 0x26e   :  { %7631 = vst [vmem:[#allocation25_spill] sm:$0xff] %v5982_v37 }
 0x26f   :  { %1735 = vrot.lane.b32.xlu0 %v1466_v45, %s4546_s29 }
 0x271   :  { %1737 = vrot.lane.b32.xlu1 %v1467_v44, %s4546_s29  ;;  %v5995_v44 = vpop.permute.xlu0 %1695 }
 0x272   :  { %v4377_v38 = vpop.f32.mrf.mxu0 }
 0x273   :  { %v1312_v5 = vadd.f32 %v4377_v38, %v5620_v55 }
 0x274   :  { %v1306_v3 = vpop.f32.mrf.mxu0 }
 0x275   :  { %v1307_v4 = vadd.f32 %v1306_v3, %v5620_v55  ;;  %v5987_v7 = vmax.f32 %v1312_v5, 0.0  ;;  %v6000_v3 = vpop.permute.xlu1 %1697  ;;  %v6003_v5 = vpop.permute.xlu0 %1543 }
 0x276   :  { %7634 = vst [vmem:[#allocation56_spill] sm:$0xff] %v6003_v5 }
 0x277   :  { %7632 = vst [vmem:[#allocation24_spill] sm:$0xff] %v5987_v7  ;;  %v5989_v50 = vmax.f32 %v1307_v4, 0.0  ;;  %v1469_v38 = vmul.f32 %v5987_v7, %v5112_v59 }
 0x279   :  { %7633 = vst [vmem:[#allocation26_spill] sm:$0xff] %v5989_v50  ;;  %v1468_v45 = vmul.f32 %v5989_v50, %v5098_v51  ;;  %1581 = vrot.lane.b32.xlu1 %v5989_v50, %s4545_s30  ;;  %v6008_v50 = vpop.permute.xlu1 %1541 }
 0x27a   :  { %7635 = vst [vmem:[#allocation57_spill] sm:$0xff] %v6008_v50 }
 0x27b   :  { %1739 = vrot.lane.b32.xlu0 %v1468_v45, %s4546_s29 }
 0x27d   :  { %1741 = vrot.lane.b32.xlu1 %v1469_v38, %s4546_s29  ;;  %v6017_v38 = vpop.permute.xlu0 %1699 }
 0x27e   :  { %v4380_v4 = vpop.f32.mrf.mxu0  ;;  %7638 = vst [vmem:[#allocation60_spill] sm:$0xff] %v6017_v38 }
 0x27f   :  { %1583 = vrot.lane.b32.xlu0 %v5987_v7, %s4545_s30  ;;  %v1322_v51 = vadd.f32 %v4380_v4, %v5620_v55  ;;  %v6023_v4 = vpop.permute.xlu1 %1701 }
 0x280   :  { %v1316_v8 = vpop.f32.mrf.mxu0  ;;  %7639 = vst [vmem:[#allocation61_spill] sm:$0xff] %v6023_v4 }
 0x281   :  { %v6010_v46 = vmax.f32 %v1322_v51, 0.0  ;;  %v1317_v59 = vadd.f32 %v1316_v8, %v5620_v55  ;;  %v6028_v8 = vpop.permute.xlu0 %1547 }
 0x282   :  { %7640 = vst [vmem:[#allocation62_spill] sm:$0xff] %v6028_v8 }
 0x283   :  { %7636 = vst [vmem:[#allocation58_spill] sm:$0xff] %v6010_v46  ;;  %v6013_v45 = vmax.f32 %v1317_v59, 0.0  ;;  %1587 = vrot.lane.b32.xlu0 %v6010_v46, %s4545_s30  ;;  %v1471_v51 = vmul.f32 %v6010_v46, %v5121_v22  ;;  %v6031_v7 = vpop.permute.xlu1 %1545 }
 0x285   :  { %7637 = vst [vmem:[#allocation59_spill] sm:$0xff] %v6013_v45  ;;  %v1470_v5 = vmul.f32 %v6013_v45, %v5091_v48  ;;  %1585 = vrot.lane.b32.xlu1 %v6013_v45, %s4545_s30  ;;  %v6037_v4 = vpop.permute.xlu0 %1703 }
 0x286   :  { %7641 = vst [vmem:[#allocation63_spill] sm:$0xff] %v6037_v4 }
 0x287   :  { %1743 = vrot.lane.b32.xlu0 %v1470_v5, %s4546_s29  ;;  %v6043_v22 = vpop.permute.xlu1 %1705 }
 0x288   :  { %7643 = vst [vmem:[#allocation65_spill] sm:$0xff] %v6043_v22 }
 0x289   :  { %1745 = vrot.lane.b32.xlu1 %v1471_v51, %s4546_s29 }
 0x28a   :  { %v4383_v59 = vpop.f32.mrf.mxu0 }
 0x28b   :  { %v1332_v38 = vadd.f32 %v4383_v59, %v5620_v55  ;;  %v6055_v46 = vpop.permute.xlu1 %1549 }
 0x28c   :  { %v1326_v48 = vpop.f32.mrf.mxu0 }
 0x28d   :  { %v6034_v50 = vmax.f32 %v1332_v38, 0.0  ;;  %v1327_v45 = vadd.f32 %v1326_v48, %v5620_v55  ;;  %v6051_v59 = vpop.permute.xlu0 %1707 }
 0x28f   :  { %v6039_v37 = vmax.f32 %v1327_v45, 0.0  ;;  %1591 = vrot.lane.b32.xlu0 %v6034_v50, %s4545_s30  ;;  %v1473_v38 = vmul.f32 %v6034_v50, %v7559_v0  ;;  %v7645_v0 = vld [vmem:[#allocation29_spill] sm:$0xff] }
 0x291   :  { %7642 = vst [vmem:[#allocation64_spill] sm:$0xff] %v6039_v37  ;;  %v1472_v5 = vmul.f32 %v6039_v37, %v7553_v20  ;;  %1589 = vrot.lane.b32.xlu1 %v6039_v37, %s4545_s30  ;;  %v7644_v20 = vld [vmem:[#allocation27_spill] sm:$0xff] }
 0x292   :  { %v4386_v51 = vpop.f32.mrf.mxu0 }
 0x293   :  { %v1342_v45 = vadd.f32 %v4386_v51, %v5620_v55  ;;  %1747 = vrot.lane.b32.xlu0 %v1472_v5, %s4546_s29  ;;  %v1398_v51 = vmul.f32 %v5634_v49, %v7645_v0  ;;  %v1399_v5 = vmul.f32 %v5630_v14, %v5061_v6  ;;  %v7651_v0 = vld [vmem:[#allocation61_spill] sm:$0xff] }
 0x294   :  { %v1336_v48 = vpop.f32.mrf.mxu0 }
 0x295   :  { %v1384_v8 = vmax.f32 %v1342_v45, 0.0  ;;  %v1337_v22 = vadd.f32 %v1336_v48, %v5620_v55  ;;  %1749 = vrot.lane.b32.xlu1 %v1473_v38, %s4546_s29  ;;  %v6067_v45 = vpop.permute.xlu0 %1551  ;;  %v1799_v38 = vsel %vm1797_vm4, %v1398_v51, %v5882_v16  ;;  %v1800_v14 = vsel %vm1797_vm4, %v1399_v5, %v5900_v41 }
 0x296   :  { %v1840_v6 = vsel %vm1838_vm5, %v1799_v38, %v5906_v57  ;;  %v1476_v16 = vmul.f32 %v5634_v49, %v5249_v21  ;;  %v1402_v21 = vmul.f32 %v5687_v28, %v5114_v60  ;;  %v1404_v60 = vmul.f32 %v5703_v56, %v5281_v32 }
 0x297   :  { %v1397_v37 = vmul.f32 %v1384_v8, %v7644_v20  ;;  %v6060_v4 = vmax.f32 %v1337_v22, 0.0  ;;  %1595 = vrot.lane.b32.xlu0 %v1384_v8, %s4545_s30  ;;  %v6083_v20 = vpop.permute.xlu1 %1709  ;;  %v1406_v56 = vmul.f32 %v5719_v39, %v5294_v10  ;;  %v1408_v39 = vmul.f32 %v5735_v12, %v5308_v29 }
 0x298   :  { %v1803_v49 = vsel %vm1797_vm4, %v1402_v21, %v5917_v17 }
 0x299   :  { %v1474_v55 = vmul.f32 %v6060_v4, %v7556_v47  ;;  %1593 = vrot.lane.b32.xlu1 %v6060_v4, %s4545_s30  ;;  %v1798_v22 = vsel %vm1797_vm4, %v1397_v37, %v5878_v1  ;;  %v1475_v47 = vmul.f32 %v1384_v8, %v5194_v61  ;;  %v1400_v37 = vmul.f32 %v5650_v40, %v5072_v54  ;;  %v6105_v41 = vpop.permute.xlu0 %1555 }
 0x29a   :  { %v1839_v48 = vsel %vm1838_vm5, %v1798_v22, %v5885_v26  ;;  %v1841_v26 = vsel %vm1838_vm5, %v1800_v14, %v5911_v13  ;;  %v1401_v1 = vmul.f32 %v5640_v30, %v5260_v25  ;;  %v1805_v13 = vsel %vm1797_vm4, %v1404_v60, %v5937_v15 }
 0x29b   :  { %4411 = vmatprep.mubr.msk.f32.mxu1 %vm1883_vm6, %v1839_v48  ;;  %1751 = vrot.lane.b32.xlu0 %v1474_v55, %s4546_s29  ;;  %v1801_v61 = vsel %vm1797_vm4, %v1400_v37, %v5895_v36  ;;  %v6107_v57 = vpop.permute.xlu1 %1553  ;;  %v1844_v36 = vsel %vm1838_vm5, %v1803_v49, %v5952_v27  ;;  %v1846_v32 = vsel %vm1838_vm5, %v1805_v13, %v5976_v23  ;;  %v7648_v23 = vld [vmem:[#allocation60_spill] sm:$0xff]  ;;  %v7655_v48 = vld [vmem:[#allocation63_spill] sm:$0xff] }
 0x29c   :  { %4412 = vmatmul.mubr.msk.f32.vlgmr.msra.gmra.mxu1 %vm1883_vm6, %v1840_v6  ;;  %v1802_v54 = vsel %vm1797_vm4, %v1401_v1, %v5923_v34  ;;  %v1842_v40 = vsel %vm1838_vm5, %v1801_v61, %v5929_v11  ;;  %v1403_v34 = vmul.f32 %v5682_v62, %v5137_v19  ;;  %v1405_v19 = vmul.f32 %v5700_v2, %v5169_v53  ;;  %v7654_v55 = vld [vmem:[#allocation56_spill] sm:$0xff]  ;;  %v7656_v37 = vld [vmem:[#allocation43_spill] sm:$0xff]  ;;  %v7658_v1 = vld [vmem:[#allocation65_spill] sm:$0xff] }
 0x29d   :  { %1753 = vrot.lane.b32.xlu1 %v1475_v47, %s4546_s29  ;;  %4414 = vmatprep.mubr.msk.f32.mxu1 %vm1883_vm6, %v1841_v26  ;;  %v1843_v25 = vsel %vm1838_vm5, %v1802_v54, %v5932_v24  ;;  %v1712_v62 = vpop.permute.xlu0 %1711  ;;  %v1407_v53 = vmul.f32 %v5716_v18, %v5269_v52  ;;  %v1807_v15 = vsel %vm1797_vm4, %v1406_v56, %v5961_v31  ;;  %v7646_v31 = vld [vmem:[#allocation25_spill] sm:$0xff]  ;;  %v7659_v54 = vld [vmem:[#allocation44_spill] sm:$0xff] }
 0x29e   :  { %v1804_v30 = vsel %vm1797_vm4, %v1403_v34, %v5943_v63  ;;  %v1806_v17 = vsel %vm1797_vm4, %v1405_v19, %v5967_v58  ;;  %v1848_v10 = vsel %vm1838_vm5, %v1807_v15, %v5995_v44  ;;  %v1409_v52 = vmul.f32 %v5732_v9, %v5323_v33  ;;  %v7649_v44 = vld [vmem:[#allocation41_spill] sm:$0xff]  ;;  %v7652_v33 = vld [vmem:[#allocation42_spill] sm:$0xff]  ;;  %v7653_v9 = vld [vmem:[#allocation4_spill] sm:$0xff] }
 0x29f   :  { %1755 = vrot.lane.b32.xlu0 %v1476_v16, %s4546_s29  ;;  %v1845_v24 = vsel %vm1838_vm5, %v1804_v30, %v5955_v35  ;;  %v1714_v28 = vpop.permute.xlu1 %1713  ;;  %v1847_v11 = vsel %vm1838_vm5, %v1806_v17, %v5979_v42  ;;  %v1808_v27 = vsel %vm1797_vm4, %v1407_v53, %v5985_v43  ;;  %v1809_v18 = vsel %vm1797_vm4, %v1408_v39, %v7646_v31  ;;  %v7647_v43 = vld [vmem:[#allocation57_spill] sm:$0xff]  ;;  %v7664_v19 = vld [vmem:[#allocation46_spill] sm:$0xff]  ;;  %v7665_v13 = vld [vmem:[#allocation8_spill] sm:$0xff] }
 0x2a0   :  { %4415 = vmatmul.mubr.msk.f32.gmra.mxu1 %vm1883_vm6, %v1842_v40  ;;  %v1849_v35 = vsel %vm1838_vm5, %v1808_v27, %v6000_v3  ;;  %v1810_v58 = vsel %vm1797_vm4, %v1409_v52, %v7647_v43  ;;  %v1850_v42 = vsel %vm1838_vm5, %v1809_v18, %v7648_v23  ;;  %v7650_v3 = vld [vmem:[#allocation6_spill] sm:$0xff]  ;;  %v1411_v5 = vmul.f32 %v7653_v9, %v7652_v33  ;;  %v7657_v26 = vld [vmem:[#allocation5_spill] sm:$0xff]  ;;  %v7660_v40 = vld [vmem:[#allocation3_spill] sm:$0xff] }
 0x2a1   :  { %4417 = vmatprep.mubr.msk.f32.mxu1 %vm1883_vm6, %v1843_v25  ;;  %v1560_v2 = vpop.permute.xlu0 %1559  ;;  %v1410_v8 = vmul.f32 %v7650_v3, %v7649_v44  ;;  %v1851_v51 = vsel %vm1838_vm5, %v1810_v58, %v7651_v0  ;;  %v1412_v16 = vmul.f32 %v7657_v26, %v7656_v37  ;;  %v1413_v21 = vmul.f32 %v7660_v40, %v7659_v54  ;;  %v7661_v25 = vld [vmem:[#allocation62_spill] sm:$0xff]  ;;  %v7662_v30 = vld [vmem:[#allocation45_spill] sm:$0xff]  ;;  %v7666_v53 = vld [vmem:[#allocation36_spill] sm:$0xff] }
 0x2a2   :  { %v1812_v38 = vsel %vm1797_vm4, %v1411_v5, %v6031_v7  ;;  %v1415_v17 = vmul.f32 %v7665_v13, %v7664_v19  ;;  %v7667_v15 = vld [vmem:[#allocation10_spill] sm:$0xff]  ;;  %v7669_v39 = vld [vmem:[#allocation11_spill] sm:$0xff]  ;;  %v7670_v18 = vld [vmem:[#allocation9_spill] sm:$0xff] }
 0x2a3   :  { %v1558_v63 = vpop.permute.xlu1 %1557  ;;  %v1811_v22 = vsel %vm1797_vm4, %v1410_v8, %v7654_v55  ;;  %v1853_v61 = vsel %vm1838_vm5, %v1812_v38, %v7658_v1  ;;  %v1813_v7 = vsel %vm1797_vm4, %v1412_v16, %v7661_v25  ;;  %v1814_v34 = vsel %vm1797_vm4, %v1413_v21, %v6055_v46  ;;  %v7671_v43 = vld [vmem:[#allocation12_spill] sm:$0xff]  ;;  %v7674_v0 = vld [vmem:[#allocation38_spill] sm:$0xff]  ;;  %v7677_v5 = vld [vmem:[#allocation15_spill] sm:$0xff] }
 0x2a4   :  { %4418 = vmatmul.mubr.msk.f32.gmra.mxu1 %vm1883_vm6, %v1844_v36  ;;  %v1852_v6 = vsel %vm1838_vm5, %v1811_v22, %v7655_v48  ;;  %v1854_v49 = vsel %vm1838_vm5, %v1813_v7, %v6051_v59  ;;  %v7663_v36 = vld [vmem:[#allocation7_spill] sm:$0xff]  ;;  %v1816_v59 = vsel %vm1797_vm4, %v1415_v17, %v6107_v57  ;;  %v1418_v58 = vmul.f32 %v7671_v43, %v7670_v18  ;;  %v7672_v23 = vld [vmem:[#allocation40_spill] sm:$0xff]  ;;  %v7676_v9 = vld [vmem:[#allocation30_spill] sm:$0xff] }
 0x2a5   :  { %4420 = vmatprep.mubr.msk.f32.mxu1 %vm1883_vm6, %v1845_v24  ;;  %v1716_v29 = vpop.permute.xlu0 %1715  ;;  %v1414_v60 = vmul.f32 %v7663_v36, %v7662_v30  ;;  %v1855_v24 = vsel %vm1838_vm5, %v1814_v34, %v6083_v20  ;;  %v1416_v20 = vmul.f32 %v7667_v15, %v7666_v53  ;;  %v1857_v27 = vsel %vm1838_vm5, %v1816_v59, %v1714_v28  ;;  %v7678_v38 = vld [vmem:[#allocation31_spill] sm:$0xff]  ;;  %v7679_v48 = vld [vmem:[#allocation16_spill] sm:$0xff]  ;;  %v7682_v30 = vld [vmem:[#allocation33_spill] sm:$0xff] }
 0x2a6   :  { %v1819_v8 = vsel %vm1797_vm4, %v1418_v58, %v1560_v2  ;;  %v1421_v55 = vmul.f32 %v7677_v5, %v7676_v9  ;;  %v7680_v1 = vld [vmem:[#allocation32_spill] sm:$0xff]  ;;  %v7683_v36 = vld [vmem:[#allocation18_spill] sm:$0xff]  ;;  %v7685_v13 = vld [vmem:[#allocation19_spill] sm:$0xff] }
 0x2a7   :  { %v1718_v12 = vpop.permute.xlu1 %1717  ;;  %v1815_v46 = vsel %vm1797_vm4, %v1414_v60, %v6067_v45  ;;  %v1817_v45 = vsel %vm1797_vm4, %v1416_v20, %v6105_v41  ;;  %v1424_v60 = vmul.f32 %v7683_v36, %v7682_v30  ;;  %v7684_v19 = vld [vmem:[#allocation34_spill] sm:$0xff]  ;;  %v7686_v20 = vld [vmem:[#allocation35_spill] sm:$0xff] }
 0x2a8   :  { %4421 = vmatmul.mubr.msk.f32.gmra.mxu1 %vm1883_vm6, %v1846_v32  ;;  %v1425_v17 = vmul.f32 %v7685_v13, %v7684_v19 }
 0x2a9   :  { %4423 = vmatprep.mubr.msk.f32.mxu1 %vm1883_vm6, %v1847_v11  ;;  %v1856_v11 = vsel %vm1838_vm5, %v1815_v46, %v1712_v62  ;;  %v1858_v62 = vsel %vm1838_vm5, %v1817_v45, %v1716_v29 }
 0x2ac   :  { %4424 = vmatmul.mubr.msk.f32.gmra.mxu1 %vm1883_vm6, %v1848_v10  ;;  %v7668_v10 = vld [vmem:[#allocation28_spill] sm:$0xff] }
 0x2ad   :  { %4426 = vmatprep.mubr.msk.f32.mxu1 %vm1883_vm6, %v1849_v35  ;;  %v1564_v14 = vpop.permute.xlu0 %1563  ;;  %v1417_v35 = vmul.f32 %v7669_v39, %v7668_v10 }
 0x2af   :  { %v1562_v47 = vpop.permute.xlu1 %1561  ;;  %v1818_v57 = vsel %vm1797_vm4, %v1417_v35, %v1558_v63  ;;  %v7688_v35 = vld [vmem:[#allocation37_spill] sm:$0xff] }
 0x2b0   :  { %4427 = vmatmul.mubr.msk.f32.gmra.mxu1 %vm1883_vm6, %v1850_v42  ;;  %v1859_v28 = vsel %vm1838_vm5, %v1818_v57, %v1718_v12  ;;  %v7673_v42 = vld [vmem:[#allocation13_spill] sm:$0xff] }
 0x2b1   :  { %4429 = vmatprep.mubr.msk.f32.mxu1 %vm1883_vm6, %v1851_v51  ;;  %v1720_v32 = vpop.permute.xlu0 %1719  ;;  %v1419_v44 = vmul.f32 %v7673_v42, %v7672_v23  ;;  %v7675_v51 = vld [vmem:[#allocation14_spill] sm:$0xff] }
 0x2b2   :  { %v1860_v63 = vsel %vm1838_vm5, %v1819_v8, %v1720_v32  ;;  %v1420_v33 = vmul.f32 %v7675_v51, %v7674_v0  ;;  %v7691_v23 = vld [vmem:[#allocation22_spill] sm:$0xff]  ;;  %v7693_v8 = vld [vmem:[#allocation23_spill] sm:$0xff] }
 0x2b3   :  { %v1722_v56 = vpop.permute.xlu1 %1721  ;;  %v1820_v41 = vsel %vm1797_vm4, %v1419_v44, %v1562_v47 }
 0x2b4   :  { %4430 = vmatmul.mubr.msk.f32.gmra.mxu1 %vm1883_vm6, %v1852_v6  ;;  %v1861_v12 = vsel %vm1838_vm5, %v1820_v41, %v1722_v56  ;;  %v1821_v2 = vsel %vm1797_vm4, %v1420_v33, %v1564_v14  ;;  %v1422_v6 = vmul.f32 %v7679_v48, %v7678_v38  ;;  %v7696_v48 = vld [vmem:[#allocation49_spill] sm:$0xff] }
 0x2b5   :  { %4432 = vmatprep.mubr.msk.f32.mxu1 %vm1883_vm6, %v1853_v61  ;;  %v7681_v61 = vld [vmem:[#allocation17_spill] sm:$0xff] }
 0x2b6   :  { %v1423_v54 = vmul.f32 %v7681_v61, %v7680_v1 }
 0x2b8   :  { %4433 = vmatmul.mubr.msk.f32.gmra.mxu1 %vm1883_vm6, %v1854_v49 }
 0x2b9   :  { %4435 = vmatprep.mubr.msk.f32.mxu1 %vm1883_vm6, %v1855_v24 }
 0x2bb   :  { %v1566_v52 = vpop.permute.xlu1 %1565 }
 0x2bc   :  { %4436 = vmatmul.mubr.msk.f32.gmra.mxu1 %vm1883_vm6, %v1856_v11  ;;  %v1822_v47 = vsel %vm1797_vm4, %v1421_v55, %v1566_v52  ;;  %v7689_v52 = vld [vmem:[#allocation21_spill] sm:$0xff]  ;;  %v7694_v55 = vld [vmem:[#allocation48_spill] sm:$0xff] }
 0x2bd   :  { %4438 = vmatprep.mubr.msk.f32.mxu1 %vm1883_vm6, %v1857_v27  ;;  %v1724_v31 = vpop.permute.xlu0 %1723  ;;  %v7687_v27 = vld [vmem:[#allocation20_spill] sm:$0xff] }
 0x2be   :  { %v1862_v37 = vsel %vm1838_vm5, %v1821_v2, %v1724_v31  ;;  %v1426_v10 = vmul.f32 %v7687_v27, %v7686_v20  ;;  %v1427_v31 = vmul.f32 %v7689_v52, %v7688_v35 }
 0x2bf   :  { %v1726_v29 = vpop.permute.xlu1 %1725 }
 0x2c0   :  { %4439 = vmatmul.mubr.msk.f32.gmra.mxu1 %vm1883_vm6, %v1858_v62  ;;  %v1863_v16 = vsel %vm1838_vm5, %v1822_v47, %v1726_v29 }
 0x2c1   :  { %4441 = vmatprep.mubr.msk.f32.mxu1 %vm1883_vm6, %v1859_v28  ;;  %v1568_v3 = vpop.permute.xlu0 %1567  ;;  %v7690_v28 = vld [vmem:[#allocation39_spill] sm:$0xff] }
 0x2c2   :  { %v1823_v40 = vsel %vm1797_vm4, %v1422_v6, %v1568_v3  ;;  %v1428_v42 = vmul.f32 %v7691_v23, %v7690_v28  ;;  %v7692_v3 = vld [vmem:[#allocation47_spill] sm:$0xff]  ;;  %v7697_v6 = vld [vmem:[#allocation24_spill] sm:$0xff]  ;;  %v3653_v28 = vld [vmem:[%s7411_s5 + $0x2f0] sm:$0xff] }
 0x2c3   :  { %v1429_v41 = vmul.f32 %v7693_v8, %v7692_v3  ;;  %v1431_v47 = vmul.f32 %v7697_v6, %v7696_v48  ;;  %v3685_v23 = vld [vmem:[%s7411_s5 + $0x3f0] sm:$0xff]  ;;  %v3652_v3 = vld [vmem:[%s7411_s5 + $0x2e8] sm:$0xff] }
 0x2c4   :  { %4442 = vmatmul.mubr.msk.f32.gmra.mxu1 %vm1883_vm6, %v1860_v63  ;;  %v3684_v8 = vld [vmem:[%s7411_s5 + $0x3e8] sm:$0xff]  ;;  %v3665_v48 = vld [vmem:[%s7411_s5 + $0x350] sm:$0xff] }
 0x2c5   :  { %4444 = vmatprep.mubr.msk.f32.mxu1 %vm1883_vm6, %v1861_v12  ;;  %v1572_v22 = vpop.permute.xlu0 %1571  ;;  %v3648_v6 = vld [vmem:[%s7411_s5 + $0x2c8] sm:$0xff] }
 0x2c6   :  { %v1825_v32 = vsel %vm1797_vm4, %v1424_v60, %v1572_v22  ;;  %v7695_v22 = vld [vmem:[#allocation26_spill] sm:$0xff] }
 0x2c7   :  { %v1570_v26 = vpop.permute.xlu1 %1569  ;;  %v1430_v2 = vmul.f32 %v7695_v22, %v7694_v55  ;;  %v3666_v55 = vld [vmem:[%s7411_s5 + $0x358] sm:$0xff]  ;;  %v3649_v22 = vld [vmem:[%s7411_s5 + $0x2d0] sm:$0xff] }
 0x2c8   :  { %4445 = vmatmul.mubr.msk.f32.gmra.mxu1 %vm1883_vm6, %v1862_v37  ;;  %v1824_v25 = vsel %vm1797_vm4, %v1423_v54, %v1570_v26 }
 0x2c9   :  { %4447 = vmatprep.mubr.msk.f32.mxu1 %vm1883_vm6, %v1863_v16  ;;  %v1728_v14 = vpop.permute.xlu0 %1727 }
 0x2ca   :  { %v1864_v21 = vsel %vm1838_vm5, %v1823_v40, %v1728_v14  ;;  %v7698_v14 = vld [vmem:[#allocation50_spill] sm:$0xff] }
 0x2cb   :  { %v1730_v7 = vpop.permute.xlu1 %1729 }
 0x2cc   :  { %v1865_v34 = vsel %vm1838_vm5, %v1824_v25, %v1730_v7  ;;  %4448 = vmatmul.mubr.msk.f32.gmra.mxu1 %vm1883_vm6, %v1864_v21  ;;  %v7699_v21 = vld [vmem:[#allocation59_spill] sm:$0xff] }
 0x2cd   :  { %4450 = vmatprep.mubr.msk.f32.mxu1 %vm1883_vm6, %v1865_v34  ;;  %v1432_v25 = vmul.f32 %v7699_v21, %v7698_v14  ;;  %v7700_v34 = vld [vmem:[#allocation51_spill] sm:$0xff] }
 0x2ce   :  { %v3663_v14 = vld [vmem:[%s7411_s5 + $0x340] sm:$0xff] }
 0x2cf   :  { %v4540_v21 = vld [vmem:[%s7409_s4] sm:$0x3] }
 0x2d1   :  { %v1576_v49 = vpop.permute.xlu0 %1575 }
 0x2d2   :  { %v1827_v45 = vsel %vm1797_vm4, %v1426_v10, %v1576_v49  ;;  %v7701_v49 = vld [vmem:[#allocation58_spill] sm:$0xff] }
 0x2d3   :  { %v1574_v24 = vpop.permute.xlu1 %1573  ;;  %v1433_v30 = vmul.f32 %v7701_v49, %v7700_v34  ;;  %v3678_v34 = vld [vmem:[%s7411_s5 + $0x3b8] sm:$0xff] }
 0x2d4   :  { %v1826_v59 = vsel %vm1797_vm4, %v1425_v17, %v1574_v24  ;;  %v3630_v49 = vld [vmem:[%s7411_s5 + $0x238] sm:$0xff] }
 0x2d5   :  { %v1732_v56 = vpop.permute.xlu0 %1731 }
 0x2d6   :  { %v1866_v46 = vsel %vm1838_vm5, %v1825_v32, %v1732_v56  ;;  %v7702_v56 = vld [vmem:[#allocation53_spill] sm:$0xff] }
 0x2d7   :  { %v1734_v11 = vpop.permute.xlu1 %1733  ;;  %4451 = vmatmul.mubr.msk.f32.gmra.mxu1 %vm1883_vm6, %v1866_v46  ;;  %v7703_v46 = vld [vmem:[#allocation64_spill] sm:$0xff] }
 0x2d8   :  { %v1867_v53 = vsel %vm1838_vm5, %v1826_v59, %v1734_v11  ;;  %v1434_v59 = vmul.f32 %v7703_v46, %v7702_v56  ;;  %v3644_v56 = vld [vmem:[%s7411_s5 + $0x2a8] sm:$0xff] }
 0x2d9   :  { %4453 = vmatprep.mubr.msk.f32.mxu1 %vm1883_vm6, %v1867_v53  ;;  %v7704_v53 = vld [vmem:[#allocation54_spill] sm:$0xff]  ;;  %v3676_v46 = vld [vmem:[%s7411_s5 + $0x3a8] sm:$0xff] }
 0x2dd   :  { %v1580_v15 = vpop.permute.xlu0 %1579 }
 0x2de   :  { %v1829_v63 = vsel %vm1797_vm4, %v1428_v42, %v1580_v15  ;;  %v1435_v15 = vmul.f32 %v6034_v50, %v7704_v53  ;;  %v3637_v42 = vld [vmem:[%s7411_s5 + $0x270] sm:$0xff] }
 0x2df   :  { %v1578_v39 = vpop.permute.xlu1 %1577 }
 0x2e0   :  { %v1828_v18 = vsel %vm1797_vm4, %v1427_v31, %v1578_v39  ;;  %v7705_v39 = vld [vmem:[#allocation55_spill] sm:$0xff] }
 0x2e1   :  { %v1736_v57 = vpop.permute.xlu0 %1735  ;;  %v1436_v35 = vmul.f32 %v6060_v4, %v7705_v39  ;;  %v3654_v4 = vld [vmem:[%s7411_s5 + $0x2f8] sm:$0xff] }
 0x2e2   :  { %v1868_v62 = vsel %vm1838_vm5, %v1827_v45, %v1736_v57  ;;  %3973 = vmatprep.subr.mxu0 %v3654_v4  ;;  %v3674_v4 = vld [vmem:[%s7411_s5 + $0x398] sm:$0xff] }
 0x2e3   :  { %v1738_v43 = vpop.permute.xlu1 %1737  ;;  %4454 = vmatmul.mubr.msk.f32.gmra.mxu1 %vm1883_vm6, %v1868_v62 }
 0x2e4   :  { %v1869_v58 = vsel %vm1838_vm5, %v1828_v18, %v1738_v43  ;;  %v3686_v18 = vld [vmem:[%s7411_s5 + $0x3f8] sm:$0xff] }
 0x2e5   :  { %4456 = vmatprep.mubr.msk.f32.mxu1 %vm1883_vm6, %v1869_v58  ;;  %v3638_v43 = vld [vmem:[%s7411_s5 + $0x278] sm:$0xff]  ;;  %4008 = vmatprep.subr.mxu1 %v3686_v18 }
 0x2e6   :  { %v3670_v58 = vld [vmem:[%s7411_s5 + $0x378] sm:$0xff]  ;;  %3974 = vmatpush3.msra.mxu0 %v3638_v43 }
 0x2e7   :  { %4009 = vmatpush3.msra.mxu1 %v3670_v58  ;;  %3975 = vmatprep.subr.mxu0 %v3653_v28  ;;  %v3626_v43 = vld [vmem:[%s7411_s5 + $0x218] sm:$0xff]  ;;  %v3641_v28 = vld [vmem:[%s7411_s5 + $0x290] sm:$0xff] }
 0x2e8   :  { %4010 = vmatprep.subr.mxu1 %v3685_v23  ;;  %3976 = vmatpush3.msra.mxu0 %v3637_v42  ;;  %v3658_v58 = vld [vmem:[%s7411_s5 + $0x318] sm:$0xff] }
 0x2e9   :  { %3977 = vmatprep.subr.mxu0 %v3652_v3  ;;  %v3625_v3 = vld [vmem:[%s7411_s5 + $0x210] sm:$0xff] }
 0x2eb   :  { %v1582_v44 = vpop.permute.xlu1 %1581 }
 0x2ec   :  { %v1830_v51 = vsel %vm1797_vm4, %v1429_v41, %v1582_v44  ;;  %v3669_v44 = vld [vmem:[%s7411_s5 + $0x370] sm:$0xff]  ;;  %v3636_v41 = vld [vmem:[%s7411_s5 + $0x268] sm:$0xff] }
 0x2ed   :  { %v1740_v29 = vpop.permute.xlu0 %1739  ;;  %4011 = vmatpush3.msra.mxu1 %v3669_v44  ;;  %3978 = vmatpush3.msra.mxu0 %v3636_v41  ;;  %v3673_v44 = vld [vmem:[%s7411_s5 + $0x390] sm:$0xff] }
 0x2ee   :  { %v1870_v0 = vsel %vm1838_vm5, %v1829_v63, %v1740_v29  ;;  %v3668_v63 = vld [vmem:[%s7411_s5 + $0x368] sm:$0xff]  ;;  %4012 = vmatprep.subr.mxu1 %v3684_v8  ;;  %v3651_v29 = vld [vmem:[%s7411_s5 + $0x2e0] sm:$0xff]  ;;  %v3657_v8 = vld [vmem:[%s7411_s5 + $0x310] sm:$0xff] }
 0x2ef   :  { %v1742_v33 = vpop.permute.xlu1 %1741  ;;  %4457 = vmatmul.mubr.msk.f32.gmra.mxu1 %vm1883_vm6, %v1870_v0  ;;  %v3683_v0 = vld [vmem:[%s7411_s5 + $0x3e0] sm:$0xff]  ;;  %3979 = vmatprep.subr.mxu0 %v3651_v29  ;;  %v3672_v29 = vld [vmem:[%s7411_s5 + $0x388] sm:$0xff] }
 0x2f0   :  { %v1871_v12 = vsel %vm1838_vm5, %v1830_v51, %v1742_v33  ;;  %4013 = vmatpush3.msra.mxu1 %v3668_v63  ;;  %v3635_v51 = vld [vmem:[%s7411_s5 + $0x260] sm:$0xff]  ;;  %v3640_v63 = vld [vmem:[%s7411_s5 + $0x288] sm:$0xff] }
 0x2f1   :  { %4459 = vmatprep.mubr.msk.f32.mxu1 %vm1883_vm6, %v1871_v12  ;;  %v1584_v9 = vpop.permute.xlu0 %1583  ;;  %4014 = vmatprep.subr.mxu1 %v3683_v0  ;;  %v3667_v33 = vld [vmem:[%s7411_s5 + $0x360] sm:$0xff]  ;;  %v3650_v12 = vld [vmem:[%s7411_s5 + $0x2d8] sm:$0xff] }
 0x2f2   :  { %v1831_v37 = vsel %vm1797_vm4, %v1430_v2, %v1584_v9  ;;  %3980 = vmatpush3.msra.mxu0 %v3635_v51  ;;  %4015 = vmatpush3.msra.mxu1 %v3667_v33  ;;  %v3682_v9 = vld [vmem:[%s7411_s5 + $0x3d8] sm:$0xff]  ;;  %v3681_v2 = vld [vmem:[%s7411_s5 + $0x3d0] sm:$0xff]  ;;  %v3624_v33 = vld [vmem:[%s7411_s5 + $0x208] sm:$0xff] }
 0x2f3   :  { %3981 = vmatprep.subr.mxu0 %v3650_v12  ;;  %4016 = vmatprep.subr.mxu1 %v3682_v9  ;;  %v3656_v12 = vld [vmem:[%s7411_s5 + $0x308] sm:$0xff] }
 0x2f4   :  { %4017 = vmatpush3.msra.mxu1 %v3666_v55 }
 0x2f5   :  { %v1588_v5 = vpop.permute.xlu0 %1587  ;;  %4018 = vmatprep.subr.mxu1 %v3681_v2 }
 0x2f6   :  { %v1833_v36 = vsel %vm1797_vm4, %v1432_v25, %v1588_v5  ;;  %v3634_v5 = vld [vmem:[%s7411_s5 + $0x258] sm:$0xff]  ;;  %4019 = vmatpush3.msra.mxu1 %v3665_v48 }
 0x2f7   :  { %v1586_v38 = vpop.permute.xlu1 %1585  ;;  %3982 = vmatpush3.msra.mxu0 %v3634_v5 }
 0x2f8   :  { %v1832_v1 = vsel %vm1797_vm4, %v1431_v47, %v1586_v38  ;;  %3983 = vmatprep.subr.mxu0 %v3649_v22  ;;  %v3633_v38 = vld [vmem:[%s7411_s5 + $0x250] sm:$0xff]  ;;  %v3680_v47 = vld [vmem:[%s7411_s5 + $0x3c8] sm:$0xff] }
 0x2f9   :  { %v1744_v26 = vpop.permute.xlu0 %1743  ;;  %3984 = vmatpush3.msra.mxu0 %v3633_v38  ;;  %4020 = vmatprep.subr.mxu1 %v3680_v47 }
 0x2fa   :  { %v1872_v16 = vsel %vm1838_vm5, %v1831_v37, %v1744_v26  ;;  %v3632_v37 = vld [vmem:[%s7411_s5 + $0x248] sm:$0xff]  ;;  %3985 = vmatprep.subr.mxu0 %v3648_v6 }
 0x2fb   :  { %v1746_v61 = vpop.permute.xlu1 %1745  ;;  %4460 = vmatmul.mubr.msk.f32.gmra.mxu1 %vm1883_vm6, %v1872_v16  ;;  %v3664_v26 = vld [vmem:[%s7411_s5 + $0x348] sm:$0xff]  ;;  %3986 = vmatpush3.msra.mxu0 %v3632_v37  ;;  %v3647_v16 = vld [vmem:[%s7411_s5 + $0x2c0] sm:$0xff] }
 0x2fc   :  { %v1873_v54 = vsel %vm1838_vm5, %v1832_v1, %v1746_v61  ;;  %4021 = vmatpush3.msra.mxu1 %v3664_v26  ;;  %v3679_v1 = vld [vmem:[%s7411_s5 + $0x3c0] sm:$0xff]  ;;  %v7706_v61 = vld [vmem:[#allocation52_spill] sm:$0xff]  ;;  %3987 = vmatprep.subr.mxu0 %v3647_v16 }
 0x2fd   :  { %4462 = vmatprep.mubr.msk.f32.mxu1 %vm1883_vm6, %v1873_v54  ;;  %v1881_v54 = vsub.s32 1, %v7706_v61  ;;  %4022 = vmatprep.subr.mxu1 %v3679_v1 }
 0x2fe   :  { %4023 = vmatpush3.msra.mxu1 %v3663_v14 }
 0x2ff   :  { %v6418_v25 = vrot.slane %v4540_v21, %v1881_v54  ;;  %4024 = vmatprep.subr.mxu1 %v3678_v34 }
 0x301   :  { %v1592_v40 = vpop.permute.xlu0 %1591 }
 0x302   :  { %v1835_v20 = vsel %vm1797_vm4, %v1434_v59, %v1592_v40  ;;  %v3631_v40 = vld [vmem:[%s7411_s5 + $0x240] sm:$0xff]  ;;  %v3628_v59 = vld [vmem:[%s7411_s5 + $0x228] sm:$0xff] }
 0x303   :  { %v1590_v7 = vpop.permute.xlu1 %1589  ;;  %3988 = vmatpush3.msra.mxu0 %v3631_v40 }
 0x304   :  { %v1834_v19 = vsel %vm1797_vm4, %v1433_v30, %v1590_v7  ;;  %v3646_v7 = vld [vmem:[%s7411_s5 + $0x2b8] sm:$0xff] }
 0x305   :  { %v1748_v60 = vpop.permute.xlu0 %1747  ;;  %3989 = vmatprep.subr.mxu0 %v3646_v7  ;;  %v3662_v30 = vld [vmem:[%s7411_s5 + $0x338] sm:$0xff] }
 0x306   :  { %v1874_v24 = vsel %vm1838_vm5, %v1833_v36, %v1748_v60  ;;  %v3645_v36 = vld [vmem:[%s7411_s5 + $0x2b0] sm:$0xff]  ;;  %3990 = vmatpush3.msra.mxu0 %v3630_v49  ;;  %4025 = vmatpush3.msra.mxu1 %v3662_v30 }
 0x307   :  { %v1750_v13 = vpop.permute.xlu1 %1749  ;;  %4463 = vmatmul.mubr.msk.f32.gmra.mxu1 %vm1883_vm6, %v1874_v24  ;;  %v3677_v60 = vld [vmem:[%s7411_s5 + $0x3b0] sm:$0xff]  ;;  %3991 = vmatprep.subr.mxu0 %v3645_v36 }
 0x308   :  { %v1875_v17 = vsel %vm1838_vm5, %v1834_v19, %v1750_v13  ;;  %v3629_v19 = vld [vmem:[%s7411_s5 + $0x230] sm:$0xff]  ;;  %4026 = vmatprep.subr.mxu1 %v3677_v60 }
 0x309   :  { %4465 = vmatprep.mubr.msk.f32.mxu1 %vm1883_vm6, %v1875_v17  ;;  %v1596_v32 = vpop.permute.xlu0 %1595  ;;  %v3661_v13 = vld [vmem:[%s7411_s5 + $0x330] sm:$0xff]  ;;  %3992 = vmatpush3.msra.mxu0 %v3629_v19  ;;  %v3671_v19 = vld [vmem:[%s7411_s5 + $0x380] sm:$0xff] }
 0x30a   :  { %v1837_v57 = vsel %vm1797_vm4, %v1436_v35, %v1596_v32  ;;  %4027 = vmatpush3.msra.mxu1 %v3661_v13  ;;  %3993 = vmatprep.subr.mxu0 %v3644_v56  ;;  %v3643_v35 = vld [vmem:[%s7411_s5 + $0x2a0] sm:$0xff] }
 0x30b   :  { %v1594_v11 = vpop.permute.xlu1 %1593  ;;  %4028 = vmatprep.subr.mxu1 %v3676_v46  ;;  %3994 = vmatpush3.msra.mxu0 %v3628_v59  ;;  %v3623_v13 = vld [vmem:[%s7411_s5 + $0x200] sm:$0xff] }
 0x30c   :  { %v1836_v52 = vsel %vm1797_vm4, %v1435_v15, %v1594_v11  ;;  %v3660_v15 = vld [vmem:[%s7411_s5 + $0x328] sm:$0xff]  ;;  %3995 = vmatprep.subr.mxu0 %v3643_v35  ;;  %v3655_v56 = vld [vmem:[%s7411_s5 + $0x300] sm:$0xff] }
 0x30d   :  { %v1752_v27 = vpop.permute.xlu0 %1751  ;;  %4029 = vmatpush3.msra.mxu1 %v3660_v15  ;;  %v2408_v15 = vld [vmem:[%s7411_s5 + $0xf8] sm:$0xff] }
 0x30e   :  { %v1876_v10 = vsel %vm1838_vm5, %v1835_v20, %v1752_v27 }
 0x30f   :  { %v1754_v31 = vpop.permute.xlu1 %1753  ;;  %4466 = vmatmul.mubr.msk.f32.gmra.mxu1 %vm1883_vm6, %v1876_v10 }
 0x310   :  { %v1877_v45 = vsel %vm1838_vm5, %v1836_v52, %v1754_v31  ;;  %v3675_v52 = vld [vmem:[%s7411_s5 + $0x3a0] sm:$0xff] }
 0x311   :  { %4468 = vmatprep.mubr.msk.f32.mxu1 %vm1883_vm6, %v1877_v45  ;;  %v1756_v50 = vpop.permute.xlu0 %1755  ;;  %v3627_v31 = vld [vmem:[%s7411_s5 + $0x220] sm:$0xff]  ;;  %4030 = vmatprep.subr.mxu1 %v3675_v52 }
 0x312   :  { %v1878_v62 = vsel %vm1838_vm5, %v1837_v57, %v1756_v50  ;;  %v3659_v50 = vld [vmem:[%s7411_s5 + $0x320] sm:$0xff]  ;;  %3996 = vmatpush3.msra.mxu0 %v3627_v31 }
 0x313   :  { %4469 = vmatmul.mubr.msk.f32.gmra.mxu1 %vm1883_vm6, %v1878_v62  ;;  %v3642_v62 = vld [vmem:[%s7411_s5 + $0x298] sm:$0xff] }
 0x314   :  { %4031 = vmatpush3.msra.mxu1 %v3659_v50  ;;  %3997 = vmatprep.subr.mxu0 %v3642_v62 }
 0x315   :  { %4032 = vmatprep.subr.mxu1 %v3674_v4  ;;  %3998 = vmatpush3.msra.mxu0 %v3626_v43 }
 0x316   :  { %4033 = vmatpush3.msra.mxu1 %v3658_v58  ;;  %3999 = vmatprep.subr.mxu0 %v3641_v28 }
 0x317   :  { %4034 = vmatprep.subr.mxu1 %v3673_v44  ;;  %4000 = vmatpush3.msra.mxu0 %v3625_v3 }
 0x318   :  { %4035 = vmatpush3.msra.mxu1 %v3657_v8  ;;  %4001 = vmatprep.subr.mxu0 %v3640_v63 }
 0x319   :  { %4036 = vmatprep.subr.mxu1 %v3672_v29  ;;  %4002 = vmatpush3.msra.mxu0 %v3624_v33 }
 0x31a   :  { %4037 = vmatpush3.msra.mxu1 %v3656_v12 }
 0x31b   :  { %4038 = vmatprep.subr.mxu1 %v3671_v19 }
 0x31c   :  { %4039 = vmatpush3.msra.mxu1 %v3655_v56 }
 0x35c   :  { %v4413_v24 = vpop.f32.mrf.mxu1 }
 0x35d   :  { %v2076_v17 = vadd.f32 %v4413_v24, %v6418_v25  ;;  %v3639_v24 = vld [vmem:[%s7411_s5 + $0x280] sm:$0xff] }
 0x35e   :  { %v2070_v32 = vpop.f32.mrf.mxu1  ;;  %4003 = vmatprep.subr.mxu0 %v3639_v24 }
 0x35f   :  { %v2270_v11 = vmax.f32 %v2076_v17, 0.0  ;;  %v2071_v53 = vadd.f32 %v2070_v32, %v6418_v25  ;;  %4004 = vmatpush3.msra.mxu0 %v3623_v13 }
 0x360   :  { %v4416_v20 = vpop.f32.mrf.mxu1  ;;  %4043 = vmatprep.subr.mxu0 %v2408_v15 }
 0x361   :  { %2310 = vst.msk [vmem:[#allocation2 + $0x8] sm:$0xff] %vm1838_vm5, %v2270_v11  ;;  %v2269_v27 = vmax.f32 %v2071_v53, 0.0  ;;  %v2086_v10 = vadd.f32 %v4416_v20, %v6418_v25  ;;  %v2440_v20 = vld [vmem:[%s7411_s5 + $0x1f8] sm:$0xff] }
 0x362   :  { %v2080_v39 = vpop.f32.mrf.mxu1  ;;  %4078 = vmatprep.subr.mxu1 %v2440_v20 }
 0x363   :  { %2309 = vst.msk [vmem:[#allocation2] sm:$0xff] %vm1838_vm5, %v2269_v27  ;;  %v2272_v45 = vmax.f32 %v2086_v10, 0.0  ;;  %v2081_v57 = vadd.f32 %v2080_v39, %v6418_v25 }
 0x364   :  { %v4419_v18 = vpop.f32.mrf.mxu1 }
 0x365   :  { %2312 = vst.msk [vmem:[#allocation2 + $0x18] sm:$0xff] %vm1838_vm5, %v2272_v45  ;;  %v2271_v23 = vmax.f32 %v2081_v57, 0.0  ;;  %v2096_v42 = vadd.f32 %v4419_v18, %v6418_v25 }
 0x366   :  { %v2090_v41 = vpop.f32.mrf.mxu1 }
 0x367   :  { %2311 = vst.msk [vmem:[#allocation2 + $0x10] sm:$0xff] %vm1838_vm5, %v2271_v23  ;;  %v2274_v0 = vmax.f32 %v2096_v42, 0.0  ;;  %v2091_v51 = vadd.f32 %v2090_v41, %v6418_v25 }
 0x368   :  { %v4422_v9 = vpop.f32.mrf.mxu1  ;;  %v2350_v8 = vld [vmem:[#allocation2 + $0x8] sm:$0xff] }
 0x369   :  { %2314 = vst.msk [vmem:[#allocation2 + $0x28] sm:$0xff] %vm1838_vm5, %v2274_v0  ;;  %v2273_v5 = vmax.f32 %v2091_v51, 0.0  ;;  %v2106_v55 = vadd.f32 %v4422_v9, %v6418_v25 }
 0x36a   :  { %v2100_v22 = vpop.f32.mrf.mxu1 }
 0x36b   :  { %2313 = vst.msk [vmem:[#allocation2 + $0x20] sm:$0xff] %vm1838_vm5, %v2273_v5  ;;  %v2276_v2 = vmax.f32 %v2106_v55, 0.0  ;;  %v2101_v38 = vadd.f32 %v2100_v22, %v6418_v25 }
 0x36c   :  { %v4425_v48 = vpop.f32.mrf.mxu1 }
 0x36d   :  { %2316 = vst.msk [vmem:[#allocation2 + $0x38] sm:$0xff] %vm1838_vm5, %v2276_v2  ;;  %v2275_v6 = vmax.f32 %v2101_v38, 0.0  ;;  %v2116_v47 = vadd.f32 %v4425_v48, %v6418_v25  ;;  %v2352_v2 = vld [vmem:[#allocation2 + $0x18] sm:$0xff] }
 0x36e   :  { %v2110_v37 = vpop.f32.mrf.mxu1 }
 0x36f   :  { %2315 = vst.msk [vmem:[#allocation2 + $0x30] sm:$0xff] %vm1838_vm5, %v2275_v6  ;;  %v2278_v26 = vmax.f32 %v2116_v47, 0.0  ;;  %v2111_v16 = vadd.f32 %v2110_v37, %v6418_v25 }
 0x370   :  { %v4428_v1 = vpop.f32.mrf.mxu1  ;;  %v2354_v23 = vld [vmem:[#allocation2 + $0x28] sm:$0xff] }
 0x371   :  { %2318 = vst.msk [vmem:[#allocation2 + $0x48] sm:$0xff] %vm1838_vm5, %v2278_v26  ;;  %v2277_v40 = vmax.f32 %v2111_v16, 0.0  ;;  %v2126_v14 = vadd.f32 %v4428_v1, %v6418_v25  ;;  %v4504_v51 = vpack.i.bf16 %v2354_v23, %v2350_v8 }
 0x372   :  { %v2120_v21 = vpop.f32.mrf.mxu1 }
 0x373   :  { %2317 = vst.msk [vmem:[#allocation2 + $0x40] sm:$0xff] %vm1838_vm5, %v2277_v40  ;;  %v2280_v7 = vmax.f32 %v2126_v14, 0.0  ;;  %v2121_v34 = vadd.f32 %v2120_v21, %v6418_v25 }
 0x374   :  { %v4431_v49 = vpop.f32.mrf.mxu1  ;;  %v2356_v9 = vld [vmem:[#allocation2 + $0x38] sm:$0xff] }
 0x375   :  { %2320 = vst.msk [vmem:[#allocation2 + $0x58] sm:$0xff] %vm1838_vm5, %v2280_v7  ;;  %v2279_v30 = vmax.f32 %v2121_v34, 0.0  ;;  %v2136_v36 = vadd.f32 %v4431_v49, %v6418_v25  ;;  %v4499_v6 = vpack.i.bf16 %v2356_v9, %v2352_v2 }
 0x376   :  { %v2130_v60 = vpop.f32.mrf.mxu1 }
 0x377   :  { %2319 = vst.msk [vmem:[#allocation2 + $0x50] sm:$0xff] %vm1838_vm5, %v2279_v30  ;;  %v2282_v17 = vmax.f32 %v2136_v36, 0.0  ;;  %v2131_v32 = vadd.f32 %v2130_v60, %v6418_v25 }
 0x378   :  { %v4434_v46 = vpop.f32.mrf.mxu1  ;;  %v2442_v62 = vld [vmem:[#allocation2 + $0x48] sm:$0xff] }
 0x379   :  { %2322 = vst.msk [vmem:[#allocation2 + $0x68] sm:$0xff] %vm1838_vm5, %v2282_v17  ;;  %v2281_v59 = vmax.f32 %v2131_v32, 0.0  ;;  %v2146_v11 = vadd.f32 %v4434_v46, %v6418_v25 }
 0x37a   :  { %v2140_v53 = vpop.f32.mrf.mxu1 }
 0x37b   :  { %2321 = vst.msk [vmem:[#allocation2 + $0x60] sm:$0xff] %vm1838_vm5, %v2281_v59  ;;  %v2284_v27 = vmax.f32 %v2146_v11, 0.0  ;;  %v2141_v10 = vadd.f32 %v2140_v53, %v6418_v25 }
 0x37c   :  { %v4437_v39 = vpop.f32.mrf.mxu1  ;;  %v2444_v41 = vld [vmem:[#allocation2 + $0x58] sm:$0xff] }
 0x37d   :  { %2324 = vst.msk [vmem:[#allocation2 + $0x78] sm:$0xff] %vm1838_vm5, %v2284_v27  ;;  %v2283_v35 = vmax.f32 %v2141_v10, 0.0  ;;  %v2156_v52 = vadd.f32 %v4437_v39, %v6418_v25 }
 0x37e   :  { %v2150_v31 = vpop.f32.mrf.mxu1 }
 0x37f   :  { %2323 = vst.msk [vmem:[#allocation2 + $0x70] sm:$0xff] %vm1838_vm5, %v2283_v35  ;;  %v2286_v45 = vmax.f32 %v2156_v52, 0.0  ;;  %v2151_v57 = vadd.f32 %v2150_v31, %v6418_v25 }
 0x380   :  { %v4440_v50 = vpop.f32.mrf.mxu1  ;;  %v2446_v4 = vld [vmem:[#allocation2 + $0x68] sm:$0xff] }
 0x381   :  { %2326 = vst.msk [vmem:[#allocation2 + $0x88] sm:$0xff] %vm1838_vm5, %v2286_v45  ;;  %v2285_v18 = vmax.f32 %v2151_v57, 0.0  ;;  %v2166_v43 = vadd.f32 %v4440_v50, %v6418_v25  ;;  %v4494_v58 = vpack.i.bf16 %v2446_v4, %v2442_v62 }
 0x382   :  { %v2160_v28 = vpop.f32.mrf.mxu1 }
 0x383   :  { %2325 = vst.msk [vmem:[#allocation2 + $0x80] sm:$0xff] %vm1838_vm5, %v2285_v18  ;;  %v2288_v42 = vmax.f32 %v2166_v43, 0.0  ;;  %v2161_v44 = vadd.f32 %v2160_v28, %v6418_v25  ;;  %4495 = vrot.lane.b32.xlu0 %v4494_v58, %s4546_s29 }
 0x384   :  { %v4443_v3 = vpop.f32.mrf.mxu1  ;;  %v2448_v63 = vld [vmem:[#allocation2 + $0x78] sm:$0xff] }
 0x385   :  { %2328 = vst.msk [vmem:[#allocation2 + $0x98] sm:$0xff] %vm1838_vm5, %v2288_v42  ;;  %v2287_v29 = vmax.f32 %v2161_v44, 0.0  ;;  %v2176_v0 = vadd.f32 %v4443_v3, %v6418_v25  ;;  %v4489_v33 = vpack.i.bf16 %v2448_v63, %v2444_v41 }
 0x386   :  { %v2170_v12 = vpop.f32.mrf.mxu1 }
 0x387   :  { %2327 = vst.msk [vmem:[#allocation2 + $0x90] sm:$0xff] %vm1838_vm5, %v2287_v29  ;;  %v2290_v5 = vmax.f32 %v2176_v0, 0.0  ;;  %v2171_v55 = vadd.f32 %v2170_v12, %v6418_v25  ;;  %4505 = vrot.lane.b32.xlu0 %v4504_v51, %s4546_s29  ;;  %4490 = vrot.lane.b32.xlu1 %v4489_v33, %s4546_s29 }
 0x388   :  { %v4446_v22 = vpop.f32.mrf.mxu1  ;;  %v2815_v34 = vld [vmem:[#allocation2 + $0x88] sm:$0xff] }
 0x389   :  { %2330 = vst.msk [vmem:[#allocation2 + $0xa8] sm:$0xff] %vm1838_vm5, %v2290_v5  ;;  %v2289_v38 = vmax.f32 %v2171_v55, 0.0  ;;  %v2186_v48 = vadd.f32 %v4446_v22, %v6418_v25 }
 0x38a   :  { %v2180_v47 = vpop.f32.mrf.mxu1 }
 0x38b   :  { %2329 = vst.msk [vmem:[#allocation2 + $0xa0] sm:$0xff] %vm1838_vm5, %v2289_v38  ;;  %v2292_v37 = vmax.f32 %v2186_v48, 0.0  ;;  %v2181_v26 = vadd.f32 %v2180_v47, %v6418_v25  ;;  %4500 = vrot.lane.b32.xlu1 %v4499_v6, %s4546_s29 }
 0x38c   :  { %v4449_v16 = vpop.f32.mrf.mxu1  ;;  %v2817_v60 = vld [vmem:[#allocation2 + $0x98] sm:$0xff] }
 0x38d   :  { %2332 = vst.msk [vmem:[#allocation2 + $0xb8] sm:$0xff] %vm1838_vm5, %v2292_v37  ;;  %v2291_v1 = vmax.f32 %v2181_v26, 0.0  ;;  %v2196_v40 = vadd.f32 %v4449_v16, %v6418_v25 }
 0x38e   :  { %v2190_v14 = vpop.f32.mrf.mxu1 }
 0x38f   :  { %2331 = vst.msk [vmem:[#allocation2 + $0xb0] sm:$0xff] %vm1838_vm5, %v2291_v1  ;;  %v2294_v21 = vmax.f32 %v2196_v40, 0.0  ;;  %v2191_v7 = vadd.f32 %v2190_v14, %v6418_v25 }
 0x390   :  { %v2819_v49 = vld [vmem:[#allocation2 + $0xa8] sm:$0xff] }
 0x391   :  { %2334 = vst.msk [vmem:[#allocation2 + $0xc8] sm:$0xff] %vm1838_vm5, %v2294_v21  ;;  %v2293_v30 = vmax.f32 %v2191_v7, 0.0  ;;  %v4514_v36 = vpack.i.bf16 %v2819_v49, %v2815_v34 }
 0x393   :  { %2333 = vst.msk [vmem:[#allocation2 + $0xc0] sm:$0xff] %vm1838_vm5, %v2293_v30  ;;  %4515 = vrot.lane.b32.xlu0 %v4514_v36, %s4546_s29 }
 0x394   :  { %v2821_v24 = vld [vmem:[#allocation2 + $0xb8] sm:$0xff] }
 0x395   :  { %v4509_v19 = vpack.i.bf16 %v2821_v24, %v2817_v60  ;;  %v2443_v24 = vld [vmem:[#allocation2 + $0x50] sm:$0xff] }
 0x397   :  { %4510 = vrot.lane.b32.xlu1 %v4509_v19, %s4546_s29  ;;  %v4452_v13 = vpop.f32.mrf.mxu1  ;;  %v2447_v19 = vld [vmem:[#allocation2 + $0x70] sm:$0xff] }
 0x398   :  { %v2206_v17 = vadd.f32 %v4452_v13, %v6418_v25  ;;  %v3049_v35 = vld [vmem:[#allocation2 + $0xc8] sm:$0xff]  ;;  %v2441_v13 = vld [vmem:[#allocation2 + $0x40] sm:$0xff] }
 0x399   :  { %v2200_v32 = vpop.f32.mrf.mxu1 }
 0x39a   :  { %v2296_v56 = vmax.f32 %v2206_v17, 0.0  ;;  %v2201_v46 = vadd.f32 %v2200_v32, %v6418_v25 }
 0x39c   :  { %2336 = vst.msk [vmem:[#allocation2 + $0xd8] sm:$0xff] %vm1838_vm5, %v2296_v56  ;;  %v2295_v59 = vmax.f32 %v2201_v46, 0.0  ;;  %v2445_v56 = vld [vmem:[#allocation2 + $0x60] sm:$0xff]  ;;  %v2392_v46 = vld [vmem:[%s7411_s5 + $0x78] sm:$0xff] }
 0x39e   :  { %2335 = vst.msk [vmem:[#allocation2 + $0xd0] sm:$0xff] %vm1838_vm5, %v2295_v59  ;;  %v2424_v59 = vld [vmem:[%s7411_s5 + $0x178] sm:$0xff] }
 0x3a3   :  { %v4455_v11 = vpop.f32.mrf.mxu1  ;;  %v3051_v18 = vld [vmem:[#allocation2 + $0xd8] sm:$0xff] }
 0x3a4   :  { %v2216_v53 = vadd.f32 %v4455_v11, %v6418_v25 }
 0x3a5   :  { %v2210_v15 = vpop.f32.mrf.mxu1 }
 0x3a6   :  { %v2298_v20 = vmax.f32 %v2216_v53, 0.0  ;;  %v2211_v27 = vadd.f32 %v2210_v15, %v6418_v25 }
 0x3a8   :  { %2338 = vst.msk [vmem:[#allocation2 + $0xe8] sm:$0xff] %vm1838_vm5, %v2298_v20  ;;  %v2297_v10 = vmax.f32 %v2211_v27, 0.0  ;;  %v2407_v20 = vld [vmem:[%s7411_s5 + $0xf0] sm:$0xff] }
 0x3a9   :  { %v2439_v27 = vld [vmem:[%s7411_s5 + $0x1f0] sm:$0xff] }
 0x3aa   :  { %2337 = vst.msk [vmem:[#allocation2 + $0xe0] sm:$0xff] %vm1838_vm5, %v2297_v10 }
 0x3af   :  { %v4458_v39 = vpop.f32.mrf.mxu1  ;;  %v3053_v52 = vld [vmem:[#allocation2 + $0xe8] sm:$0xff] }
 0x3b0   :  { %v2226_v31 = vadd.f32 %v4458_v39, %v6418_v25  ;;  %v4524_v45 = vpack.i.bf16 %v3053_v52, %v3049_v35  ;;  %v2391_v35 = vld [vmem:[%s7411_s5 + $0x70] sm:$0xff] }
 0x3b1   :  { %v2220_v57 = vpop.f32.mrf.mxu1  ;;  %v2423_v52 = vld [vmem:[%s7411_s5 + $0x170] sm:$0xff] }
 0x3b2   :  { %v2300_v50 = vmax.f32 %v2226_v31, 0.0  ;;  %v2221_v62 = vadd.f32 %v2220_v57, %v6418_v25  ;;  %4525 = vrot.lane.b32.xlu0 %v4524_v45, %s4546_s29  ;;  %v2406_v31 = vld [vmem:[%s7411_s5 + $0xe8] sm:$0xff]  ;;  %v2351_v45 = vld [vmem:[#allocation2 + $0x10] sm:$0xff] }
 0x3b3   :  { %v2355_v57 = vld [vmem:[#allocation2 + $0x30] sm:$0xff] }
 0x3b4   :  { %2340 = vst.msk [vmem:[#allocation2 + $0xf8] sm:$0xff] %vm1838_vm5, %v2300_v50  ;;  %v2299_v4 = vmax.f32 %v2221_v62, 0.0  ;;  %v2438_v62 = vld [vmem:[%s7411_s5 + $0x1e8] sm:$0xff] }
 0x3b6   :  { %2339 = vst.msk [vmem:[#allocation2 + $0xf0] sm:$0xff] %vm1838_vm5, %v2299_v4 }
 0x3bb   :  { %v3055_v43 = vld [vmem:[#allocation2 + $0xf8] sm:$0xff]  ;;  %v4461_v58 = vpop.f32.mrf.mxu1 }
 0x3bc   :  { %v4519_v28 = vpack.i.bf16 %v3055_v43, %v3051_v18  ;;  %v2236_v23 = vadd.f32 %v4461_v58, %v6418_v25  ;;  %v2390_v18 = vld [vmem:[%s7411_s5 + $0x68] sm:$0xff]  ;;  %v2405_v58 = vld [vmem:[%s7411_s5 + $0xe0] sm:$0xff] }
 0x3bd   :  { %v2230_v42 = vpop.f32.mrf.mxu1  ;;  %v2422_v43 = vld [vmem:[%s7411_s5 + $0x168] sm:$0xff] }
 0x3be   :  { %4520 = vrot.lane.b32.xlu1 %v4519_v28, %s4546_s29  ;;  %v2302_v44 = vmax.f32 %v2236_v23, 0.0  ;;  %v2231_v3 = vadd.f32 %v2230_v42, %v6418_v25  ;;  %v2437_v28 = vld [vmem:[%s7411_s5 + $0x1e0] sm:$0xff] }
 0x3bf   :  { %v2389_v23 = vld [vmem:[%s7411_s5 + $0x60] sm:$0xff] }
 0x3c0   :  { %2342 = vst.msk [vmem:[#allocation2 + $0x108] sm:$0xff] %vm1838_vm5, %v2302_v44  ;;  %v2301_v8 = vmax.f32 %v2231_v3, 0.0  ;;  %v2421_v42 = vld [vmem:[%s7411_s5 + $0x160] sm:$0xff]  ;;  %v2404_v44 = vld [vmem:[%s7411_s5 + $0xd8] sm:$0xff] }
 0x3c1   :  { %v2436_v3 = vld [vmem:[%s7411_s5 + $0x1d8] sm:$0xff] }
 0x3c2   :  { %2341 = vst.msk [vmem:[#allocation2 + $0x100] sm:$0xff] %vm1838_vm5, %v2301_v8  ;;  %v2388_v8 = vld [vmem:[%s7411_s5 + $0x58] sm:$0xff] }
 0x3c7   :  { %v4464_v41 = vpop.f32.mrf.mxu1  ;;  %v3283_v16 = vld [vmem:[#allocation2 + $0x108] sm:$0xff] }
 0x3c8   :  { %v2246_v63 = vadd.f32 %v4464_v41, %v6418_v25  ;;  %v2420_v41 = vld [vmem:[%s7411_s5 + $0x158] sm:$0xff] }
 0x3c9   :  { %v2240_v29 = vpop.f32.mrf.mxu1 }
 0x3ca   :  { %v2304_v0 = vmax.f32 %v2246_v63, 0.0  ;;  %v2241_v51 = vadd.f32 %v2240_v29, %v6418_v25  ;;  %v2403_v63 = vld [vmem:[%s7411_s5 + $0xd0] sm:$0xff] }
 0x3cb   :  { %v2435_v29 = vld [vmem:[%s7411_s5 + $0x1d0] sm:$0xff] }
 0x3cc   :  { %2344 = vst.msk [vmem:[#allocation2 + $0x118] sm:$0xff] %vm1838_vm5, %v2304_v0  ;;  %v2303_v33 = vmax.f32 %v2241_v51, 0.0  ;;  %v2387_v0 = vld [vmem:[%s7411_s5 + $0x50] sm:$0xff] }
 0x3cd   :  { %v2419_v51 = vld [vmem:[%s7411_s5 + $0x150] sm:$0xff] }
 0x3ce   :  { %2343 = vst.msk [vmem:[#allocation2 + $0x110] sm:$0xff] %vm1838_vm5, %v2303_v33  ;;  %v2402_v33 = vld [vmem:[%s7411_s5 + $0xc8] sm:$0xff] }
 0x3cf   :  { %v4467_v12 = vpop.f32.mrf.mxu1 }
 0x3d0   :  { %v2256_v9 = vadd.f32 %v4467_v12, %v6418_v25  ;;  %v2434_v12 = vld [vmem:[%s7411_s5 + $0x1c8] sm:$0xff] }
 0x3d1   :  { %v2250_v5 = vpop.f32.mrf.mxu1 }
 0x3d2   :  { %v2306_v55 = vmax.f32 %v2256_v9, 0.0  ;;  %v2251_v22 = vadd.f32 %v2250_v5, %v6418_v25  ;;  %v2386_v9 = vld [vmem:[%s7411_s5 + $0x48] sm:$0xff] }
 0x3d3   :  { %v4470_v2 = vpop.f32.mrf.mxu1  ;;  %v3285_v14 = vld [vmem:[#allocation2 + $0x118] sm:$0xff]  ;;  %v2418_v5 = vld [vmem:[%s7411_s5 + $0x148] sm:$0xff] }
 0x3d4   :  { %2346 = vst.msk [vmem:[#allocation2 + $0x128] sm:$0xff] %vm1838_vm5, %v2306_v55  ;;  %v2305_v38 = vmax.f32 %v2251_v22, 0.0  ;;  %v2266_v48 = vadd.f32 %v4470_v2, %v6418_v25  ;;  %v2401_v55 = vld [vmem:[%s7411_s5 + $0xc0] sm:$0xff] }
 0x3d5   :  { %v2260_v6 = vpop.f32.mrf.mxu1  ;;  %v2433_v22 = vld [vmem:[%s7411_s5 + $0x1c0] sm:$0xff] }
 0x3d6   :  { %2345 = vst.msk [vmem:[#allocation2 + $0x120] sm:$0xff] %vm1838_vm5, %v2305_v38  ;;  %v2308_v47 = vmax.f32 %v2266_v48, 0.0  ;;  %v2261_v37 = vadd.f32 %v2260_v6, %v6418_v25  ;;  %v2385_v2 = vld [vmem:[%s7411_s5 + $0x40] sm:$0xff]  ;;  %v2400_v48 = vld [vmem:[%s7411_s5 + $0xb8] sm:$0xff] }
 0x3d7   :  { %v2417_v38 = vld [vmem:[%s7411_s5 + $0x140] sm:$0xff]  ;;  %v2432_v6 = vld [vmem:[%s7411_s5 + $0x1b8] sm:$0xff] }
 0x3d8   :  { %2348 = vst.msk [vmem:[#allocation2 + $0x138] sm:$0xff] %vm1838_vm5, %v2308_v47  ;;  %v2307_v26 = vmax.f32 %v2261_v37, 0.0  ;;  %v2384_v47 = vld [vmem:[%s7411_s5 + $0x38] sm:$0xff] }
 0x3d9   :  { %v2416_v37 = vld [vmem:[%s7411_s5 + $0x138] sm:$0xff] }
 0x3da   :  { %2347 = vst.msk [vmem:[#allocation2 + $0x130] sm:$0xff] %vm1838_vm5, %v2307_v26  ;;  %v2399_v26 = vld [vmem:[%s7411_s5 + $0xb0] sm:$0xff] }
 0x3db   :  { %v3287_v1 = vld [vmem:[#allocation2 + $0x128] sm:$0xff] }
 0x3dc   :  { %v4534_v40 = vpack.i.bf16 %v3287_v1, %v3283_v16  ;;  %v2431_v16 = vld [vmem:[%s7411_s5 + $0x1b0] sm:$0xff] }
 0x3dd   :  { %v2383_v1 = vld [vmem:[%s7411_s5 + $0x30] sm:$0xff] }
 0x3de   :  { %4535 = vrot.lane.b32.xlu0 %v4534_v40, %s4546_s29  ;;  %v2415_v40 = vld [vmem:[%s7411_s5 + $0x130] sm:$0xff] }
 0x3df   :  { %v3289_v21 = vld [vmem:[#allocation2 + $0x138] sm:$0xff] }
 0x3e0   :  { %v4529_v7 = vpack.i.bf16 %v3289_v21, %v3285_v14  ;;  %v2398_v14 = vld [vmem:[%s7411_s5 + $0xa8] sm:$0xff] }
 0x3e1   :  { %v2430_v21 = vld [vmem:[%s7411_s5 + $0x1a8] sm:$0xff] }
 0x3e2   :  { %4530 = vrot.lane.b32.xlu1 %v4529_v7, %s4546_s29  ;;  %v2382_v7 = vld [vmem:[%s7411_s5 + $0x28] sm:$0xff] }
 0x3f5   :  { %v4496_v34 = vpop.permute.xlu0 %4495 }
 0x3f6   :  { %v4498_v49 = vunpack.i.h.bf16 %v4496_v34  ;;  %v4497_v30 = vunpack.i.l.bf16 %v4496_v34  ;;  %v2414_v34 = vld [vmem:[%s7411_s5 + $0x128] sm:$0xff] }
 0x3f8   :  { %v2465_v53 = vsel %vm1838_vm5, %v2441_v13, %v4497_v30  ;;  %v2467_v15 = vsel %vm1838_vm5, %v2445_v56, %v4498_v49  ;;  %v2397_v49 = vld [vmem:[%s7411_s5 + $0xa0] sm:$0xff]  ;;  %v2412_v13 = vld [vmem:[%s7411_s5 + $0x118] sm:$0xff] }
 0x3f9   :  { %v4491_v36 = vpop.permute.xlu1 %4490  ;;  %v2429_v30 = vld [vmem:[%s7411_s5 + $0x1a0] sm:$0xff]  ;;  %v4506_v56 = vpop.permute.xlu0 %4505 }
 0x3fa   :  { %v4493_v25 = vunpack.i.h.bf16 %v4491_v36  ;;  %v4492_v60 = vunpack.i.l.bf16 %v4491_v36  ;;  %v2381_v36 = vld [vmem:[%s7411_s5 + $0x20] sm:$0xff] }
 0x3fc   :  { %v2466_v17 = vsel %vm1838_vm5, %v2443_v24, %v4492_v60  ;;  %v2468_v32 = vsel %vm1838_vm5, %v2447_v19, %v4493_v25  ;;  %v2413_v25 = vld [vmem:[%s7411_s5 + $0x120] sm:$0xff]  ;;  %v2396_v60 = vld [vmem:[%s7411_s5 + $0x98] sm:$0xff] }
 0x3fd   :  { %v4501_v11 = vpop.permute.xlu1 %4500  ;;  %2598 = vmatprep.mubr.f32.mxu0 %v2466_v17  ;;  %2668 = vmatprep.mubr.f32.mxu1 %v2468_v32  ;;  %v2428_v24 = vld [vmem:[%s7411_s5 + $0x198] sm:$0xff]  ;;  %v2395_v17 = vld [vmem:[%s7411_s5 + $0x90] sm:$0xff] }
 0x3fe   :  { %v4503_v10 = vunpack.i.h.bf16 %v4501_v11  ;;  %v4502_v39 = vunpack.i.l.bf16 %v4501_v11  ;;  %2599 = vmatmul.mubr.f32.vlgmr.msra.gmra.mxu0 %v2465_v53  ;;  %2669 = vmatmul.mubr.f32.vlgmr.msra.gmra.mxu1 %v2467_v15  ;;  %v2380_v19 = vld [vmem:[%s7411_s5 + $0x18] sm:$0xff]  ;;  %v2427_v32 = vld [vmem:[%s7411_s5 + $0x190] sm:$0xff]  ;;  %v2394_v11 = vld [vmem:[%s7411_s5 + $0x88] sm:$0xff] }
 0x3ff   :  { %4044 = vmatpush3.msra.mxu0 %v2392_v46  ;;  %4079 = vmatpush3.msra.mxu1 %v2424_v59  ;;  %v2379_v46 = vld [vmem:[%s7411_s5 + $0x10] sm:$0xff]  ;;  %v2426_v53 = vld [vmem:[%s7411_s5 + $0x188] sm:$0xff] }
 0x400   :  { %4045 = vmatprep.subr.mxu0 %v2407_v20  ;;  %4080 = vmatprep.subr.mxu1 %v2439_v27  ;;  %v2374_v50 = vsel %vm1838_vm5, %v2351_v45, %v4502_v39  ;;  %v2376_v4 = vsel %vm1838_vm5, %v2355_v57, %v4503_v10  ;;  %v2411_v59 = vld [vmem:[%s7411_s5 + $0x110] sm:$0xff]  ;;  %v2378_v20 = vld [vmem:[%s7411_s5 + $0x8] sm:$0xff]  ;;  %v4508_v10 = vunpack.i.h.bf16 %v4506_v56  ;;  %v4507_v39 = vunpack.i.l.bf16 %v4506_v56  ;;  %v2409_v45 = vld [vmem:[%s7411_s5 + $0x100] sm:$0xff] }
 0x401   :  { %4046 = vmatpush3.msra.mxu0 %v2391_v35  ;;  %4081 = vmatpush3.msra.mxu1 %v2423_v52  ;;  %v2410_v27 = vld [vmem:[%s7411_s5 + $0x108] sm:$0xff]  ;;  %v2393_v35 = vld [vmem:[%s7411_s5 + $0x80] sm:$0xff]  ;;  %v3693_v56 = vld [vmem:[%s7411_s5 + $0x430] sm:$0xff] }
 0x402   :  { %4047 = vmatprep.subr.mxu0 %v2406_v31  ;;  %2738 = vmatprep.mubr.f32.mxu0 %v2374_v50  ;;  %v2425_v52 = vld [vmem:[%s7411_s5 + $0x180] sm:$0xff] }
 0x403   :  { %4082 = vmatprep.subr.mxu1 %v2438_v62  ;;  %2808 = vmatprep.mubr.f32.mxu1 %v2376_v4  ;;  %v2377_v31 = vld [vmem:[%s7411_s5] sm:$0xff] }
 0x404   :  { %4048 = vmatpush3.msra.mxu0 %v2390_v18  ;;  %4083 = vmatpush3.msra.mxu1 %v2422_v43  ;;  %v2349_v50 = vld [vmem:[#allocation2] sm:$0xff]  ;;  %v3718_v18 = vld [vmem:[%s7411_s5 + $0x4f8] sm:$0xff] }
 0x405   :  { %4049 = vmatprep.subr.mxu0 %v2405_v58  ;;  %4084 = vmatprep.subr.mxu1 %v2437_v28  ;;  %v2353_v4 = vld [vmem:[#allocation2 + $0x20] sm:$0xff]  ;;  %v3750_v43 = vld [vmem:[%s7411_s5 + $0x5f8] sm:$0xff]  ;;  %v2373_v58 = vsel %vm1838_vm5, %v2349_v50, %v4507_v39  ;;  %v3737_v50 = vld [vmem:[%s7411_s5 + $0x590] sm:$0xff] }
 0x406   :  { %4050 = vmatpush3.msra.mxu0 %v2389_v23  ;;  %4085 = vmatpush3.msra.mxu1 %v2421_v42  ;;  %v2375_v28 = vsel %vm1838_vm5, %v2353_v4, %v4508_v10  ;;  %v3702_v23 = vld [vmem:[%s7411_s5 + $0x478] sm:$0xff]  ;;  %v2816_v42 = vld [vmem:[#allocation2 + $0x90] sm:$0xff]  ;;  %v3691_v10 = vld [vmem:[%s7411_s5 + $0x420] sm:$0xff] }
 0x407   :  { %4051 = vmatprep.subr.mxu0 %v2404_v44  ;;  %4086 = vmatprep.subr.mxu1 %v2436_v3  ;;  %v3734_v44 = vld [vmem:[%s7411_s5 + $0x578] sm:$0xff]  ;;  %v3723_v39 = vld [vmem:[%s7411_s5 + $0x520] sm:$0xff]  ;;  %v3689_v4 = vld [vmem:[%s7411_s5 + $0x410] sm:$0xff] }
 0x408   :  { %4052 = vmatpush3.msra.mxu0 %v2388_v8  ;;  %4087 = vmatpush3.msra.mxu1 %v2420_v41  ;;  %v2820_v8 = vld [vmem:[#allocation2 + $0xb0] sm:$0xff] }
 0x409   :  { %4053 = vmatprep.subr.mxu0 %v2403_v63  ;;  %4088 = vmatprep.subr.mxu1 %v2435_v29  ;;  %v4511_v15 = vpop.permute.xlu1 %4510  ;;  %v3717_v41 = vld [vmem:[%s7411_s5 + $0x4f0] sm:$0xff] }
 0x40a   :  { %4054 = vmatpush3.msra.mxu0 %v2387_v0  ;;  %4089 = vmatpush3.msra.mxu1 %v2419_v51  ;;  %v4512_v57 = vunpack.i.l.bf16 %v4511_v15  ;;  %v4513_v62 = vunpack.i.h.bf16 %v4511_v15  ;;  %v3749_v63 = vld [vmem:[%s7411_s5 + $0x5f0] sm:$0xff]  ;;  %v3724_v15 = vld [vmem:[%s7411_s5 + $0x528] sm:$0xff] }
 0x40b   :  { %4055 = vmatprep.subr.mxu0 %v2402_v33  ;;  %4090 = vmatprep.subr.mxu1 %v2434_v12  ;;  %v3701_v0 = vld [vmem:[%s7411_s5 + $0x470] sm:$0xff]  ;;  %v3716_v33 = vld [vmem:[%s7411_s5 + $0x4e8] sm:$0xff] }
 0x40c   :  { %4056 = vmatpush3.msra.mxu0 %v2386_v9  ;;  %4091 = vmatpush3.msra.mxu1 %v2418_v5  ;;  %v2839_v3 = vsel %vm1838_vm5, %v2816_v42, %v4512_v57  ;;  %v2841_v29 = vsel %vm1838_vm5, %v2820_v8, %v4513_v62  ;;  %v3733_v51 = vld [vmem:[%s7411_s5 + $0x570] sm:$0xff]  ;;  %v3748_v12 = vld [vmem:[%s7411_s5 + $0x5e8] sm:$0xff]  ;;  %v4516_v62 = vpop.permute.xlu0 %4515  ;;  %v3703_v8 = vld [vmem:[%s7411_s5 + $0x480] sm:$0xff] }
 0x40d   :  { %4057 = vmatprep.subr.mxu0 %v2401_v55  ;;  %4092 = vmatprep.subr.mxu1 %v2433_v22  ;;  %v3700_v9 = vld [vmem:[%s7411_s5 + $0x468] sm:$0xff]  ;;  %v3715_v55 = vld [vmem:[%s7411_s5 + $0x4e0] sm:$0xff]  ;;  %v3705_v57 = vld [vmem:[%s7411_s5 + $0x490] sm:$0xff] }
 0x40e   :  { %4058 = vmatpush3.msra.mxu0 %v2385_v2  ;;  %4093 = vmatpush3.msra.mxu1 %v2417_v38  ;;  %v3732_v5 = vld [vmem:[%s7411_s5 + $0x568] sm:$0xff]  ;;  %v3747_v22 = vld [vmem:[%s7411_s5 + $0x5e0] sm:$0xff] }
 0x40f   :  { %4059 = vmatprep.subr.mxu0 %v2400_v48  ;;  %4094 = vmatprep.subr.mxu1 %v2432_v6  ;;  %v3699_v2 = vld [vmem:[%s7411_s5 + $0x460] sm:$0xff]  ;;  %v3714_v48 = vld [vmem:[%s7411_s5 + $0x4d8] sm:$0xff]  ;;  %v3720_v42 = vld [vmem:[%s7411_s5 + $0x508] sm:$0xff] }
 0x410   :  { %4060 = vmatpush3.msra.mxu0 %v2384_v47  ;;  %4095 = vmatpush3.msra.mxu1 %v2416_v37  ;;  %v3731_v38 = vld [vmem:[%s7411_s5 + $0x560] sm:$0xff]  ;;  %v3746_v6 = vld [vmem:[%s7411_s5 + $0x5d8] sm:$0xff] }
 0x411   :  { %4061 = vmatprep.subr.mxu0 %v2399_v26  ;;  %4096 = vmatprep.subr.mxu1 %v2431_v16  ;;  %v3698_v47 = vld [vmem:[%s7411_s5 + $0x458] sm:$0xff]  ;;  %v3713_v26 = vld [vmem:[%s7411_s5 + $0x4d0] sm:$0xff] }
 0x412   :  { %4062 = vmatpush3.msra.mxu0 %v2383_v1  ;;  %4097 = vmatpush3.msra.mxu1 %v2415_v40  ;;  %v3730_v37 = vld [vmem:[%s7411_s5 + $0x558] sm:$0xff]  ;;  %v3745_v16 = vld [vmem:[%s7411_s5 + $0x5d0] sm:$0xff] }
 0x413   :  { %4063 = vmatprep.subr.mxu0 %v2398_v14  ;;  %4098 = vmatprep.subr.mxu1 %v2430_v21  ;;  %v3697_v1 = vld [vmem:[%s7411_s5 + $0x450] sm:$0xff]  ;;  %v3712_v14 = vld [vmem:[%s7411_s5 + $0x4c8] sm:$0xff] }
 0x414   :  { %4064 = vmatpush3.msra.mxu0 %v2382_v7  ;;  %4099 = vmatpush3.msra.mxu1 %v2414_v34  ;;  %v3729_v40 = vld [vmem:[%s7411_s5 + $0x550] sm:$0xff]  ;;  %v3744_v21 = vld [vmem:[%s7411_s5 + $0x5c8] sm:$0xff] }
 0x415   :  { %4065 = vmatprep.subr.mxu0 %v2397_v49  ;;  %4100 = vmatprep.subr.mxu1 %v2429_v30  ;;  %v3696_v7 = vld [vmem:[%s7411_s5 + $0x448] sm:$0xff]  ;;  %v3711_v49 = vld [vmem:[%s7411_s5 + $0x4c0] sm:$0xff] }
 0x416   :  { %4066 = vmatpush3.msra.mxu0 %v2381_v36  ;;  %4101 = vmatpush3.msra.mxu1 %v2413_v25  ;;  %v3728_v34 = vld [vmem:[%s7411_s5 + $0x548] sm:$0xff]  ;;  %v3743_v30 = vld [vmem:[%s7411_s5 + $0x5c0] sm:$0xff] }
 0x417   :  { %4067 = vmatprep.subr.mxu0 %v2396_v60  ;;  %4102 = vmatprep.subr.mxu1 %v2428_v24  ;;  %v3695_v36 = vld [vmem:[%s7411_s5 + $0x440] sm:$0xff]  ;;  %v3710_v60 = vld [vmem:[%s7411_s5 + $0x4b8] sm:$0xff] }
 0x418   :  { %4068 = vmatpush3.msra.mxu0 %v2380_v19  ;;  %4103 = vmatpush3.msra.mxu1 %v2412_v13  ;;  %v3727_v25 = vld [vmem:[%s7411_s5 + $0x540] sm:$0xff]  ;;  %v3742_v24 = vld [vmem:[%s7411_s5 + $0x5b8] sm:$0xff] }
 0x419   :  { %4069 = vmatprep.subr.mxu0 %v2395_v17  ;;  %4104 = vmatprep.subr.mxu1 %v2427_v32  ;;  %v3694_v19 = vld [vmem:[%s7411_s5 + $0x438] sm:$0xff]  ;;  %v3709_v17 = vld [vmem:[%s7411_s5 + $0x4b0] sm:$0xff] }
 0x41a   :  { %4070 = vmatpush3.msra.mxu0 %v2379_v46  ;;  %4105 = vmatpush3.msra.mxu1 %v2411_v59  ;;  %v3726_v13 = vld [vmem:[%s7411_s5 + $0x538] sm:$0xff]  ;;  %v3741_v32 = vld [vmem:[%s7411_s5 + $0x5b0] sm:$0xff]  ;;  %v3708_v59 = vld [vmem:[%s7411_s5 + $0x4a8] sm:$0xff] }
 0x41b   :  { %4071 = vmatprep.subr.mxu0 %v2394_v11  ;;  %4106 = vmatprep.subr.mxu1 %v2426_v53  ;;  %v3725_v46 = vld [vmem:[%s7411_s5 + $0x530] sm:$0xff]  ;;  %v3740_v11 = vld [vmem:[%s7411_s5 + $0x5a8] sm:$0xff] }
 0x41c   :  { %4072 = vmatpush3.msra.mxu0 %v2378_v20  ;;  %4107 = vmatpush3.msra.mxu1 %v2410_v27  ;;  %v3692_v53 = vld [vmem:[%s7411_s5 + $0x428] sm:$0xff]  ;;  %v3707_v20 = vld [vmem:[%s7411_s5 + $0x4a0] sm:$0xff] }
 0x41d   :  { %4073 = vmatprep.subr.mxu0 %v2393_v35  ;;  %4108 = vmatprep.subr.mxu1 %v2425_v52  ;;  %v3739_v27 = vld [vmem:[%s7411_s5 + $0x5a0] sm:$0xff]  ;;  %v3706_v35 = vld [vmem:[%s7411_s5 + $0x498] sm:$0xff] }
 0x41e   :  { %4074 = vmatpush3.msra.mxu0 %v2377_v31  ;;  %4109 = vmatpush3.msra.mxu1 %v2409_v45  ;;  %v3738_v52 = vld [vmem:[%s7411_s5 + $0x598] sm:$0xff] }
 0x41f   :  { %2739 = vmatmul.mubr.f32.vlgmr.msra.gmra.mxu0 %v2373_v58  ;;  %2809 = vmatmul.mubr.f32.vlgmr.msra.gmra.mxu1 %v2375_v28  ;;  %v3690_v31 = vld [vmem:[%s7411_s5 + $0x418] sm:$0xff]  ;;  %v3736_v58 = vld [vmem:[%s7411_s5 + $0x588] sm:$0xff] }
 0x420   :  { %4113 = vmatprep.subr.mxu0 %v3718_v18  ;;  %4148 = vmatprep.subr.mxu1 %v3750_v43  ;;  %v3722_v45 = vld [vmem:[%s7411_s5 + $0x518] sm:$0xff]  ;;  %v3721_v18 = vld [vmem:[%s7411_s5 + $0x510] sm:$0xff]  ;;  %v3704_v43 = vld [vmem:[%s7411_s5 + $0x488] sm:$0xff] }
 0x421   :  { %4114 = vmatpush3.msra.mxu0 %v3702_v23  ;;  %2971 = vmatprep.mubr.f32.mxu0 %v2839_v3  ;;  %v3688_v23 = vld [vmem:[%s7411_s5 + $0x408] sm:$0xff]  ;;  %v4517_v3 = vunpack.i.l.bf16 %v4516_v62 }
 0x422   :  { %4149 = vmatpush3.msra.mxu1 %v3734_v44  ;;  %3041 = vmatprep.mubr.f32.mxu1 %v2841_v29  ;;  %v4518_v44 = vunpack.i.h.bf16 %v4516_v62  ;;  %v3719_v29 = vld [vmem:[%s7411_s5 + $0x500] sm:$0xff]  ;;  %v3757_v62 = vld [vmem:[%s7411_s5 + $0x630] sm:$0xff] }
 0x423   :  { %4115 = vmatprep.subr.mxu0 %v3717_v41  ;;  %4150 = vmatprep.subr.mxu1 %v3749_v63  ;;  %v3735_v41 = vld [vmem:[%s7411_s5 + $0x580] sm:$0xff] }
 0x424   :  { %4116 = vmatpush3.msra.mxu0 %v3701_v0  ;;  %4151 = vmatpush3.msra.mxu1 %v3733_v51  ;;  %v3687_v63 = vld [vmem:[%s7411_s5 + $0x400] sm:$0xff] }
 0x425   :  { %4117 = vmatprep.subr.mxu0 %v3716_v33  ;;  %4152 = vmatprep.subr.mxu1 %v3748_v12  ;;  %v2814_v51 = vld [vmem:[#allocation2 + $0x80] sm:$0xff] }
 0x426   :  { %4118 = vmatpush3.msra.mxu0 %v3700_v9  ;;  %4153 = vmatpush3.msra.mxu1 %v3732_v5  ;;  %v2818_v12 = vld [vmem:[#allocation2 + $0xa0] sm:$0xff]  ;;  %v3782_v9 = vld [vmem:[%s7411_s5 + $0x6f8] sm:$0xff] }
 0x427   :  { %4119 = vmatprep.subr.mxu0 %v3715_v55  ;;  %4154 = vmatprep.subr.mxu1 %v3747_v22  ;;  %v3814_v5 = vld [vmem:[%s7411_s5 + $0x7f8] sm:$0xff]  ;;  %v2838_v55 = vsel %vm1838_vm5, %v2814_v51, %v4517_v3  ;;  %v2840_v22 = vsel %vm1838_vm5, %v2818_v12, %v4518_v44  ;;  %v3755_v44 = vld [vmem:[%s7411_s5 + $0x620] sm:$0xff]  ;;  %v3801_v51 = vld [vmem:[%s7411_s5 + $0x790] sm:$0xff] }
 0x428   :  { %4120 = vmatpush3.msra.mxu0 %v3699_v2  ;;  %4155 = vmatpush3.msra.mxu1 %v3731_v38  ;;  %v3766_v2 = vld [vmem:[%s7411_s5 + $0x678] sm:$0xff]  ;;  %v3050_v38 = vld [vmem:[#allocation2 + $0xd0] sm:$0xff]  ;;  %v3787_v3 = vld [vmem:[%s7411_s5 + $0x720] sm:$0xff] }
 0x429   :  { %4121 = vmatprep.subr.mxu0 %v3714_v48  ;;  %4156 = vmatprep.subr.mxu1 %v3746_v6  ;;  %v3798_v48 = vld [vmem:[%s7411_s5 + $0x778] sm:$0xff]  ;;  %v3753_v12 = vld [vmem:[%s7411_s5 + $0x610] sm:$0xff] }
 0x42a   :  { %4122 = vmatpush3.msra.mxu0 %v3698_v47  ;;  %4157 = vmatpush3.msra.mxu1 %v3730_v37  ;;  %v3054_v47 = vld [vmem:[#allocation2 + $0xf0] sm:$0xff] }
 0x42b   :  { %4123 = vmatprep.subr.mxu0 %v3713_v26  ;;  %4158 = vmatprep.subr.mxu1 %v3745_v16  ;;  %v3781_v37 = vld [vmem:[%s7411_s5 + $0x6f0] sm:$0xff] }
 0x42c   :  { %4124 = vmatpush3.msra.mxu0 %v3697_v1  ;;  %4159 = vmatpush3.msra.mxu1 %v3729_v40  ;;  %v3813_v26 = vld [vmem:[%s7411_s5 + $0x7f0] sm:$0xff] }
 0x42d   :  { %4125 = vmatprep.subr.mxu0 %v3712_v14  ;;  %4160 = vmatprep.subr.mxu1 %v3744_v21  ;;  %v3765_v1 = vld [vmem:[%s7411_s5 + $0x670] sm:$0xff]  ;;  %v3780_v14 = vld [vmem:[%s7411_s5 + $0x6e8] sm:$0xff] }
 0x42e   :  { %4126 = vmatpush3.msra.mxu0 %v3696_v7  ;;  %4161 = vmatpush3.msra.mxu1 %v3728_v34  ;;  %v3797_v40 = vld [vmem:[%s7411_s5 + $0x770] sm:$0xff]  ;;  %v3812_v21 = vld [vmem:[%s7411_s5 + $0x7e8] sm:$0xff] }
 0x42f   :  { %4127 = vmatprep.subr.mxu0 %v3711_v49  ;;  %4162 = vmatprep.subr.mxu1 %v3743_v30  ;;  %v3764_v7 = vld [vmem:[%s7411_s5 + $0x668] sm:$0xff]  ;;  %v3779_v49 = vld [vmem:[%s7411_s5 + $0x6e0] sm:$0xff] }
 0x430   :  { %4128 = vmatpush3.msra.mxu0 %v3695_v36  ;;  %4163 = vmatpush3.msra.mxu1 %v3727_v25  ;;  %v4521_v28 = vpop.permute.xlu1 %4520  ;;  %v3796_v34 = vld [vmem:[%s7411_s5 + $0x768] sm:$0xff]  ;;  %v3811_v30 = vld [vmem:[%s7411_s5 + $0x7e0] sm:$0xff] }
 0x431   :  { %4129 = vmatprep.subr.mxu0 %v3710_v60  ;;  %4164 = vmatprep.subr.mxu1 %v3742_v24  ;;  %v4522_v0 = vunpack.i.l.bf16 %v4521_v28  ;;  %v4523_v33 = vunpack.i.h.bf16 %v4521_v28  ;;  %v3763_v36 = vld [vmem:[%s7411_s5 + $0x660] sm:$0xff]  ;;  %v3778_v60 = vld [vmem:[%s7411_s5 + $0x6d8] sm:$0xff]  ;;  %v3788_v28 = vld [vmem:[%s7411_s5 + $0x728] sm:$0xff] }
 0x432   :  { %4130 = vmatpush3.msra.mxu0 %v3694_v19  ;;  %4165 = vmatpush3.msra.mxu1 %v3726_v13  ;;  %v3795_v25 = vld [vmem:[%s7411_s5 + $0x760] sm:$0xff]  ;;  %v3810_v24 = vld [vmem:[%s7411_s5 + $0x7d8] sm:$0xff] }
 0x433   :  { %4131 = vmatprep.subr.mxu0 %v3709_v17  ;;  %4166 = vmatprep.subr.mxu1 %v3741_v32  ;;  %v3073_v6 = vsel %vm1838_vm5, %v3050_v38, %v4522_v0  ;;  %v3075_v16 = vsel %vm1838_vm5, %v3054_v47, %v4523_v33  ;;  %v3762_v19 = vld [vmem:[%s7411_s5 + $0x658] sm:$0xff]  ;;  %v3777_v17 = vld [vmem:[%s7411_s5 + $0x6d0] sm:$0xff]  ;;  %v4526_v33 = vpop.permute.xlu0 %4525  ;;  %v3784_v38 = vld [vmem:[%s7411_s5 + $0x708] sm:$0xff] }
 0x434   :  { %4132 = vmatpush3.msra.mxu0 %v3693_v56  ;;  %4167 = vmatpush3.msra.mxu1 %v3725_v46  ;;  %v3794_v13 = vld [vmem:[%s7411_s5 + $0x758] sm:$0xff]  ;;  %v3809_v32 = vld [vmem:[%s7411_s5 + $0x7d0] sm:$0xff]  ;;  %v3767_v47 = vld [vmem:[%s7411_s5 + $0x680] sm:$0xff] }
 0x435   :  { %4133 = vmatprep.subr.mxu0 %v3708_v59  ;;  %4168 = vmatprep.subr.mxu1 %v3740_v11  ;;  %v3761_v56 = vld [vmem:[%s7411_s5 + $0x650] sm:$0xff]  ;;  %v3776_v59 = vld [vmem:[%s7411_s5 + $0x6c8] sm:$0xff] }
 0x436   :  { %4134 = vmatpush3.msra.mxu0 %v3692_v53  ;;  %4169 = vmatpush3.msra.mxu1 %v3724_v15  ;;  %v3793_v46 = vld [vmem:[%s7411_s5 + $0x750] sm:$0xff]  ;;  %v3808_v11 = vld [vmem:[%s7411_s5 + $0x7c8] sm:$0xff] }
 0x437   :  { %4135 = vmatprep.subr.mxu0 %v3707_v20  ;;  %4170 = vmatprep.subr.mxu1 %v3739_v27  ;;  %v3760_v53 = vld [vmem:[%s7411_s5 + $0x648] sm:$0xff]  ;;  %v3775_v20 = vld [vmem:[%s7411_s5 + $0x6c0] sm:$0xff]  ;;  %v3769_v0 = vld [vmem:[%s7411_s5 + $0x690] sm:$0xff] }
 0x438   :  { %4136 = vmatpush3.msra.mxu0 %v3691_v10  ;;  %4171 = vmatpush3.msra.mxu1 %v3723_v39  ;;  %v3792_v15 = vld [vmem:[%s7411_s5 + $0x748] sm:$0xff]  ;;  %v3807_v27 = vld [vmem:[%s7411_s5 + $0x7c0] sm:$0xff] }
 0x439   :  { %4137 = vmatprep.subr.mxu0 %v3706_v35  ;;  %4172 = vmatprep.subr.mxu1 %v3738_v52  ;;  %v3759_v10 = vld [vmem:[%s7411_s5 + $0x640] sm:$0xff]  ;;  %v3774_v35 = vld [vmem:[%s7411_s5 + $0x6b8] sm:$0xff] }
 0x43a   :  { %4138 = vmatpush3.msra.mxu0 %v3690_v31  ;;  %4173 = vmatpush3.msra.mxu1 %v3722_v45  ;;  %v3791_v39 = vld [vmem:[%s7411_s5 + $0x740] sm:$0xff]  ;;  %v3806_v52 = vld [vmem:[%s7411_s5 + $0x7b8] sm:$0xff] }
 0x43b   :  { %4139 = vmatprep.subr.mxu0 %v3705_v57  ;;  %4174 = vmatprep.subr.mxu1 %v3737_v50  ;;  %v3758_v31 = vld [vmem:[%s7411_s5 + $0x638] sm:$0xff]  ;;  %v3773_v57 = vld [vmem:[%s7411_s5 + $0x6b0] sm:$0xff] }
 0x43c   :  { %4140 = vmatpush3.msra.mxu0 %v3689_v4  ;;  %4175 = vmatpush3.msra.mxu1 %v3721_v18  ;;  %v3790_v45 = vld [vmem:[%s7411_s5 + $0x738] sm:$0xff]  ;;  %v3805_v50 = vld [vmem:[%s7411_s5 + $0x7b0] sm:$0xff]  ;;  %v3772_v18 = vld [vmem:[%s7411_s5 + $0x6a8] sm:$0xff] }
 0x43d   :  { %4141 = vmatprep.subr.mxu0 %v3704_v43  ;;  %4176 = vmatprep.subr.mxu1 %v3736_v58  ;;  %v3789_v4 = vld [vmem:[%s7411_s5 + $0x730] sm:$0xff]  ;;  %v3804_v43 = vld [vmem:[%s7411_s5 + $0x7a8] sm:$0xff] }
 0x43e   :  { %4142 = vmatpush3.msra.mxu0 %v3688_v23  ;;  %4177 = vmatpush3.msra.mxu1 %v3720_v42  ;;  %v3756_v58 = vld [vmem:[%s7411_s5 + $0x628] sm:$0xff]  ;;  %v3771_v23 = vld [vmem:[%s7411_s5 + $0x6a0] sm:$0xff] }
 0x43f   :  { %4143 = vmatprep.subr.mxu0 %v3703_v8  ;;  %4178 = vmatprep.subr.mxu1 %v3735_v41  ;;  %v3803_v42 = vld [vmem:[%s7411_s5 + $0x7a0] sm:$0xff]  ;;  %v3770_v8 = vld [vmem:[%s7411_s5 + $0x698] sm:$0xff] }
 0x440   :  { %4144 = vmatpush3.msra.mxu0 %v3687_v63  ;;  %4179 = vmatpush3.msra.mxu1 %v3719_v29  ;;  %v3802_v41 = vld [vmem:[%s7411_s5 + $0x798] sm:$0xff] }
 0x441   :  { %2972 = vmatmul.mubr.f32.vlgmr.msra.gmra.mxu0 %v2838_v55  ;;  %3042 = vmatmul.mubr.f32.vlgmr.msra.gmra.mxu1 %v2840_v22  ;;  %v3754_v63 = vld [vmem:[%s7411_s5 + $0x618] sm:$0xff]  ;;  %v3800_v55 = vld [vmem:[%s7411_s5 + $0x788] sm:$0xff] }
 0x442   :  { %4183 = vmatprep.subr.mxu0 %v3782_v9  ;;  %4218 = vmatprep.subr.mxu1 %v3814_v5  ;;  %v3786_v29 = vld [vmem:[%s7411_s5 + $0x718] sm:$0xff]  ;;  %v3785_v9 = vld [vmem:[%s7411_s5 + $0x710] sm:$0xff]  ;;  %v3768_v5 = vld [vmem:[%s7411_s5 + $0x688] sm:$0xff] }
 0x443   :  { %4184 = vmatpush3.msra.mxu0 %v3766_v2  ;;  %3205 = vmatprep.mubr.f32.mxu0 %v3073_v6  ;;  %v3752_v2 = vld [vmem:[%s7411_s5 + $0x608] sm:$0xff]  ;;  %v4527_v6 = vunpack.i.l.bf16 %v4526_v33 }
 0x444   :  { %4219 = vmatpush3.msra.mxu1 %v3798_v48  ;;  %3275 = vmatprep.mubr.f32.mxu1 %v3075_v16  ;;  %v4528_v48 = vunpack.i.h.bf16 %v4526_v33  ;;  %v3783_v16 = vld [vmem:[%s7411_s5 + $0x700] sm:$0xff]  ;;  %v3821_v33 = vld [vmem:[%s7411_s5 + $0x830] sm:$0xff] }
 0x445   :  { %4185 = vmatprep.subr.mxu0 %v3781_v37  ;;  %4220 = vmatprep.subr.mxu1 %v3813_v26  ;;  %v3799_v37 = vld [vmem:[%s7411_s5 + $0x780] sm:$0xff] }
 0x446   :  { %4186 = vmatpush3.msra.mxu0 %v3765_v1  ;;  %4221 = vmatpush3.msra.mxu1 %v3797_v40  ;;  %v3751_v26 = vld [vmem:[%s7411_s5 + $0x600] sm:$0xff] }
 0x447   :  { %4187 = vmatprep.subr.mxu0 %v3780_v14  ;;  %4222 = vmatprep.subr.mxu1 %v3812_v21  ;;  %v3048_v40 = vld [vmem:[#allocation2 + $0xc0] sm:$0xff] }
 0x448   :  { %4188 = vmatpush3.msra.mxu0 %v3764_v7  ;;  %4223 = vmatpush3.msra.mxu1 %v3796_v34  ;;  %v3052_v21 = vld [vmem:[#allocation2 + $0xe0] sm:$0xff]  ;;  %v3846_v7 = vld [vmem:[%s7411_s5 + $0x8f8] sm:$0xff] }
 0x449   :  { %4189 = vmatprep.subr.mxu0 %v3779_v49  ;;  %4224 = vmatprep.subr.mxu1 %v3811_v30  ;;  %v3878_v34 = vld [vmem:[%s7411_s5 + $0x9f8] sm:$0xff]  ;;  %v3072_v49 = vsel %vm1838_vm5, %v3048_v40, %v4527_v6  ;;  %v3074_v30 = vsel %vm1838_vm5, %v3052_v21, %v4528_v48  ;;  %v3819_v48 = vld [vmem:[%s7411_s5 + $0x820] sm:$0xff]  ;;  %v3865_v40 = vld [vmem:[%s7411_s5 + $0x990] sm:$0xff] }
 0x44a   :  { %4190 = vmatpush3.msra.mxu0 %v3763_v36  ;;  %4225 = vmatpush3.msra.mxu1 %v3795_v25  ;;  %v3830_v36 = vld [vmem:[%s7411_s5 + $0x878] sm:$0xff]  ;;  %v3284_v25 = vld [vmem:[#allocation2 + $0x110] sm:$0xff]  ;;  %v3851_v6 = vld [vmem:[%s7411_s5 + $0x920] sm:$0xff] }
 0x44b   :  { %4191 = vmatprep.subr.mxu0 %v3778_v60  ;;  %4226 = vmatprep.subr.mxu1 %v3810_v24  ;;  %v3862_v60 = vld [vmem:[%s7411_s5 + $0x978] sm:$0xff]  ;;  %v3817_v21 = vld [vmem:[%s7411_s5 + $0x810] sm:$0xff] }
 0x44c   :  { %4192 = vmatpush3.msra.mxu0 %v3762_v19  ;;  %4227 = vmatpush3.msra.mxu1 %v3794_v13  ;;  %v3288_v19 = vld [vmem:[#allocation2 + $0x130] sm:$0xff] }
 0x44d   :  { %4193 = vmatprep.subr.mxu0 %v3777_v17  ;;  %4228 = vmatprep.subr.mxu1 %v3809_v32  ;;  %v3845_v13 = vld [vmem:[%s7411_s5 + $0x8f0] sm:$0xff] }
 0x44e   :  { %4194 = vmatpush3.msra.mxu0 %v3761_v56  ;;  %4229 = vmatpush3.msra.mxu1 %v3793_v46  ;;  %v3877_v17 = vld [vmem:[%s7411_s5 + $0x9f0] sm:$0xff] }
 0x44f   :  { %4195 = vmatprep.subr.mxu0 %v3776_v59  ;;  %4230 = vmatprep.subr.mxu1 %v3808_v11  ;;  %v3829_v56 = vld [vmem:[%s7411_s5 + $0x870] sm:$0xff]  ;;  %v3844_v59 = vld [vmem:[%s7411_s5 + $0x8e8] sm:$0xff] }
 0x450   :  { %4196 = vmatpush3.msra.mxu0 %v3760_v53  ;;  %4231 = vmatpush3.msra.mxu1 %v3792_v15  ;;  %v3861_v46 = vld [vmem:[%s7411_s5 + $0x970] sm:$0xff]  ;;  %v3876_v11 = vld [vmem:[%s7411_s5 + $0x9e8] sm:$0xff] }
 0x451   :  { %4197 = vmatprep.subr.mxu0 %v3775_v20  ;;  %4232 = vmatprep.subr.mxu1 %v3807_v27  ;;  %v3828_v53 = vld [vmem:[%s7411_s5 + $0x868] sm:$0xff]  ;;  %v3843_v20 = vld [vmem:[%s7411_s5 + $0x8e0] sm:$0xff] }
 0x452   :  { %4198 = vmatpush3.msra.mxu0 %v3759_v10  ;;  %4233 = vmatpush3.msra.mxu1 %v3791_v39  ;;  %v3860_v15 = vld [vmem:[%s7411_s5 + $0x968] sm:$0xff]  ;;  %v3875_v27 = vld [vmem:[%s7411_s5 + $0x9e0] sm:$0xff] }
 0x453   :  { %4199 = vmatprep.subr.mxu0 %v3774_v35  ;;  %4234 = vmatprep.subr.mxu1 %v3806_v52  ;;  %v3827_v10 = vld [vmem:[%s7411_s5 + $0x860] sm:$0xff]  ;;  %v3842_v35 = vld [vmem:[%s7411_s5 + $0x8d8] sm:$0xff] }
 0x454   :  { %4200 = vmatpush3.msra.mxu0 %v3758_v31  ;;  %4235 = vmatpush3.msra.mxu1 %v3790_v45  ;;  %v4531_v22 = vpop.permute.xlu1 %4530  ;;  %v3859_v39 = vld [vmem:[%s7411_s5 + $0x960] sm:$0xff]  ;;  %v3874_v52 = vld [vmem:[%s7411_s5 + $0x9d8] sm:$0xff] }
 0x455   :  { %4201 = vmatprep.subr.mxu0 %v3773_v57  ;;  %4236 = vmatprep.subr.mxu1 %v3805_v50  ;;  %v4532_v1 = vunpack.i.l.bf16 %v4531_v22  ;;  %v4533_v14 = vunpack.i.h.bf16 %v4531_v22  ;;  %v3826_v31 = vld [vmem:[%s7411_s5 + $0x858] sm:$0xff]  ;;  %v3841_v57 = vld [vmem:[%s7411_s5 + $0x8d0] sm:$0xff]  ;;  %v3852_v22 = vld [vmem:[%s7411_s5 + $0x928] sm:$0xff] }
 0x456   :  { %4202 = vmatpush3.msra.mxu0 %v3757_v62  ;;  %4237 = vmatpush3.msra.mxu1 %v3789_v4  ;;  %v3858_v45 = vld [vmem:[%s7411_s5 + $0x958] sm:$0xff]  ;;  %v3873_v50 = vld [vmem:[%s7411_s5 + $0x9d0] sm:$0xff] }
 0x457   :  { %4203 = vmatprep.subr.mxu0 %v3772_v18  ;;  %4238 = vmatprep.subr.mxu1 %v3804_v43  ;;  %v3307_v24 = vsel %vm1838_vm5, %v3284_v25, %v4532_v1  ;;  %v3309_v32 = vsel %vm1838_vm5, %v3288_v19, %v4533_v14  ;;  %v3825_v62 = vld [vmem:[%s7411_s5 + $0x850] sm:$0xff]  ;;  %v3840_v18 = vld [vmem:[%s7411_s5 + $0x8c8] sm:$0xff]  ;;  %v4536_v14 = vpop.permute.xlu0 %4535  ;;  %v3863_v19 = vld [vmem:[%s7411_s5 + $0x980] sm:$0xff] }
 0x458   :  { %4204 = vmatpush3.msra.mxu0 %v3756_v58  ;;  %4239 = vmatpush3.msra.mxu1 %v3788_v28  ;;  %v3857_v4 = vld [vmem:[%s7411_s5 + $0x950] sm:$0xff]  ;;  %v3872_v43 = vld [vmem:[%s7411_s5 + $0x9c8] sm:$0xff]  ;;  %v4538_v25 = vunpack.i.h.bf16 %v4536_v14 }
 0x459   :  { %4205 = vmatprep.subr.mxu0 %v3771_v23  ;;  %4240 = vmatprep.subr.mxu1 %v3803_v42  ;;  %v3824_v58 = vld [vmem:[%s7411_s5 + $0x848] sm:$0xff]  ;;  %v3839_v23 = vld [vmem:[%s7411_s5 + $0x8c0] sm:$0xff]  ;;  %v3833_v1 = vld [vmem:[%s7411_s5 + $0x890] sm:$0xff] }
 0x45a   :  { %4206 = vmatpush3.msra.mxu0 %v3755_v44  ;;  %4241 = vmatpush3.msra.mxu1 %v3787_v3  ;;  %v3856_v28 = vld [vmem:[%s7411_s5 + $0x948] sm:$0xff]  ;;  %v3871_v42 = vld [vmem:[%s7411_s5 + $0x9c0] sm:$0xff] }
 0x45b   :  { %4207 = vmatprep.subr.mxu0 %v3770_v8  ;;  %4242 = vmatprep.subr.mxu1 %v3802_v41  ;;  %v3823_v44 = vld [vmem:[%s7411_s5 + $0x840] sm:$0xff]  ;;  %v3838_v8 = vld [vmem:[%s7411_s5 + $0x8b8] sm:$0xff] }
 0x45c   :  { %4208 = vmatpush3.msra.mxu0 %v3754_v63  ;;  %4243 = vmatpush3.msra.mxu1 %v3786_v29  ;;  %v3855_v3 = vld [vmem:[%s7411_s5 + $0x940] sm:$0xff]  ;;  %v3870_v41 = vld [vmem:[%s7411_s5 + $0x9b8] sm:$0xff] }
 0x45d   :  { %4209 = vmatprep.subr.mxu0 %v3769_v0  ;;  %4244 = vmatprep.subr.mxu1 %v3801_v51  ;;  %v3822_v63 = vld [vmem:[%s7411_s5 + $0x838] sm:$0xff]  ;;  %v3837_v0 = vld [vmem:[%s7411_s5 + $0x8b0] sm:$0xff] }
 0x45e   :  { %4210 = vmatpush3.msra.mxu0 %v3753_v12  ;;  %4245 = vmatpush3.msra.mxu1 %v3785_v9  ;;  %v3854_v29 = vld [vmem:[%s7411_s5 + $0x938] sm:$0xff]  ;;  %v3869_v51 = vld [vmem:[%s7411_s5 + $0x9b0] sm:$0xff]  ;;  %v3836_v9 = vld [vmem:[%s7411_s5 + $0x8a8] sm:$0xff] }
 0x45f   :  { %4211 = vmatprep.subr.mxu0 %v3768_v5  ;;  %4246 = vmatprep.subr.mxu1 %v3800_v55  ;;  %v3853_v12 = vld [vmem:[%s7411_s5 + $0x930] sm:$0xff]  ;;  %v3868_v5 = vld [vmem:[%s7411_s5 + $0x9a8] sm:$0xff] }
 0x460   :  { %4212 = vmatpush3.msra.mxu0 %v3752_v2  ;;  %4247 = vmatpush3.msra.mxu1 %v3784_v38  ;;  %v3820_v55 = vld [vmem:[%s7411_s5 + $0x828] sm:$0xff]  ;;  %v3835_v2 = vld [vmem:[%s7411_s5 + $0x8a0] sm:$0xff] }
 0x461   :  { %4213 = vmatprep.subr.mxu0 %v3767_v47  ;;  %4248 = vmatprep.subr.mxu1 %v3799_v37  ;;  %v3867_v38 = vld [vmem:[%s7411_s5 + $0x9a0] sm:$0xff]  ;;  %v3834_v47 = vld [vmem:[%s7411_s5 + $0x898] sm:$0xff] }
 0x462   :  { %4214 = vmatpush3.msra.mxu0 %v3751_v26  ;;  %4249 = vmatpush3.msra.mxu1 %v3783_v16  ;;  %v3866_v37 = vld [vmem:[%s7411_s5 + $0x998] sm:$0xff] }
 0x463   :  { %3206 = vmatmul.mubr.f32.vlgmr.msra.gmra.mxu0 %v3072_v49  ;;  %3276 = vmatmul.mubr.f32.vlgmr.msra.gmra.mxu1 %v3074_v30  ;;  %v3818_v26 = vld [vmem:[%s7411_s5 + $0x818] sm:$0xff]  ;;  %v3864_v49 = vld [vmem:[%s7411_s5 + $0x988] sm:$0xff] }
 0x464   :  { %4253 = vmatprep.subr.mxu0 %v3846_v7  ;;  %4288 = vmatprep.subr.mxu1 %v3878_v34  ;;  %v3850_v16 = vld [vmem:[%s7411_s5 + $0x918] sm:$0xff]  ;;  %v3849_v7 = vld [vmem:[%s7411_s5 + $0x910] sm:$0xff]  ;;  %v3832_v34 = vld [vmem:[%s7411_s5 + $0x888] sm:$0xff] }
 0x465   :  { %4254 = vmatpush3.msra.mxu0 %v3830_v36  ;;  %3439 = vmatprep.mubr.f32.mxu0 %v3307_v24  ;;  %v3816_v30 = vld [vmem:[%s7411_s5 + $0x808] sm:$0xff]  ;;  %v3831_v24 = vld [vmem:[%s7411_s5 + $0x880] sm:$0xff] }
 0x466   :  { %4289 = vmatpush3.msra.mxu1 %v3862_v60  ;;  %3509 = vmatprep.mubr.f32.mxu1 %v3309_v32  ;;  %v3848_v36 = vld [vmem:[%s7411_s5 + $0x908] sm:$0xff]  ;;  %v4537_v60 = vunpack.i.l.bf16 %v4536_v14  ;;  %v3282_v32 = vld [vmem:[#allocation2 + $0x100] sm:$0xff] }
 0x467   :  { %4255 = vmatprep.subr.mxu0 %v3845_v13  ;;  %4290 = vmatprep.subr.mxu1 %v3877_v17  ;;  %v3815_v13 = vld [vmem:[%s7411_s5 + $0x800] sm:$0xff] }
 0x468   :  { %4256 = vmatpush3.msra.mxu0 %v3829_v56  ;;  %4291 = vmatpush3.msra.mxu1 %v3861_v46  ;;  %v3847_v17 = vld [vmem:[%s7411_s5 + $0x900] sm:$0xff]  ;;  %v3306_v46 = vsel %vm1838_vm5, %v3282_v32, %v4537_v60 }
 0x469   :  { %4257 = vmatprep.subr.mxu0 %v3844_v59  ;;  %4292 = vmatprep.subr.mxu1 %v3876_v11  ;;  %v3286_v56 = vld [vmem:[#allocation2 + $0x120] sm:$0xff] }
 0x46a   :  { %4258 = vmatpush3.msra.mxu0 %v3828_v53  ;;  %4293 = vmatpush3.msra.mxu1 %v3860_v15  ;;  %v3308_v59 = vsel %vm1838_vm5, %v3286_v56, %v4538_v25 }
 0x46b   :  { %4259 = vmatprep.subr.mxu0 %v3843_v20  ;;  %4294 = vmatprep.subr.mxu1 %v3875_v27 }
 0x46c   :  { %4260 = vmatpush3.msra.mxu0 %v3827_v10  ;;  %4295 = vmatpush3.msra.mxu1 %v3859_v39 }
 0x46d   :  { %4261 = vmatprep.subr.mxu0 %v3842_v35  ;;  %4296 = vmatprep.subr.mxu1 %v3874_v52 }
 0x46e   :  { %4262 = vmatpush3.msra.mxu0 %v3826_v31  ;;  %4297 = vmatpush3.msra.mxu1 %v3858_v45 }
 0x46f   :  { %4263 = vmatprep.subr.mxu0 %v3841_v57  ;;  %4298 = vmatprep.subr.mxu1 %v3873_v50 }
 0x470   :  { %4264 = vmatpush3.msra.mxu0 %v3825_v62  ;;  %4299 = vmatpush3.msra.mxu1 %v3857_v4 }
 0x471   :  { %4265 = vmatprep.subr.mxu0 %v3840_v18  ;;  %4300 = vmatprep.subr.mxu1 %v3872_v43 }
 0x472   :  { %4266 = vmatpush3.msra.mxu0 %v3824_v58  ;;  %4301 = vmatpush3.msra.mxu1 %v3856_v28 }
 0x473   :  { %4267 = vmatprep.subr.mxu0 %v3839_v23  ;;  %4302 = vmatprep.subr.mxu1 %v3871_v42 }
 0x474   :  { %4268 = vmatpush3.msra.mxu0 %v3823_v44  ;;  %4303 = vmatpush3.msra.mxu1 %v3855_v3 }
 0x475   :  { %4269 = vmatprep.subr.mxu0 %v3838_v8  ;;  %4304 = vmatprep.subr.mxu1 %v3870_v41 }
 0x476   :  { %4270 = vmatpush3.msra.mxu0 %v3822_v63  ;;  %4305 = vmatpush3.msra.mxu1 %v3854_v29 }
 0x477   :  { %4271 = vmatprep.subr.mxu0 %v3837_v0  ;;  %4306 = vmatprep.subr.mxu1 %v3869_v51 }
 0x478   :  { %4272 = vmatpush3.msra.mxu0 %v3821_v33  ;;  %4307 = vmatpush3.msra.mxu1 %v3853_v12 }
 0x479   :  { %4273 = vmatprep.subr.mxu0 %v3836_v9  ;;  %4308 = vmatprep.subr.mxu1 %v3868_v5 }
 0x47a   :  { %4274 = vmatpush3.msra.mxu0 %v3820_v55  ;;  %4309 = vmatpush3.msra.mxu1 %v3852_v22  ;;  %v3516_v55 = vld [vmem:[%s7412_s6] sm:$0x7] }
 0x47b   :  { %4275 = vmatprep.subr.mxu0 %v3835_v2  ;;  %4310 = vmatprep.subr.mxu1 %v3867_v38 }
 0x47c   :  { %4276 = vmatpush3.msra.mxu0 %v3819_v48  ;;  %4311 = vmatpush3.msra.mxu1 %v3851_v6 }
 0x47d   :  { %4277 = vmatprep.subr.mxu0 %v3834_v47  ;;  %4312 = vmatprep.subr.mxu1 %v3866_v37  ;;  %v7707_v47 = vsub.s32 0, %v7706_v61 }
 0x47e   :  { %4278 = vmatpush3.msra.mxu0 %v3818_v26  ;;  %4313 = vmatpush3.msra.mxu1 %v3850_v16 }
 0x47f   :  { %4279 = vmatprep.subr.mxu0 %v3833_v1  ;;  %4314 = vmatprep.subr.mxu1 %v3865_v40  ;;  %v3520_v37 = vrot.slane %v3516_v55, %v7707_v47  ;;  %v3526_v1 = vrot.slane %v3516_v55, %v1881_v54 }
 0x480   :  { %4280 = vmatpush3.msra.mxu0 %v3817_v21  ;;  %4315 = vmatpush3.msra.mxu1 %v3849_v7  ;;  %v3533_v7 = vsub.s32 2, %v7706_v61 }
 0x481   :  { %4281 = vmatprep.subr.mxu0 %v3832_v34  ;;  %4316 = vmatprep.subr.mxu1 %v3864_v49 }
 0x482   :  { %4282 = vmatpush3.msra.mxu0 %v3816_v30  ;;  %4317 = vmatpush3.msra.mxu1 %v3848_v36  ;;  %v3534_v34 = vrot.slane %v3516_v55, %v3533_v7 }
 0x483   :  { %4283 = vmatprep.subr.mxu0 %v3831_v24  ;;  %4318 = vmatprep.subr.mxu1 %v3863_v19 }
 0x484   :  { %4284 = vmatpush3.msra.mxu0 %v3815_v13  ;;  %4319 = vmatpush3.msra.mxu1 %v3847_v17 }
 0x485   :  { %3440 = vmatmul.mubr.f32.vlgmr.msra.gmra.mxu0 %v3306_v46  ;;  %3510 = vmatmul.mubr.f32.vlgmr.msra.gmra.mxu1 %v3308_v59 }
 0x4be   :  { %v4005_v11 = vpop.f32.mrf.mxu0  ;;  %v4040_v53 = vpop.f32.mrf.mxu1 }
 0x4c0   :  { %v4006_v15 = vpop.f32.mrf.mxu0  ;;  %v4041_v20 = vpop.f32.mrf.mxu1 }
 0x4c1   :  { %v4007_v4 = vadd.f32 %v4006_v15, %v4005_v11  ;;  %v4042_v18 = vadd.f32 %v4041_v20, %v4040_v53 }
 0x4c3   :  { %v2671_v23 = vadd.f32 %v4042_v18, %v4007_v4 }
 0x4df   :  { %v4075_v27 = vpop.f32.mrf.mxu0  ;;  %v4110_v10 = vpop.f32.mrf.mxu1 }
 0x4e1   :  { %v4076_v39 = vpop.f32.mrf.mxu0  ;;  %v4111_v35 = vpop.f32.mrf.mxu1 }
 0x4e2   :  { %v4077_v43 = vadd.f32 %v4076_v39, %v4075_v27  ;;  %v4112_v63 = vadd.f32 %v4111_v35, %v4110_v10 }
 0x4e4   :  { %v2741_v3 = vadd.f32 %v4077_v43, %v2671_v23 }
 0x4e6   :  { %v2811_v33 = vadd.f32 %v4112_v63, %v2741_v3 }
 0x501   :  { %v4145_v52 = vpop.f32.mrf.mxu0  ;;  %v4180_v31 = vpop.f32.mrf.mxu1 }
 0x503   :  { %v4146_v45 = vpop.f32.mrf.mxu0  ;;  %v4181_v57 = vpop.f32.mrf.mxu1 }
 0x504   :  { %v4147_v42 = vadd.f32 %v4146_v45, %v4145_v52  ;;  %v4182_v44 = vadd.f32 %v4181_v57, %v4180_v31 }
 0x506   :  { %v3044_v29 = vadd.f32 %v4182_v44, %v4147_v42 }
 0x508   :  { %v3047_v22 = vadd.f32 %v3044_v29, %v2811_v33 }
 0x523   :  { %v4215_v50 = vpop.f32.mrf.mxu0  ;;  %v4250_v62 = vpop.f32.mrf.mxu1 }
 0x525   :  { %v4216_v58 = vpop.f32.mrf.mxu0  ;;  %v4251_v28 = vpop.f32.mrf.mxu1 }
 0x526   :  { %v4217_v8 = vadd.f32 %v4216_v58, %v4215_v50  ;;  %v4252_v41 = vadd.f32 %v4251_v28, %v4250_v62 }
 0x528   :  { %v3278_v12 = vadd.f32 %v4252_v41, %v4217_v8 }
 0x52a   :  { %v3281_v48 = vadd.f32 %v3278_v12, %v3047_v22 }
 0x545   :  { %v4285_v0 = vpop.f32.mrf.mxu0  ;;  %v4320_v51 = vpop.f32.mrf.mxu1 }
 0x547   :  { %v4286_v9 = vpop.f32.mrf.mxu0  ;;  %v4321_v5 = vpop.f32.mrf.mxu1 }
 0x548   :  { %v4287_v2 = vadd.f32 %v4286_v9, %v4285_v0  ;;  %v4322_v38 = vadd.f32 %v4321_v5, %v4320_v51 }
 0x54a   :  { %v3512_v6 = vadd.f32 %v4322_v38, %v4287_v2 }
 0x54c   :  { %v3515_v26 = vadd.f32 %v3512_v6, %v3281_v48 }
 0x54e   :  { %v3521_v16 = vadd.f32 %v3520_v37, %v3515_v26 }
 0x550   :  { %v3522_v40 = vmax.f32 %v3521_v16, 0.0 }
 0x552   :  { %v3527_v14 = vmul.f32 %v3526_v1, %v3522_v40 }
 0x554   :  { %v3528_v21 = vsel %vm1838_vm5, %v3527_v14, 0.0 }
 0x555   :  { %3529 = vadd.xlane.f32.xlu1 %v3528_v21 }
 0x5de   :  { %v3530_v49 = vpop.xlane.xlu1 %3529 }
 0x5df   :  { %v3535_v30 = vadd.f32 %v3534_v34, %v3530_v49 }
 0x5e1   :  { %3537 = vst.msk [vmem:[%s7413_s7] sm:$0xff] %vm3536_vm7, %v3535_v30 }

</bundles_post_ra>
